<compile_context>
chip_gen: v7x
topology: tpu7x:2x2x1
jax: 0.10.0
libtpu: 0.0.40
codegen_flags: <defaults>
</compile_context>

<pallas_src>
import functools

import jax
import jax.numpy as jnp
from jax.experimental import pallas as pl
from jax.experimental.pallas import tpu as pltpu

LANE = 128
VMEM_LIMIT = 64 * 1024 * 1024


def _round_up(x, m):
    return ((x + m - 1) // m) * m


def _pad2d(a, rows, cols):
    return jnp.pad(a, ((0, rows - a.shape[0]), (0, cols - a.shape[1])))


def _pick_tile(dim, pref):
    """Largest multiple of 128 that divides `dim` and is <= pref (dim % 128 == 0)."""
    t = min(pref, dim)
    while dim % t:
        t -= LANE
    return t


# ---------------------------------------------------------------------------
# Pallas kernels
# ---------------------------------------------------------------------------
def _matmul_kernel(x_ref, w_ref, o_ref, acc_ref, *, apply_relu):
    """out = X @ W [+ relu], tiled (M, N, K) with an f32 accumulator."""
    @pl.when(pl.program_id(2) == 0)
    def _init():
        acc_ref[...] = jnp.zeros_like(acc_ref)

    acc_ref[...] += jnp.dot(x_ref[...], w_ref[...],
                            preferred_element_type=jnp.float32)

    @pl.when(pl.program_id(2) == pl.num_programs(2) - 1)
    def _finalize():
        out = acc_ref[...]
        if apply_relu:
            out = jnp.maximum(out, 0.0)
        o_ref[...] = out.astype(o_ref.dtype)


def _matmul_bias_kernel(x_ref, w_ref, b_ref, o_ref, acc_ref, *, apply_relu):
    """out = X @ W + b [+ relu]."""
    @pl.when(pl.program_id(2) == 0)
    def _init():
        acc_ref[...] = jnp.zeros_like(acc_ref)

    acc_ref[...] += jnp.dot(x_ref[...], w_ref[...],
                            preferred_element_type=jnp.float32)

    @pl.when(pl.program_id(2) == pl.num_programs(2) - 1)
    def _finalize():
        out = acc_ref[...] + b_ref[...]
        if apply_relu:
            out = jnp.maximum(out, 0.0)
        o_ref[...] = out.astype(o_ref.dtype)


def _sage_conv_kernel(a_ref, zl_ref, x_ref, wr_ref, scale_ref, b_ref, o_ref,
                      acc_ref, *, apply_relu):
    """out = (1/deg) * (A_counts @ Z_l) + X @ W_r + b_l   [+ relu].

    A_counts is int8 edge multiplicities, upcast in-register before the MXU
    pass; the exact f32 per-destination-row mean scale, the fused residual
    matmul, bias and relu all live in the k==last finalize branch.
    """
    @pl.when(pl.program_id(2) == 0)
    def _init():
        acc_ref[...] = jnp.zeros_like(acc_ref)

    # Two-step s8 -> f32 -> bf16 cast (both conversions lower natively); cheap
    # VPU work hidden under the adjacency DMA.
    a_bf16 = a_ref[...].astype(jnp.float32).astype(jnp.bfloat16)
    acc_ref[...] += jnp.dot(a_bf16, zl_ref[...],
                            preferred_element_type=jnp.float32)

    @pl.when(pl.program_id(2) == pl.num_programs(2) - 1)
    def _finalize():
        resid = jnp.dot(x_ref[...], wr_ref[...],
                        preferred_element_type=jnp.float32)
        out = scale_ref[...] * acc_ref[...] + resid + b_ref[...]
        if apply_relu:
            out = jnp.maximum(out, 0.0)
        o_ref[...] = out.astype(o_ref.dtype)


# ---------------------------------------------------------------------------
# pallas_call wrappers
# ---------------------------------------------------------------------------
def matmul(x, w, b=None, *, apply_relu, out_dtype, tm, tn, tk):
    m, k = x.shape
    k2, n = w.shape
    assert k == k2 and m % tm == 0 and n % tn == 0 and k % tk == 0
    in_specs = [
        pl.BlockSpec((tm, tk), lambda i, j, kk: (i, kk)),   # X
        pl.BlockSpec((tk, tn), lambda i, j, kk: (kk, j)),   # W
    ]
    args = [x, w]
    if b is not None:
        in_specs.append(pl.BlockSpec((1, tn), lambda i, j, kk: (0, j)))
        args.append(b)
        kernel = functools.partial(_matmul_bias_kernel, apply_relu=apply_relu)
    else:
        kernel = functools.partial(_matmul_kernel, apply_relu=apply_relu)
    return pl.pallas_call(
        kernel,
        out_shape=jax.ShapeDtypeStruct((m, n), out_dtype),
        grid_spec=pltpu.PrefetchScalarGridSpec(
            num_scalar_prefetch=0,
            grid=(m // tm, n // tn, k // tk),
            in_specs=in_specs,
            out_specs=pl.BlockSpec((tm, tn), lambda i, j, kk: (i, j)),
            scratch_shapes=[pltpu.VMEM((tm, tn), jnp.float32)],
        ),
        compiler_params=pltpu.CompilerParams(
            dimension_semantics=("parallel", "parallel", "arbitrary"),
            vmem_limit_bytes=VMEM_LIMIT),
    )(*args)


def sage_conv(a_counts, z_l, x, w_r, scale, b_l, *, apply_relu, out_dtype,
              tm, tn, tk):
    """a_counts: int8 [Np, Np]; z_l: bf16 [Np, H]; x: bf16 [Np, D_in];
    w_r: bf16 [D_in, H]; scale: f32 [Np, 1]; b_l: f32 [1, H]."""
    n_pad = a_counts.shape[0]
    h_pad = z_l.shape[1]
    d_in = x.shape[1]
    assert n_pad % tm == 0 and n_pad % tk == 0 and h_pad % tn == 0
    kernel = functools.partial(_sage_conv_kernel, apply_relu=apply_relu)
    return pl.pallas_call(
        kernel,
        out_shape=jax.ShapeDtypeStruct((n_pad, h_pad), out_dtype),
        grid_spec=pltpu.PrefetchScalarGridSpec(
            num_scalar_prefetch=0,
            grid=(n_pad // tm, h_pad // tn, n_pad // tk),
            in_specs=[
                pl.BlockSpec((tm, tk), lambda i, j, kk: (i, kk)),    # A (int8)
                pl.BlockSpec((tk, tn), lambda i, j, kk: (kk, j)),    # Z_l
                pl.BlockSpec((tm, d_in), lambda i, j, kk: (i, 0)),   # X (residual)
                pl.BlockSpec((d_in, tn), lambda i, j, kk: (0, j)),   # W_r
                pl.BlockSpec((tm, 1), lambda i, j, kk: (i, 0)),      # 1/deg (f32)
                pl.BlockSpec((1, tn), lambda i, j, kk: (0, j)),      # b_l (f32)
            ],
            out_specs=pl.BlockSpec((tm, tn), lambda i, j, kk: (i, j)),
            scratch_shapes=[pltpu.VMEM((tm, tn), jnp.float32)],
        ),
        compiler_params=pltpu.CompilerParams(
            dimension_semantics=("parallel", "parallel", "arbitrary"),
            vmem_limit_bytes=VMEM_LIMIT),
    )(a_counts, z_l, x, w_r, scale, b_l)


# ---------------------------------------------------------------------------
# Model glue (plain JAX)
# ---------------------------------------------------------------------------
def edge_index_to_counts(edge_index, num_nodes):
    """int8 edge-multiplicity matrix (row = destination) + exact f32 1/deg
    scale per destination row (duplicate edges counted, like PyG mean aggr).
    TODO(synk): for production graph sizes replace the dense N x N adjacency
    with a CSR neighbor list + PrefetchScalarGridSpec DMA-gather (O(E*D))."""
    src, dst = edge_index[0], edge_index[1]
    counts = jnp.zeros((num_nodes, num_nodes), jnp.int32).at[dst, src].add(1)
    deg = counts.sum(axis=1, keepdims=True).astype(jnp.float32)
    scale = jnp.where(deg > 0, 1.0 / jnp.maximum(deg, 1.0), 0.0)
    # int8 holds multiplicities up to 127; plenty for the demo graph.
    return counts.astype(jnp.int8), scale


def init_params(key, in_dim, hidden_dim, num_layers):
    """f32 parameters matching the PyTorch module (lin_l has bias, lin_r not)."""
    convs = []
    dims = [in_dim] + [hidden_dim] * num_layers
    for li in range(num_layers):
        key, k1, k2, k3 = jax.random.split(key, 4)
        d_in, d_out = dims[li], dims[li + 1]
        convs.append(dict(
            w_l=0.1 * jax.random.normal(k1, (d_in, d_out), jnp.float32),
            w_r=0.1 * jax.random.normal(k2, (d_in, d_out), jnp.float32),
            b_l=0.1 * jax.random.normal(k3, (1, d_out), jnp.float32)))
    key, kv1, kv2, kt1, kt2 = jax.random.split(key, 5)
    heads = dict(
        w_v=0.1 * jax.random.normal(kv1, (hidden_dim, hidden_dim), jnp.float32),
        b_v=0.1 * jax.random.normal(kv2, (1, hidden_dim), jnp.float32),
        w_t=0.1 * jax.random.normal(kt1, (hidden_dim, hidden_dim), jnp.float32),
        b_t=0.1 * jax.random.normal(kt2, (1, hidden_dim), jnp.float32))
    return dict(convs=convs, heads=heads)


def pack_params(params_f32, d_pad, h_pad):
    """Zero-pad to lane-dense shapes; bf16 MXU weights, f32 biases."""
    packed = {"convs": []}
    pads = [d_pad] + [h_pad] * len(params_f32["convs"])
    for li, p in enumerate(params_f32["convs"]):
        d_in_pad = pads[li]
        packed["convs"].append(dict(
            w_l=_pad2d(p["w_l"], d_in_pad, h_pad).astype(jnp.bfloat16),
            w_r=_pad2d(p["w_r"], d_in_pad, h_pad).astype(jnp.bfloat16),
            b_l=_pad2d(p["b_l"], 1, h_pad)))                       # f32
    h = params_f32["heads"]
    # Fused vision/text heads: one lane-dense [H, 2H] matmul, X read once.
    packed["heads_w"] = jnp.concatenate(
        [_pad2d(h["w_v"], h_pad, h_pad), _pad2d(h["w_t"], h_pad, h_pad)],
        axis=1).astype(jnp.bfloat16)
    packed["heads_b"] = jnp.concatenate(
        [_pad2d(h["b_v"], 1, h_pad), _pad2d(h["b_t"], 1, h_pad)], axis=1)
    return packed


def graphsage_forward(packed, x_pad, a_counts_pad, scale_pad, *, h_pad,
                      hidden_dim, num_nodes):
    # dropout (p=self.dropout) is identity in eval mode (training=False).
    num_layers = len(packed["convs"])
    n_pad = x_pad.shape[0]
    tm = _pick_tile(n_pad, 256)        # 256-aligned rows fill the v6e/v7x MXU
    tk_nodes = _pick_tile(n_pad, 256)  # node-reduction tile for A @ Z_l
    # Single output-column block (tn = h_pad) => A streamed from HBM once/layer.
    tn_h = h_pad if h_pad <= 512 else _pick_tile(h_pad, 512)

    x = x_pad                          # bf16 [N_pad, D_pad]
    for i, p in enumerate(packed["convs"]):
        d_in_pad = x.shape[1]
        # Z_l = X @ W_l (no bias; the X @ W_r residual is fused into sage_conv)
        z_l = matmul(x, p["w_l"], apply_relu=False, out_dtype=jnp.bfloat16,
                     tm=tm, tn=tn_h, tk=_pick_tile(d_in_pad, 256))
        # out = (1/deg) * (A_counts @ Z_l) + X @ W_r + b_l   (+ relu, not last)
        x = sage_conv(a_counts_pad, z_l, x, p["w_r"], scale_pad, p["b_l"],
                      apply_relu=(i != num_layers - 1),
                      out_dtype=jnp.bfloat16, tm=tm, tn=tn_h, tk=tk_nodes)

    # Fused heads: relu(X @ [Wv | Wt] + [bv | bt]) in one lane-dense matmul.
    heads = matmul(x, packed["heads_w"], packed["heads_b"], apply_relu=True,
                   out_dtype=jnp.float32, tm=tm,
                   tn=_pick_tile(2 * h_pad, 512), tk=_pick_tile(h_pad, 256))

    # NOTE: padded node rows carry relu(b) garbage; they never leak into real
    # rows (A_counts columns for padded nodes are zero) and are sliced off here.
    out_x = x[:num_nodes, :hidden_dim].astype(jnp.float32)
    out_vision = heads[:num_nodes, :hidden_dim]
    out_text = heads[:num_nodes, h_pad:h_pad + hidden_dim]
    return out_x, out_vision, out_text


def reference_forward(params_f32, x, counts, scale):
    """Pure-JAX f32 reference of the PyTorch forward (eval mode)."""
    a_mean = counts.astype(jnp.float32) * scale
    h = x
    n_layers = len(params_f32["convs"])
    for i, p in enumerate(params_f32["convs"]):
        h = (a_mean @ h) @ p["w_l"] + h @ p["w_r"] + p["b_l"]
        if i != n_layers - 1:
            h = jnp.maximum(h, 0.0)
    hd = params_f32["heads"]
    xv = jnp.maximum(h @ hd["w_v"] + hd["b_v"], 0.0)
    xt = jnp.maximum(h @ hd["w_t"] + hd["b_t"], 0.0)
    return h, xv, xt


if __name__ == "__main__":
    N_NODES = 8
    IN_DIM = 16
    HIDDEN_DIM = 32
    NUM_LAYERS = 2
    N_EDGES = 24

    # Lane-dense padded sizes. Nodes padded to 512 so that even with 256-wide
    # tiles the node-reduction grid of the aggregate kernel has >1 step
    # (exercises the f32 accumulator / pl.when init+finalize path).
    N_PAD = max(_round_up(N_NODES, LANE), 512)
    D_PAD = _round_up(IN_DIM, LANE)
    H_PAD = _round_up(HIDDEN_DIM, LANE)

    key = jax.random.PRNGKey(0)
    key, kx, ks, kd, kp = jax.random.split(key, 5)

    x = jax.random.normal(kx, (N_NODES, IN_DIM), jnp.float32)
    edge_index = jnp.stack([
        jax.random.randint(ks, (N_EDGES,), 0, N_NODES),
        jax.random.randint(kd, (N_EDGES,), 0, N_NODES),
    ], axis=0)  # [2, E]

    counts, scale = edge_index_to_counts(edge_index, N_NODES)
    a_counts_pad = _pad2d(counts, N_PAD, N_PAD)              # int8, exact counts
    scale_pad = _pad2d(scale, N_PAD, 1)                      # f32 1/deg per row
    x_pad = _pad2d(x, N_PAD, D_PAD).astype(jnp.bfloat16)

    params_f32 = init_params(kp, IN_DIM, HIDDEN_DIM, NUM_LAYERS)
    packed = pack_params(params_f32, D_PAD, H_PAD)

    fwd = jax.jit(functools.partial(
        graphsage_forward, h_pad=H_PAD, hidden_dim=HIDDEN_DIM,
        num_nodes=N_NODES))
    out_x, out_vision, out_text = fwd(packed, x_pad, a_counts_pad, scale_pad)
    jax.block_until_ready((out_x, out_vision, out_text))

    assert out_x.shape == (N_NODES, HIDDEN_DIM)
    assert out_vision.shape == (N_NODES, HIDDEN_DIM)
    assert out_text.shape == (N_NODES, HIDDEN_DIM)

    # Loose tolerance: weights/activations travel as bf16 between kernels.
    ref_x, ref_v, ref_t = reference_forward(params_f32, x, counts, scale)
    for got, ref in ((out_x, ref_x), (out_vision, ref_v), (out_text, ref_t)):
        assert bool(jnp.all(jnp.isfinite(got)))
        assert float(jnp.max(jnp.abs(got - ref))) < 0.1

    print("KERNEL_OK")
</pallas_src>

<mosaic_0001>
module attributes {stable_mosaic.version = 11 : i64} {
  func.func @_matmul_kernel(%arg0: i32, %arg1: i32, %arg2: i32, %arg3: memref<256x128xbf16, #tpu.memory_space<vmem>>, %arg4: memref<128x128xbf16, #tpu.memory_space<vmem>>, %arg5: memref<256x128xbf16, #tpu.memory_space<vmem>>, %arg6: memref<256x128xf32, #tpu.memory_space<vmem>>) attributes {dimension_semantics = [#tpu.dimension_semantics<parallel>, #tpu.dimension_semantics<parallel>, #tpu.dimension_semantics<arbitrary>], iteration_bounds = array<i64: 2, 1, 1>, scalar_prefetch = 0 : i64, scratch_operands = 1 : i64, tpu.core_type = #tpu.core_type<tc>, window_params = [{transform_indices = @transform_0, window_bounds = array<i64: 256, 128>}, {transform_indices = @transform_1, window_bounds = array<i64: 128, 128>}, {transform_indices = @transform_2, window_bounds = array<i64: 256, 128>}]} {
    %c0_i32 = arith.constant 0 : i32
    %0 = arith.cmpi eq, %arg2, %c0_i32 : i32
    %1 = arith.extui %0 : i1 to i32
    %c0_i32_0 = arith.constant 0 : i32
    %2 = arith.cmpi ne, %1, %c0_i32_0 : i32
    scf.if %2 {
      %cst_10 = arith.constant 0.000000e+00 : f32
      %12 = vector.broadcast %cst_10 : f32 to vector<256x128xf32>
      %c0_11 = arith.constant 0 : index
      %c0_12 = arith.constant 0 : index
      %13 = vector.load %arg6[%c0_11, %c0_12] : memref<256x128xf32, #tpu.memory_space<vmem>>, vector<256x128xf32>
      tpu.vector_store %arg6[%c0_11, %c0_12], %12 {strides = array<i32>} : memref<256x128xf32, #tpu.memory_space<vmem>>, vector<256x128xf32>,
    } else {
    }
    %c0 = arith.constant 0 : index
    %c0_1 = arith.constant 0 : index
    %3 = vector.load %arg6[%c0, %c0_1] : memref<256x128xf32, #tpu.memory_space<vmem>>, vector<256x128xf32>
    %c0_2 = arith.constant 0 : index
    %c0_3 = arith.constant 0 : index
    %4 = vector.load %arg3[%c0_2, %c0_3] : memref<256x128xbf16, #tpu.memory_space<vmem>>, vector<256x128xbf16>
    %c0_4 = arith.constant 0 : index
    %c0_5 = arith.constant 0 : index
    %5 = vector.load %arg4[%c0_4, %c0_5] : memref<128x128xbf16, #tpu.memory_space<vmem>>, vector<128x128xbf16>
    %cst = arith.constant dense<0.000000e+00> : vector<256x128xf32>
    %6 = tpu.matmul %4, %5, %cst {dimension_numbers = #tpu.dot_dimension_numbers<[1], [0], [0], [1], [0, 0, 1, 1], [], []>} : vector<256x128xbf16>, vector<128x128xbf16>, vector<256x128xf32> -> vector<256x128xf32>
    %7 = arith.addf %3, %6 : vector<256x128xf32>
    %c0_6 = arith.constant 0 : index
    %c0_7 = arith.constant 0 : index
    %8 = vector.load %arg6[%c0_6, %c0_7] : memref<256x128xf32, #tpu.memory_space<vmem>>, vector<256x128xf32>
    tpu.vector_store %arg6[%c0_6, %c0_7], %7 {strides = array<i32>} : memref<256x128xf32, #tpu.memory_space<vmem>>, vector<256x128xf32>,
    %c0_i32_8 = arith.constant 0 : i32
    %9 = arith.cmpi eq, %arg2, %c0_i32_8 : i32
    %10 = arith.extui %9 : i1 to i32
    %c0_i32_9 = arith.constant 0 : i32
    %11 = arith.cmpi ne, %10, %c0_i32_9 : i32
    scf.if %11 {
      %c0_10 = arith.constant 0 : index
      %c0_11 = arith.constant 0 : index
      %12 = vector.load %arg6[%c0_10, %c0_11] : memref<256x128xf32, #tpu.memory_space<vmem>>, vector<256x128xf32>
      %13 = arith.truncf %12 : vector<256x128xf32> to vector<256x128xbf16>
      %c0_12 = arith.constant 0 : index
      %c0_13 = arith.constant 0 : index
      %14 = vector.load %arg5[%c0_12, %c0_13] : memref<256x128xbf16, #tpu.memory_space<vmem>>, vector<256x128xbf16>
      tpu.vector_store %arg5[%c0_12, %c0_13], %13 {strides = array<i32>} : memref<256x128xbf16, #tpu.memory_space<vmem>>, vector<256x128xbf16>,
    } else {
    }
    return
  }
  func.func @transform_0(%arg0: i32, %arg1: i32, %arg2: i32) -> (i32, i32) {
    %c0_i32 = arith.constant 0 : i32
    return %arg0, %arg2 : i32, i32
  }
  func.func @transform_1(%arg0: i32, %arg1: i32, %arg2: i32) -> (i32, i32) {
    %c0_i32 = arith.constant 0 : i32
    return %arg2, %arg1 : i32, i32
  }
  func.func @transform_2(%arg0: i32, %arg1: i32, %arg2: i32) -> (i32, i32) {
    %c0_i32 = arith.constant 0 : i32
    return %arg0, %arg1 : i32, i32
  }
}

module attributes {stable_mosaic.version = 11 : i64} {
  func.func @_sage_conv_kernel(%arg0: i32, %arg1: i32, %arg2: i32, %arg3: memref<256x256xi8, #tpu.memory_space<vmem>>, %arg4: memref<256x128xbf16, #tpu.memory_space<vmem>>, %arg5: memref<256x128xbf16, #tpu.memory_space<vmem>>, %arg6: memref<128x128xbf16, #tpu.memory_space<vmem>>, %arg7: memref<256x1xf32, #tpu.memory_space<vmem>>, %arg8: memref<1x128xf32, #tpu.memory_space<vmem>>, %arg9: memref<256x128xbf16, #tpu.memory_space<vmem>>, %arg10: memref<256x128xf32, #tpu.memory_space<vmem>>) attributes {dimension_semantics = [#tpu.dimension_semantics<parallel>, #tpu.dimension_semantics<parallel>, #tpu.dimension_semantics<arbitrary>], iteration_bounds = array<i64: 2, 1, 2>, scalar_prefetch = 0 : i64, scratch_operands = 1 : i64, tpu.core_type = #tpu.core_type<tc>, window_params = [{transform_indices = @transform_0, window_bounds = array<i64: 256, 256>}, {transform_indices = @transform_1, window_bounds = array<i64: 256, 128>}, {transform_indices = @transform_2, window_bounds = array<i64: 256, 128>}, {transform_indices = @transform_3, window_bounds = array<i64: 128, 128>}, {transform_indices = @transform_4, window_bounds = array<i64: 256, 1>}, {transform_indices = @transform_5, window_bounds = array<i64: 1, 128>}, {transform_indices = @transform_6, window_bounds = array<i64: 256, 128>}]} {
    %c0_i32 = arith.constant 0 : i32
    %0 = arith.cmpi eq, %arg2, %c0_i32 : i32
    %1 = arith.extui %0 : i1 to i32
    %c0_i32_0 = arith.constant 0 : i32
    %2 = arith.cmpi ne, %1, %c0_i32_0 : i32
    scf.if %2 {
      %cst_9 = arith.constant 0.000000e+00 : f32
      %14 = vector.broadcast %cst_9 : f32 to vector<256x128xf32>
      %c0_10 = arith.constant 0 : index
      %c0_11 = arith.constant 0 : index
      %15 = vector.load %arg10[%c0_10, %c0_11] : memref<256x128xf32, #tpu.memory_space<vmem>>, vector<256x128xf32>
      tpu.vector_store %arg10[%c0_10, %c0_11], %14 {strides = array<i32>} : memref<256x128xf32, #tpu.memory_space<vmem>>, vector<256x128xf32>,
    } else {
    }
    %c0 = arith.constant 0 : index
    %c0_1 = arith.constant 0 : index
    %3 = vector.load %arg3[%c0, %c0_1] : memref<256x256xi8, #tpu.memory_space<vmem>>, vector<256x256xi8>
    %4 = arith.sitofp %3 : vector<256x256xi8> to vector<256x256xf32>
    %5 = arith.truncf %4 : vector<256x256xf32> to vector<256x256xbf16>
    %c0_2 = arith.constant 0 : index
    %c0_3 = arith.constant 0 : index
    %6 = vector.load %arg10[%c0_2, %c0_3] : memref<256x128xf32, #tpu.memory_space<vmem>>, vector<256x128xf32>
    %c0_4 = arith.constant 0 : index
    %c0_5 = arith.constant 0 : index
    %7 = vector.load %arg4[%c0_4, %c0_5] : memref<256x128xbf16, #tpu.memory_space<vmem>>, vector<256x128xbf16>
    %cst = arith.constant dense<0.000000e+00> : vector<256x128xf32>
    %8 = tpu.matmul %5, %7, %cst {dimension_numbers = #tpu.dot_dimension_numbers<[1], [0], [0], [1], [0, 0, 1, 1], [], []>} : vector<256x256xbf16>, vector<256x128xbf16>, vector<256x128xf32> -> vector<256x128xf32>
    %9 = arith.addf %6, %8 : vector<256x128xf32>
    %c0_6 = arith.constant 0 : index
    %c0_7 = arith.constant 0 : index
    %10 = vector.load %arg10[%c0_6, %c0_7] : memref<256x128xf32, #tpu.memory_space<vmem>>, vector<256x128xf32>
    tpu.vector_store %arg10[%c0_6, %c0_7], %9 {strides = array<i32>} : memref<256x128xf32, #tpu.memory_space<vmem>>, vector<256x128xf32>,
    %c1_i32 = arith.constant 1 : i32
    %11 = arith.cmpi eq, %arg2, %c1_i32 : i32
    %12 = arith.extui %11 : i1 to i32
    %c0_i32_8 = arith.constant 0 : i32
    %13 = arith.cmpi ne, %12, %c0_i32_8 : i32
    scf.if %13 {
      %c0_9 = arith.constant 0 : index
      %c0_10 = arith.constant 0 : index
      %14 = vector.load %arg5[%c0_9, %c0_10] : memref<256x128xbf16, #tpu.memory_space<vmem>>, vector<256x128xbf16>
      %c0_11 = arith.constant 0 : index
      %c0_12 = arith.constant 0 : index
      %15 = vector.load %arg6[%c0_11, %c0_12] : memref<128x128xbf16, #tpu.memory_space<vmem>>, vector<128x128xbf16>
      %cst_13 = arith.constant dense<0.000000e+00> : vector<256x128xf32>
      %16 = tpu.matmul %14, %15, %cst_13 {dimension_numbers = #tpu.dot_dimension_numbers<[1], [0], [0], [1], [0, 0, 1, 1], [], []>} : vector<256x128xbf16>, vector<128x128xbf16>, vector<256x128xf32> -> vector<256x128xf32>
      %c0_14 = arith.constant 0 : index
      %c0_15 = arith.constant 0 : index
      %17 = vector.load %arg7[%c0_14, %c0_15] : memref<256x1xf32, #tpu.memory_space<vmem>>, vector<256x1xf32>
      %c0_16 = arith.constant 0 : index
      %c0_17 = arith.constant 0 : index
      %18 = vector.load %arg10[%c0_16, %c0_17] : memref<256x128xf32, #tpu.memory_space<vmem>>, vector<256x128xf32>
      %19 = vector.broadcast %17 : vector<256x1xf32> to vector<256x128xf32>
      %20 = arith.mulf %19, %18 : vector<256x128xf32>
      %21 = arith.addf %20, %16 : vector<256x128xf32>
      %c0_18 = arith.constant 0 : index
      %c0_19 = arith.constant 0 : index
      %22 = vector.load %arg8[%c0_18, %c0_19] : memref<1x128xf32, #tpu.memory_space<vmem>>, vector<1x128xf32>
      %23 = vector.broadcast %22 : vector<1x128xf32> to vector<256x128xf32>
      %24 = arith.addf %21, %23 : vector<256x128xf32>
      %25 = arith.truncf %24 : vector<256x128xf32> to vector<256x128xbf16>
      %c0_20 = arith.constant 0 : index
      %c0_21 = arith.constant 0 : index
      %26 = vector.load %arg9[%c0_20, %c0_21] : memref<256x128xbf16, #tpu.memory_space<vmem>>, vector<256x128xbf16>
      tpu.vector_store %arg9[%c0_20, %c0_21], %25 {strides = array<i32>} : memref<256x128xbf16, #tpu.memory_space<vmem>>, vector<256x128xbf16>,
    } else {
    }
    return
  }
  func.func @transform_0(%arg0: i32, %arg1: i32, %arg2: i32) -> (i32, i32) {
    %c0_i32 = arith.constant 0 : i32
    return %arg0, %arg2 : i32, i32
  }
  func.func @transform_1(%arg0: i32, %arg1: i32, %arg2: i32) -> (i32, i32) {
    %c0_i32 = arith.constant 0 : i32
    return %arg2, %arg1 : i32, i32
  }
  func.func @transform_2(%arg0: i32, %arg1: i32, %arg2: i32) -> (i32, i32) {
    %c0_i32 = arith.constant 0 : i32
    %c0_i32_0 = arith.constant 0 : i32
    return %arg0, %c0_i32 : i32, i32
  }
  func.func @transform_3(%arg0: i32, %arg1: i32, %arg2: i32) -> (i32, i32) {
    %c0_i32 = arith.constant 0 : i32
    %c0_i32_0 = arith.constant 0 : i32
    return %c0_i32, %arg1 : i32, i32
  }
  func.func @transform_4(%arg0: i32, %arg1: i32, %arg2: i32) -> (i32, i32) {
    %c0_i32 = arith.constant 0 : i32
    %c0_i32_0 = arith.constant 0 : i32
    return %arg0, %c0_i32 : i32, i32
  }
  func.func @transform_5(%arg0: i32, %arg1: i32, %arg2: i32) -> (i32, i32) {
    %c0_i32 = arith.constant 0 : i32
    %c0_i32_0 = arith.constant 0 : i32
    return %c0_i32, %arg1 : i32, i32
  }
  func.func @transform_6(%arg0: i32, %arg1: i32, %arg2: i32) -> (i32, i32) {
    %c0_i32 = arith.constant 0 : i32
    return %arg0, %arg1 : i32, i32
  }
}

module attributes {stable_mosaic.version = 11 : i64} {
  func.func @_sage_conv_kernel(%arg0: i32, %arg1: i32, %arg2: i32, %arg3: memref<256x256xi8, #tpu.memory_space<vmem>>, %arg4: memref<256x128xbf16, #tpu.memory_space<vmem>>, %arg5: memref<256x128xbf16, #tpu.memory_space<vmem>>, %arg6: memref<128x128xbf16, #tpu.memory_space<vmem>>, %arg7: memref<256x1xf32, #tpu.memory_space<vmem>>, %arg8: memref<1x128xf32, #tpu.memory_space<vmem>>, %arg9: memref<256x128xbf16, #tpu.memory_space<vmem>>, %arg10: memref<256x128xf32, #tpu.memory_space<vmem>>) attributes {dimension_semantics = [#tpu.dimension_semantics<parallel>, #tpu.dimension_semantics<parallel>, #tpu.dimension_semantics<arbitrary>], iteration_bounds = array<i64: 2, 1, 2>, scalar_prefetch = 0 : i64, scratch_operands = 1 : i64, tpu.core_type = #tpu.core_type<tc>, window_params = [{transform_indices = @transform_0, window_bounds = array<i64: 256, 256>}, {transform_indices = @transform_1, window_bounds = array<i64: 256, 128>}, {transform_indices = @transform_2, window_bounds = array<i64: 256, 128>}, {transform_indices = @transform_3, window_bounds = array<i64: 128, 128>}, {transform_indices = @transform_4, window_bounds = array<i64: 256, 1>}, {transform_indices = @transform_5, window_bounds = array<i64: 1, 128>}, {transform_indices = @transform_6, window_bounds = array<i64: 256, 128>}]} {
    %c0_i32 = arith.constant 0 : i32
    %0 = arith.cmpi eq, %arg2, %c0_i32 : i32
    %1 = arith.extui %0 : i1 to i32
    %c0_i32_0 = arith.constant 0 : i32
    %2 = arith.cmpi ne, %1, %c0_i32_0 : i32
    scf.if %2 {
      %cst_9 = arith.constant 0.000000e+00 : f32
      %14 = vector.broadcast %cst_9 : f32 to vector<256x128xf32>
      %c0_10 = arith.constant 0 : index
      %c0_11 = arith.constant 0 : index
      %15 = vector.load %arg10[%c0_10, %c0_11] : memref<256x128xf32, #tpu.memory_space<vmem>>, vector<256x128xf32>
      tpu.vector_store %arg10[%c0_10, %c0_11], %14 {strides = array<i32>} : memref<256x128xf32, #tpu.memory_space<vmem>>, vector<256x128xf32>,
    } else {
    }
    %c0 = arith.constant 0 : index
    %c0_1 = arith.constant 0 : index
    %3 = vector.load %arg3[%c0, %c0_1] : memref<256x256xi8, #tpu.memory_space<vmem>>, vector<256x256xi8>
    %4 = arith.sitofp %3 : vector<256x256xi8> to vector<256x256xf32>
    %5 = arith.truncf %4 : vector<256x256xf32> to vector<256x256xbf16>
    %c0_2 = arith.constant 0 : index
    %c0_3 = arith.constant 0 : index
    %6 = vector.load %arg10[%c0_2, %c0_3] : memref<256x128xf32, #tpu.memory_space<vmem>>, vector<256x128xf32>
    %c0_4 = arith.constant 0 : index
    %c0_5 = arith.constant 0 : index
    %7 = vector.load %arg4[%c0_4, %c0_5] : memref<256x128xbf16, #tpu.memory_space<vmem>>, vector<256x128xbf16>
    %cst = arith.constant dense<0.000000e+00> : vector<256x128xf32>
    %8 = tpu.matmul %5, %7, %cst {dimension_numbers = #tpu.dot_dimension_numbers<[1], [0], [0], [1], [0, 0, 1, 1], [], []>} : vector<256x256xbf16>, vector<256x128xbf16>, vector<256x128xf32> -> vector<256x128xf32>
    %9 = arith.addf %6, %8 : vector<256x128xf32>
    %c0_6 = arith.constant 0 : index
    %c0_7 = arith.constant 0 : index
    %10 = vector.load %arg10[%c0_6, %c0_7] : memref<256x128xf32, #tpu.memory_space<vmem>>, vector<256x128xf32>
    tpu.vector_store %arg10[%c0_6, %c0_7], %9 {strides = array<i32>} : memref<256x128xf32, #tpu.memory_space<vmem>>, vector<256x128xf32>,
    %c1_i32 = arith.constant 1 : i32
    %11 = arith.cmpi eq, %arg2, %c1_i32 : i32
    %12 = arith.extui %11 : i1 to i32
    %c0_i32_8 = arith.constant 0 : i32
    %13 = arith.cmpi ne, %12, %c0_i32_8 : i32
    scf.if %13 {
      %c0_9 = arith.constant 0 : index
      %c0_10 = arith.constant 0 : index
      %14 = vector.load %arg5[%c0_9, %c0_10] : memref<256x128xbf16, #tpu.memory_space<vmem>>, vector<256x128xbf16>
      %c0_11 = arith.constant 0 : index
      %c0_12 = arith.constant 0 : index
      %15 = vector.load %arg6[%c0_11, %c0_12] : memref<128x128xbf16, #tpu.memory_space<vmem>>, vector<128x128xbf16>
      %cst_13 = arith.constant dense<0.000000e+00> : vector<256x128xf32>
      %16 = tpu.matmul %14, %15, %cst_13 {dimension_numbers = #tpu.dot_dimension_numbers<[1], [0], [0], [1], [0, 0, 1, 1], [], []>} : vector<256x128xbf16>, vector<128x128xbf16>, vector<256x128xf32> -> vector<256x128xf32>
      %c0_14 = arith.constant 0 : index
      %c0_15 = arith.constant 0 : index
      %17 = vector.load %arg7[%c0_14, %c0_15] : memref<256x1xf32, #tpu.memory_space<vmem>>, vector<256x1xf32>
      %c0_16 = arith.constant 0 : index
      %c0_17 = arith.constant 0 : index
      %18 = vector.load %arg10[%c0_16, %c0_17] : memref<256x128xf32, #tpu.memory_space<vmem>>, vector<256x128xf32>
      %19 = vector.broadcast %17 : vector<256x1xf32> to vector<256x128xf32>
      %20 = arith.mulf %19, %18 : vector<256x128xf32>
      %21 = arith.addf %20, %16 : vector<256x128xf32>
      %c0_18 = arith.constant 0 : index
      %c0_19 = arith.constant 0 : index
      %22 = vector.load %arg8[%c0_18, %c0_19] : memref<1x128xf32, #tpu.memory_space<vmem>>, vector<1x128xf32>
      %23 = vector.broadcast %22 : vector<1x128xf32> to vector<256x128xf32>
      %24 = arith.addf %21, %23 : vector<256x128xf32>
      %cst_20 = arith.constant 0.000000e+00 : f32
      %25 = vector.broadcast %cst_20 : f32 to vector<256x128xf32>
      %26 = arith.maximumf %24, %25 : vector<256x128xf32>
      %27 = arith.truncf %26 : vector<256x128xf32> to vector<256x128xbf16>
      %c0_21 = arith.constant 0 : index
      %c0_22 = arith.constant 0 : index
      %28 = vector.load %arg9[%c0_21, %c0_22] : memref<256x128xbf16, #tpu.memory_space<vmem>>, vector<256x128xbf16>
      tpu.vector_store %arg9[%c0_21, %c0_22], %27 {strides = array<i32>} : memref<256x128xbf16, #tpu.memory_space<vmem>>, vector<256x128xbf16>,
    } else {
    }
    return
  }
  func.func @transform_0(%arg0: i32, %arg1: i32, %arg2: i32) -> (i32, i32) {
    %c0_i32 = arith.constant 0 : i32
    return %arg0, %arg2 : i32, i32
  }
  func.func @transform_1(%arg0: i32, %arg1: i32, %arg2: i32) -> (i32, i32) {
    %c0_i32 = arith.constant 0 : i32
    return %arg2, %arg1 : i32, i32
  }
  func.func @transform_2(%arg0: i32, %arg1: i32, %arg2: i32) -> (i32, i32) {
    %c0_i32 = arith.constant 0 : i32
    %c0_i32_0 = arith.constant 0 : i32
    return %arg0, %c0_i32 : i32, i32
  }
  func.func @transform_3(%arg0: i32, %arg1: i32, %arg2: i32) -> (i32, i32) {
    %c0_i32 = arith.constant 0 : i32
    %c0_i32_0 = arith.constant 0 : i32
    return %c0_i32, %arg1 : i32, i32
  }
  func.func @transform_4(%arg0: i32, %arg1: i32, %arg2: i32) -> (i32, i32) {
    %c0_i32 = arith.constant 0 : i32
    %c0_i32_0 = arith.constant 0 : i32
    return %arg0, %c0_i32 : i32, i32
  }
  func.func @transform_5(%arg0: i32, %arg1: i32, %arg2: i32) -> (i32, i32) {
    %c0_i32 = arith.constant 0 : i32
    %c0_i32_0 = arith.constant 0 : i32
    return %c0_i32, %arg1 : i32, i32
  }
  func.func @transform_6(%arg0: i32, %arg1: i32, %arg2: i32) -> (i32, i32) {
    %c0_i32 = arith.constant 0 : i32
    return %arg0, %arg1 : i32, i32
  }
}

module attributes {stable_mosaic.version = 11 : i64} {
  func.func @_matmul_bias_kernel(%arg0: i32, %arg1: i32, %arg2: i32, %arg3: memref<256x128xbf16, #tpu.memory_space<vmem>>, %arg4: memref<128x256xbf16, #tpu.memory_space<vmem>>, %arg5: memref<1x256xf32, #tpu.memory_space<vmem>>, %arg6: memref<256x256xf32, #tpu.memory_space<vmem>>, %arg7: memref<256x256xf32, #tpu.memory_space<vmem>>) attributes {dimension_semantics = [#tpu.dimension_semantics<parallel>, #tpu.dimension_semantics<parallel>, #tpu.dimension_semantics<arbitrary>], iteration_bounds = array<i64: 2, 1, 1>, scalar_prefetch = 0 : i64, scratch_operands = 1 : i64, tpu.core_type = #tpu.core_type<tc>, window_params = [{transform_indices = @transform_0, window_bounds = array<i64: 256, 128>}, {transform_indices = @transform_1, window_bounds = array<i64: 128, 256>}, {transform_indices = @transform_2, window_bounds = array<i64: 1, 256>}, {transform_indices = @transform_3, window_bounds = array<i64: 256, 256>}]} {
    %c0_i32 = arith.constant 0 : i32
    %0 = arith.cmpi eq, %arg2, %c0_i32 : i32
    %1 = arith.extui %0 : i1 to i32
    %c0_i32_0 = arith.constant 0 : i32
    %2 = arith.cmpi ne, %1, %c0_i32_0 : i32
    scf.if %2 {
      %cst_10 = arith.constant 0.000000e+00 : f32
      %12 = vector.broadcast %cst_10 : f32 to vector<256x256xf32>
      %c0_11 = arith.constant 0 : index
      %c0_12 = arith.constant 0 : index
      %13 = vector.load %arg7[%c0_11, %c0_12] : memref<256x256xf32, #tpu.memory_space<vmem>>, vector<256x256xf32>
      tpu.vector_store %arg7[%c0_11, %c0_12], %12 {strides = array<i32>} : memref<256x256xf32, #tpu.memory_space<vmem>>, vector<256x256xf32>,
    } else {
    }
    %c0 = arith.constant 0 : index
    %c0_1 = arith.constant 0 : index
    %3 = vector.load %arg7[%c0, %c0_1] : memref<256x256xf32, #tpu.memory_space<vmem>>, vector<256x256xf32>
    %c0_2 = arith.constant 0 : index
    %c0_3 = arith.constant 0 : index
    %4 = vector.load %arg3[%c0_2, %c0_3] : memref<256x128xbf16, #tpu.memory_space<vmem>>, vector<256x128xbf16>
    %c0_4 = arith.constant 0 : index
    %c0_5 = arith.constant 0 : index
    %5 = vector.load %arg4[%c0_4, %c0_5] : memref<128x256xbf16, #tpu.memory_space<vmem>>, vector<128x256xbf16>
    %cst = arith.constant dense<0.000000e+00> : vector<256x256xf32>
    %6 = tpu.matmul %4, %5, %cst {dimension_numbers = #tpu.dot_dimension_numbers<[1], [0], [0], [1], [0, 0, 1, 1], [], []>} : vector<256x128xbf16>, vector<128x256xbf16>, vector<256x256xf32> -> vector<256x256xf32>
    %7 = arith.addf %3, %6 : vector<256x256xf32>
    %c0_6 = arith.constant 0 : index
    %c0_7 = arith.constant 0 : index
    %8 = vector.load %arg7[%c0_6, %c0_7] : memref<256x256xf32, #tpu.memory_space<vmem>>, vector<256x256xf32>
    tpu.vector_store %arg7[%c0_6, %c0_7], %7 {strides = array<i32>} : memref<256x256xf32, #tpu.memory_space<vmem>>, vector<256x256xf32>,
    %c0_i32_8 = arith.constant 0 : i32
    %9 = arith.cmpi eq, %arg2, %c0_i32_8 : i32
    %10 = arith.extui %9 : i1 to i32
    %c0_i32_9 = arith.constant 0 : i32
    %11 = arith.cmpi ne, %10, %c0_i32_9 : i32
    scf.if %11 {
      %c0_10 = arith.constant 0 : index
      %c0_11 = arith.constant 0 : index
      %12 = vector.load %arg7[%c0_10, %c0_11] : memref<256x256xf32, #tpu.memory_space<vmem>>, vector<256x256xf32>
      %c0_12 = arith.constant 0 : index
      %c0_13 = arith.constant 0 : index
      %13 = vector.load %arg5[%c0_12, %c0_13] : memref<1x256xf32, #tpu.memory_space<vmem>>, vector<1x256xf32>
      %14 = vector.broadcast %13 : vector<1x256xf32> to vector<256x256xf32>
      %15 = arith.addf %12, %14 : vector<256x256xf32>
      %cst_14 = arith.constant 0.000000e+00 : f32
      %16 = vector.broadcast %cst_14 : f32 to vector<256x256xf32>
      %17 = arith.maximumf %15, %16 : vector<256x256xf32>
      %c0_15 = arith.constant 0 : index
      %c0_16 = arith.constant 0 : index
      %18 = vector.load %arg6[%c0_15, %c0_16] : memref<256x256xf32, #tpu.memory_space<vmem>>, vector<256x256xf32>
      tpu.vector_store %arg6[%c0_15, %c0_16], %17 {strides = array<i32>} : memref<256x256xf32, #tpu.memory_space<vmem>>, vector<256x256xf32>,
    } else {
    }
    return
  }
  func.func @transform_0(%arg0: i32, %arg1: i32, %arg2: i32) -> (i32, i32) {
    %c0_i32 = arith.constant 0 : i32
    return %arg0, %arg2 : i32, i32
  }
  func.func @transform_1(%arg0: i32, %arg1: i32, %arg2: i32) -> (i32, i32) {
    %c0_i32 = arith.constant 0 : i32
    return %arg2, %arg1 : i32, i32
  }
  func.func @transform_2(%arg0: i32, %arg1: i32, %arg2: i32) -> (i32, i32) {
    %c0_i32 = arith.constant 0 : i32
    %c0_i32_0 = arith.constant 0 : i32
    return %c0_i32, %arg1 : i32, i32
  }
  func.func @transform_3(%arg0: i32, %arg1: i32, %arg2: i32) -> (i32, i32) {
    %c0_i32 = arith.constant 0 : i32
    return %arg0, %arg1 : i32, i32
  }
}

</mosaic_0001>

<bundles_post_ra>
// kernel: graphsage_forward.5
= control target key start
LH: loop header
LB: loop body
LE: loop exit
PB: predicated region body
PF: predicated region fallthrough
CT: control target
= control target key end

     0   :  { %7 = vsyncpa [#allocation4], 0  ;;  %s1838_s0 = inlined_call_operand.hbm [shape: bf16[512,128], index: 0, kind: input, shape index: {}]   ;;  %s1839_s1 = inlined_call_operand.hbm [shape: bf16[128,128], index: 1, kind: input, shape index: {}]   ;;  %s1840_s2 = inlined_call_operand.hbm [shape: bf16[512,128], index: 2, kind: output, shape index: {}]  }
   0x1   :  { %9 = vsyncpa [#allocation4 + $0x1], 0 }
   0x2   :  { %10 = vsyncpa [#allocation7], 0 }
   0x3   :  { %11 = vsyncpa [#allocation5], 0 }
   0x4   :  { %13 = vsyncpa [#allocation5 + $0x1], 0  ;;  %s1572_s9 = smov 0   ;;  %s1574_s10 = smov 0  }
   0x5   :  { %s1576_s11 = smov 0   ;;  %s1578_s12 = smov 0  }
   0x6   :  { %s1580_s13 = smov 0   ;;  %s1582_s14 = smov 0  }
   0x7 LB: > { %s1013_s15 = sadd.s32 4294967295, %s1548_s14   ;;  %s1014_s16 = sadd.s32 4294967294, %s1548_s14   ;;  %s1548_s14 = sphi %s1582_s14, %s19_s14   ;;  %s1544_s13 = sphi %s1580_s13, %s1864_s13   ;;  %s1540_s12 = sphi %s1578_s12, %s1863_s12   ;;  %s1536_s11 = sphi %s1576_s11, %s1862_s11   ;;  %s1532_s10 = sphi %s1574_s10, %s1861_s10   ;;  %s1528_s9 = sphi %s1572_s9, %s1860_s9  }
   0x8   : > { %p60_p0 = scmp.ne.s32.totalorder %s1532_s10, %s1528_s9  ;;  %p1606_p1 = scmp.eq.s32.totalorder %s1013_s15, 0 }
   0x9   : > { %p1610_p2 = scmp.eq.s32.totalorder %s1013_s15, 1  ;;  %p120_p3 = scmp.eq.s32.totalorder %s1014_s16, 1 }
   0xa   : > { %s1845_s17 = scalar_select %p1606_p1, 1, 0 }
   0xb   : > { %s1846_s18 = scalar_select %p1610_p2, 1, 0 }
   0xc   : > { %p1616_p4 = por %p1606_p1, %p60_p0  ;;  %p1015_p5 = scmp.ge.s32.totalorder %s1548_s14, 1 }
   0xd   : > { %p1621_p6 = por %p120_p3, %p60_p0  ;;  %p127_p7 = scmp.lt.s32.totalorder %s1548_s14, 3 }
   0xe   : > { %s1847_s19 = scalar_select %p1616_p4, 1, 0 }
   0xf   : > { %s1848_s20 = scalar_select %p1621_p6, 1, 0 }
  0x10   : > { %p1626_p8 = pnand %p1015_p5, %p127_p7  ;;  %s1550_s22 = smov [#allocation6]  }
  0x11   : > { %s143_s23 = sshll.u32 %s1550_s22, 4  ;;  %s38_s25 = sadd.s32 1, %s1544_s13  ;;  %s144_s23 = int_to_ptr.vmem [resolvable:$true] %s143_s23 }
  0x12   : > { %s1849_s21 = scalar_select %p1626_p8, 1, 0 }
  0x13   : > { %p1311_p9 = pneg %p1626_p8  ;;  %s1404_s28 = scalar_lea.hbm %s1839_s1, 1024 }
  0x14   : > { %p1405_p12 = scmp.ne.s32.totalorder %s1839_s1, %s1404_s28  ;;  %p1411_p5 = scmp.lt.u32.totalorder %s1404_s28, %s1839_s1 }
  0x15   : > { %p1635_p11 = pnand %p1311_p9, %p1606_p1 }
  0x17   : > { %p1406_p13 = pneg %p1635_p11 }
  0x19   : > { %p1407_p0 = pnand %p1406_p13, %p1405_p12 }
  0x1b   : > { %p1408_p3 = pneg %p1407_p0 }
  0x1d   : > { %p1413_p7 = pnand %p1411_p5, %p1408_p3 }
  0x1f   : > { %1416 = shalt.err (!%p1413_p7)
}
  0x20   : > { %s1417_s5 = scalar_lea.vmem %s144_s23, 1024  ;;  %p1425_p1 = scmp.lt.s32.totalorder %s144_s23, %s144_s23 }
  0x21   : > { %p1418_p9 = scmp.ne.s32.totalorder %s144_s23, %s1417_s5  ;;  %p1426_p4 = scmp.lt.s32.totalorder %s1417_s5, %s1417_s5 }
  0x23   : > { %p1420_p10 = pnand %p1418_p9, %p1406_p13  ;;  %p1427_p8 = por %p1426_p4, %p1425_p1 }
  0x25   : > { %p1421_p6 = pneg %p1420_p10 }
  0x27   : > { %p1428_p2 = pnand %p1427_p8, %p1421_p6 }
  0x29   : > { %1431 = shalt.err (!%p1428_p2)
}
  0x2a   : > { %s1551_s6 = smov 64   ;;  %s1552_s7 = smov 4  }
  0x2b   : > { %1314 = dma.hbm_to_vmem [thread:$0]  (!%p1635_p11), %s1839_s1, 1024, %s144_s23, [#allocation7], %s1551_s6, %s1551_s6, %s1552_s7  }
  0x2c   : > { %p40_p1 = scmp.ge.s32.totalorder %s38_s25, 2  ;;  %s47_s16 = sadd.s32 1, %s1536_s11 }
  0x2d   : > { %p54_p2 = scmp.ne.s32.totalorder %s1536_s11, %s1532_s10  ;;  %p55_p4 = scmp.eq.s32.totalorder %s1548_s14, 0 }
  0x2e   : > { %s1866_s25 = smov (%p40_p1, %s38_s25), 0  ;;  %p1852_p8 = scmp.ne.s32.totalorder %s1846_s18, 0 }
  0x2f   : > { %p1665_p6 = por %p55_p4, %p54_p2  ;;  %s42_s26 = ssub.s32 %s1544_s13, %s1866_s25 }
  0x30   : > { %p1671_p10 = por %p1852_p8, %p54_p2  ;;  %p1324_p12 = scmp.lt.s32.totalorder %s1548_s14, 2 }
  0x31   : > { %p45_p11 = scmp.eq.s32.totalorder %s42_s26, 0  ;;  %s157_s23 = sand.u32 1, %s1536_s11  }
  0x32   : > { %s1018_s27 = sshll.u32 %s157_s23, 7  ;;  %s1086_s29 = sshll.u32 %s1544_s13, 11 }
  0x33   : > { %s1680_s28 = scalar_select %p45_p11, %s1536_s11, %s47_s16  }
  0x34   : > { %s1686_s4 = scalar_lea.hbm %s1838_s0, %s1086_s29  ;;  %s161_s18 = scalar_lea.vmem [#allocation3], %s1018_s27 }
  0x35   : > { %s169_s5 = sshll.u32 %s161_s18, 4  ;;  %p1692_p13 = pnand %p1324_p12, %p1665_p6  ;;  %s1688_s5 = int_to_ptr.vmem [resolvable:$true] %s169_s5 }
  0x36   : > { %s1696_s15 = scalar_lea.sflag [#allocation4], %s157_s23  ;;  %s1432_s16 = scalar_lea.hbm %s1686_s4, 2048 }
  0x37   : > { %p1433_p0 = scmp.ne.s32.totalorder %s1686_s4, %s1432_s16  ;;  %p1434_p3 = pneg %p1692_p13 }
  0x38   : > { %s1437_s22 = scalar_lea.hbm %s1838_s0, 4096  ;;  %p1438_p9 = scmp.lt.u32.totalorder %s1686_s4, %s1838_s0 }
  0x39   : > { %p1435_p5 = pnand %p1434_p3, %p1433_p0  ;;  %p1439_p1 = scmp.lt.u32.totalorder %s1437_s22, %s1432_s16 }
  0x3a   : > { %p1441_p4 = scmp.lt.u32.totalorder %s1432_s16, %s1686_s4 }
  0x3b   : > { %p1436_p7 = pneg %p1435_p5  ;;  %p1440_p2 = por %p1439_p1, %p1438_p9 }
  0x3d   : > { %p1442_p6 = por %p1441_p4, %p1440_p2 }
  0x3f   : > { %p1443_p8 = pnand %p1442_p6, %p1436_p7 }
  0x41   : > { %1446 = shalt.err (!%p1443_p8)
}
  0x42   : > { %s1447_s23 = scalar_lea.vmem %s1688_s5, 2048  ;;  %s1553_s3 = smov [#allocation3]  }
  0x43   : > { %p1448_p12 = scmp.ne.s32.totalorder %s1688_s5, %s1447_s23  ;;  %s1452_s18 = sshll.u32 %s1553_s3, 4  ;;  %s1453_s18 = int_to_ptr.vmem [resolvable:$false] %s1452_s18 }
  0x44   : > { %s1454_s26 = scalar_lea.vmem %s1453_s18, 4096  ;;  %p1455_p5 = scmp.lt.s32.totalorder %s1688_s5, %s1453_s18 }
  0x45   : > { %p1450_p11 = pnand %p1448_p12, %p1434_p3  ;;  %p1456_p9 = scmp.lt.s32.totalorder %s1454_s26, %s1447_s23 }
  0x47   : > { %p1451_p0 = pneg %p1450_p11  ;;  %p1457_p1 = por %p1456_p9, %p1455_p5 }
  0x49   : > { %p1458_p2 = pnand %p1457_p1, %p1451_p0 }
  0x4b   : > { %1461 = shalt.err (!%p1458_p2)
}
  0x4c   : > { %1318 = dma.hbm_to_vmem [thread:$0]  (!%p1692_p13), %s1686_s4, 2048, %s1688_s5, %s1696_s15, %s1551_s6, %s1551_s6, %s1552_s7  }
  0x4d   : > { %p1855_p3 = scmp.ne.s32.totalorder %s1849_s21, 0 }
  0x4e   : > { %s1730_s16 = sand.u32 (!%p1855_p3), 1, %s1532_s10   ;;  %p1856_p7 = scmp.ne.s32.totalorder (!%p1855_p3), %s1847_s19, 0 }
  0x4f   : > { %181 = sbr.rel (%p1855_p3) target bundleno = 379 (0x17b), region = 28  ;;  %s1022_s27 = sshll.u32 (!%p1855_p3), %s1730_s16, 7 }
  0x50   : > { %s184_s22 = scalar_lea.sflag (!%p1855_p3), [#allocation4], %s1730_s16  ;;  %s1736_s8 = scalar_lea.vmem (!%p1855_p3), [#allocation3], %s1022_s27 }
  0x56   : > { %1515 = dma.done.wait (%p1856_p7), %s184_s22, 2048  }
  0x57   : > { %1517 = vsyncadd (%p1856_p7), %s184_s22, 4294965248  ;;  %p1857_p13 = scmp.ne.s32.totalorder %s1845_s17, 0 }
  0x59   : > { %1519 = dma.done.wait (%p1857_p13), [#allocation7], 1024  }
  0x5a   : > { %1521 = vsyncadd (%p1857_p13), [#allocation7], 4294966272  ;;  %v1380_v0 = vld [vmem:[#allocation6] sm:$0xff]   ;;  %v1381_v1 = vld [vmem:[#allocation6 + $0x8] sm:$0xff]   ;;  %s1764_s17 = scalar_lea.vmem [#allocation8], %s1022_s27  ;;  %s1119_s19 = sshll.u32 %s1540_s12, 11 }
  0x5b   : > { %1239 = vmatprep.subr.bf16.mxu0 %v1380_v0  ;;  %1287 = vmatprep.subr.bf16.mxu1 %v1380_v0  ;;  %v1382_v2 = vld [vmem:[#allocation6 + $0x10] sm:$0xff]   ;;  %v1383_v3 = vld [vmem:[#allocation6 + $0x18] sm:$0xff]   ;;  %v1388_v4 = vld [vmem:[%s1736_s8] sm:$0xff]   ;;  %s911_s21 = sshll.u32 %s1764_s17, 4  ;;  %s1783_s4 = scalar_lea.hbm %s1840_s2, %s1119_s19  ;;  %s1785_s21 = int_to_ptr.vmem [resolvable:$true] %s911_s21 }
  0x5c   : > { %1240 = vmatpush3.bf16.msra.mxu0 %v1380_v0  ;;  %1295 = vmatpush3.bf16.msra.mxu1 %v1380_v0  ;;  %v1389_v5 = vld [vmem:[%s1736_s8 + $0x40] sm:$0xff]   ;;  %v1385_v7 = vld [vmem:[#allocation6 + $0x28] sm:$0xff]   ;;  %v1386_v8 = vld [vmem:[#allocation6 + $0x30] sm:$0xff]   ;;  %s897_s12 = scalar_lea.sflag [#allocation5], %s1730_s16  ;;  %s1462_s5 = scalar_lea.vmem %s1785_s21, 2048 }
  0x5d   : > { %1241 = vmatprep.subr.bf16.mxu0 %v1381_v1  ;;  %1288 = vmatprep.subr.bf16.mxu1 %v1381_v1  ;;  %v1384_v6 = vld [vmem:[#allocation6 + $0x20] sm:$0xff]   ;;  %v1387_v9 = vld [vmem:[#allocation6 + $0x38] sm:$0xff]   ;;  %v1390_v10 = vld [vmem:[%s1736_s8 + $0x8] sm:$0xff]   ;;  %p1463_p4 = scmp.ne.s32.totalorder %s1785_s21, %s1462_s5  ;;  %s1554_s15 = smov [#allocation8]  }
  0x5e   : > { %1255 = vmatprep.mubr.bf16.mxu0 %v1388_v4  ;;  %1271 = vmatprep.mubr.bf16.mxu1 %v1389_v5  ;;  %v1391_v11 = vld [vmem:[%s1736_s8 + $0x48] sm:$0xff]   ;;  %v1392_v12 = vld [vmem:[%s1736_s8 + $0x10] sm:$0xff]   ;;  %v1394_v14 = vld [vmem:[%s1736_s8 + $0x18] sm:$0xff]   ;;  %s1466_s29 = sshll.u32 %s1554_s15, 4  ;;  %s1467_s29 = int_to_ptr.vmem [resolvable:$false] %s1466_s29 }
  0x5f   : > { %v1393_v13 = vld [vmem:[%s1736_s8 + $0x50] sm:$0xff]   ;;  %v1395_v15 = vld [vmem:[%s1736_s8 + $0x58] sm:$0xff]   ;;  %v1396_v16 = vld [vmem:[%s1736_s8 + $0x20] sm:$0xff]   ;;  %p1464_p6 = pnand %p1463_p4, %p1671_p10  ;;  %s1468_s30 = scalar_lea.vmem %s1467_s29, 4096 }
  0x60   : > { %1242 = vmatpush3.bf16.msra.mxu0 %v1381_v1  ;;  %1296 = vmatpush3.bf16.msra.mxu1 %v1381_v1  ;;  %v1397_v17 = vld [vmem:[%s1736_s8 + $0x60] sm:$0xff]   ;;  %v1398_v18 = vld [vmem:[%s1736_s8 + $0x28] sm:$0xff]   ;;  %v1400_v20 = vld [vmem:[%s1736_s8 + $0x30] sm:$0xff]   ;;  %p1469_p12 = scmp.lt.s32.totalorder %s1785_s21, %s1467_s29  ;;  %p1470_p11 = scmp.lt.s32.totalorder %s1468_s30, %s1462_s5 }
  0x61   : > { %1243 = vmatprep.subr.bf16.mxu0 %v1382_v2  ;;  %1289 = vmatprep.subr.bf16.mxu1 %v1382_v2  ;;  %v1399_v19 = vld [vmem:[%s1736_s8 + $0x68] sm:$0xff]   ;;  %v1401_v21 = vld [vmem:[%s1736_s8 + $0x70] sm:$0xff]   ;;  %v1402_v22 = vld [vmem:[%s1736_s8 + $0x38] sm:$0xff]   ;;  %p1465_p8 = pneg %p1464_p6 }
  0x62   : > { %v1403_v23 = vld [vmem:[%s1736_s8 + $0x78] sm:$0xff]   ;;  %p1471_p0 = por %p1470_p11, %p1469_p12 }
  0x64   : > { %1244 = vmatpush3.bf16.msra.mxu0 %v1382_v2  ;;  %1297 = vmatpush3.bf16.msra.mxu1 %v1382_v2  ;;  %p1472_p5 = pnand %p1471_p0, %p1465_p8 }
  0x65   : > { %1245 = vmatprep.subr.bf16.mxu0 %v1383_v3  ;;  %1290 = vmatprep.subr.bf16.mxu1 %v1383_v3 }
  0x68   : > { %1246 = vmatpush3.bf16.msra.mxu0 %v1383_v3  ;;  %1298 = vmatpush3.bf16.msra.mxu1 %v1383_v3 }
  0x69   : > { %1247 = vmatprep.subr.bf16.mxu0 %v1384_v6  ;;  %1291 = vmatprep.subr.bf16.mxu1 %v1384_v6 }
  0x6c   : > { %1248 = vmatpush3.bf16.msra.mxu0 %v1384_v6  ;;  %1299 = vmatpush3.bf16.msra.mxu1 %v1384_v6 }
  0x6d   : > { %1249 = vmatprep.subr.bf16.mxu0 %v1385_v7  ;;  %1292 = vmatprep.subr.bf16.mxu1 %v1385_v7 }
  0x70   : > { %1250 = vmatpush3.bf16.msra.mxu0 %v1385_v7  ;;  %1300 = vmatpush3.bf16.msra.mxu1 %v1385_v7 }
  0x71   : > { %1251 = vmatprep.subr.bf16.mxu0 %v1386_v8  ;;  %1293 = vmatprep.subr.bf16.mxu1 %v1386_v8 }
  0x74   : > { %1252 = vmatpush3.bf16.msra.mxu0 %v1386_v8  ;;  %1301 = vmatpush3.bf16.msra.mxu1 %v1386_v8 }
  0x75   : > { %1253 = vmatprep.subr.bf16.mxu0 %v1387_v9  ;;  %1294 = vmatprep.subr.bf16.mxu1 %v1387_v9 }
  0x78   : > { %1254 = vmatpush3.bf16.msra.mxu0 %v1387_v9  ;;  %1302 = vmatpush3.bf16.msra.mxu1 %v1387_v9 }
  0x7b   : > { %1256 = vmatmul.mubr.bf16.vlgmr.msra.gmra.mrb[0].mxu0 %v1390_v10  ;;  %1272 = vmatmul.mubr.bf16.vlgmr.msra.gmra.mrb[0].mxu1 %v1391_v11 }
  0x7c   : > { %1259 = vmatprep.mubr.bf16.mxu0 %v1392_v12  ;;  %1275 = vmatprep.mubr.bf16.mxu1 %v1393_v13 }
  0x83   : > { %1260 = vmatmul.mubr.bf16.gmra.mrb[4].mxu0 %v1394_v14  ;;  %1276 = vmatmul.mubr.bf16.gmra.mrb[4].mxu1 %v1395_v15 }
  0x84   : > { %1263 = vmatprep.mubr.bf16.mxu0 %v1396_v16  ;;  %1279 = vmatprep.mubr.bf16.mxu1 %v1397_v17 }
  0x8b   : > { %1264 = vmatmul.mubr.bf16.gmra.mrb[8].mxu0 %v1398_v18  ;;  %1280 = vmatmul.mubr.bf16.gmra.mrb[8].mxu1 %v1399_v19 }
  0x8c   : > { %1267 = vmatprep.mubr.bf16.mxu0 %v1400_v20  ;;  %1283 = vmatprep.mubr.bf16.mxu1 %v1401_v21 }
  0x93   : > { %1268 = vmatmul.mubr.bf16.gmra.mrb[12].mxu0 %v1402_v22  ;;  %1284 = vmatmul.mubr.bf16.gmra.mrb[12].mxu1 %v1403_v23 }
 0x14e   : > { %v1257_v24 = vpop.f32.mrb[0].mxu0  ;;  %v1273_v25 = vpop.f32.mrb[0].mxu1 }
 0x14f   : > { %v510_v26 = vpop.f32.mrb[1].mxu0  ;;  %v574_v27 = vpop.f32.mrb[1].mxu1 }
 0x150   : > { %v1258_v28 = vpop.f32.mrb[2].mxu0  ;;  %v1274_v29 = vpop.f32.mrb[2].mxu1 }
 0x151   : > { %v1128_v30 = vpack.c.bf16 %v1258_v28, %v1257_v24  ;;  %v1168_v31 = vpack.c.bf16 %v1274_v29, %v1273_v25  ;;  %v513_v32 = vpop.f32.mrb[3].mxu0  ;;  %v577_v33 = vpop.f32.mrb[3].mxu1 }
 0x152   : > { %v1123_v34 = vpack.c.bf16 %v513_v32, %v510_v26  ;;  %v1163_v35 = vpack.c.bf16 %v577_v33, %v574_v27 }
 0x153   : > { %1200 = vst [vmem:[%s1764_s17 + $0x8] sm:$0xff] %v1128_v30   ;;  %1208 = vst [vmem:[%s1764_s17 + $0x48] sm:$0xff] %v1168_v31  }
 0x154   : > { %1124 = vst [vmem:[%s1764_s17] sm:$0xff] %v1123_v34   ;;  %1207 = vst [vmem:[%s1764_s17 + $0x40] sm:$0xff] %v1163_v35  }
 0x156   : > { %v1261_v36 = vpop.f32.mrb[4].mxu0  ;;  %v1277_v37 = vpop.f32.mrb[4].mxu1 }
 0x157   : > { %v526_v38 = vpop.f32.mrb[5].mxu0  ;;  %v590_v39 = vpop.f32.mrb[5].mxu1 }
 0x158   : > { %v1262_v40 = vpop.f32.mrb[6].mxu0  ;;  %v1278_v41 = vpop.f32.mrb[6].mxu1 }
 0x159   : > { %v1138_v42 = vpack.c.bf16 %v1262_v40, %v1261_v36  ;;  %v1178_v43 = vpack.c.bf16 %v1278_v41, %v1277_v37  ;;  %v529_v44 = vpop.f32.mrb[7].mxu0  ;;  %v593_v45 = vpop.f32.mrb[7].mxu1 }
 0x15a   : > { %v1133_v46 = vpack.c.bf16 %v529_v44, %v526_v38  ;;  %v1173_v47 = vpack.c.bf16 %v593_v45, %v590_v39 }
 0x15b   : > { %1202 = vst [vmem:[%s1764_s17 + $0x18] sm:$0xff] %v1138_v42   ;;  %1210 = vst [vmem:[%s1764_s17 + $0x58] sm:$0xff] %v1178_v43  }
 0x15c   : > { %1201 = vst [vmem:[%s1764_s17 + $0x10] sm:$0xff] %v1133_v46   ;;  %1209 = vst [vmem:[%s1764_s17 + $0x50] sm:$0xff] %v1173_v47  }
 0x15e   : > { %v1265_v48 = vpop.f32.mrb[8].mxu0  ;;  %v1281_v49 = vpop.f32.mrb[8].mxu1 }
 0x15f   : > { %v542_v50 = vpop.f32.mrb[9].mxu0  ;;  %v606_v51 = vpop.f32.mrb[9].mxu1 }
 0x160   : > { %v1266_v52 = vpop.f32.mrb[10].mxu0  ;;  %v1282_v53 = vpop.f32.mrb[10].mxu1 }
 0x161   : > { %v1148_v54 = vpack.c.bf16 %v1266_v52, %v1265_v48  ;;  %v1188_v55 = vpack.c.bf16 %v1282_v53, %v1281_v49  ;;  %v545_v56 = vpop.f32.mrb[11].mxu0  ;;  %v609_v57 = vpop.f32.mrb[11].mxu1 }
 0x162   : > { %v1143_v58 = vpack.c.bf16 %v545_v56, %v542_v50  ;;  %v1183_v59 = vpack.c.bf16 %v609_v57, %v606_v51 }
 0x163   : > { %1204 = vst [vmem:[%s1764_s17 + $0x28] sm:$0xff] %v1148_v54   ;;  %1212 = vst [vmem:[%s1764_s17 + $0x68] sm:$0xff] %v1188_v55  }
 0x164   : > { %1203 = vst [vmem:[%s1764_s17 + $0x20] sm:$0xff] %v1143_v58   ;;  %1211 = vst [vmem:[%s1764_s17 + $0x60] sm:$0xff] %v1183_v59  }
 0x166   : > { %v1269_v60 = vpop.f32.mrb[12].mxu0  ;;  %v1285_v61 = vpop.f32.mrb[12].mxu1 }
 0x167   : > { %v558_v62 = vpop.f32.mrb[13].mxu0  ;;  %v622_v63 = vpop.f32.mrb[13].mxu1 }
 0x168   : > { %v1270_v0 = vpop.f32.mrb[14].mxu0  ;;  %v1286_v1 = vpop.f32.mrb[14].mxu1 }
 0x169   : > { %v1158_v2 = vpack.c.bf16 %v1270_v0, %v1269_v60  ;;  %v1198_v3 = vpack.c.bf16 %v1286_v1, %v1285_v61  ;;  %v561_v4 = vpop.f32.mrb[15].mxu0  ;;  %v625_v5 = vpop.f32.mrb[15].mxu1 }
 0x16a   : > { %v1153_v6 = vpack.c.bf16 %v561_v4, %v558_v62  ;;  %v1193_v7 = vpack.c.bf16 %v625_v5, %v622_v63 }
 0x16b   : > { %1206 = vst [vmem:[%s1764_s17 + $0x38] sm:$0xff] %v1158_v2   ;;  %1214 = vst [vmem:[%s1764_s17 + $0x78] sm:$0xff] %v1198_v3  }
 0x16c   : > { %1205 = vst [vmem:[%s1764_s17 + $0x30] sm:$0xff] %v1153_v6   ;;  %1213 = vst [vmem:[%s1764_s17 + $0x70] sm:$0xff] %v1193_v7  }
 0x16d   : > { %1475 = shalt.err (!%p1472_p5)
}
 0x16e   : > { %s1476_s23 = scalar_lea.hbm %s1783_s4, 2048  ;;  %s1480_s26 = scalar_lea.hbm %s1840_s2, 4096 }
 0x16f   : > { %p1477_p9 = scmp.ne.s32.totalorder %s1783_s4, %s1476_s23  ;;  %p1481_p3 = scmp.lt.u32.totalorder %s1783_s4, %s1840_s2 }
 0x170   : > { %p1482_p7 = scmp.lt.u32.totalorder %s1480_s26, %s1476_s23  ;;  %p1484_p4 = scmp.lt.u32.totalorder %s1476_s23, %s1783_s4 }
 0x171   : > { %p1478_p1 = pnand %p1477_p9, %p1671_p10 }
 0x172   : > { %p1483_p13 = por %p1482_p7, %p1481_p3 }
 0x173   : > { %p1479_p2 = pneg %p1478_p1 }
 0x174   : > { %p1485_p6 = por %p1484_p4, %p1483_p13 }
 0x176   : > { %p1486_p8 = pnand %p1485_p6, %p1479_p2 }
 0x178   : > { %1489 = shalt.err (!%p1486_p8)
}
 0x179   : > { %s1555_s8 = smov 64   ;;  %s1556_s17 = smov 4  }
 0x17a   : > { %1309 = dma.vmem_to_hbm [thread:$0]  (%p1671_p10), %s1785_s21, 2048, %s1783_s4, %s897_s12, %s1555_s8, %s1555_s8, %s1556_s17  }
 0x17b PF: > { %s926_s19 = sand.u32 1, %s1528_s9   ;;  %p1858_p12 = scmp.ne.s32.totalorder %s1848_s20, 0 }
 0x17c   : > { %p1859_p11 = scmp.ge.s32.totalorder %s1548_s14, 2  ;;  %s927_s6 = scalar_lea.sflag [#allocation5], %s926_s19 }
 0x17e   : > { %p1320_p0 = pnand %p1859_p11, %p1858_p12 }
 0x180   : > { %1523 = dma.done.wait (!%p1320_p0), %s927_s6, 2048  }
 0x181   : > { %1525 = vsyncadd (!%p1320_p0), %s927_s6, 4294965248  ;;  %s19_s14 = sadd.s32 1, %s1548_s14   ;;  %s1860_s9 = smov %s1532_s10 }
 0x182   : > { %p16_p5 = scmp.ge.s32.totalorder %s19_s14, 4   ;;  %s1861_s10 = smov %s1536_s11 }
 0x183   : > { %s1862_s11 = smov %s1680_s28  ;;  %s1863_s12 = smov %s1544_s13 }
 0x184   : > { %s1864_s13 = smov %s1866_s25  ;;  %18 = sbr.rel (!%p16_p5) target bundleno = 7 (0x7), region = 86 }
 0x18b   :  { %932 = vsyncpa [#allocation4], 1 }
 0x18c   :  { %934 = vsyncpa [#allocation4 + $0x1], 1 }
 0x18d   :  { %935 = vsyncpa [#allocation7], 1 }
 0x18e   :  { %936 = vsyncpa [#allocation5], 1 }
 0x18f   :  { %938 = vsyncpa [#allocation5 + $0x1], 1 }

// kernel: graphsage_forward.8
= control target key start
LH: loop header
LB: loop body
LE: loop exit
PB: predicated region body
PF: predicated region fallthrough
CT: control target
= control target key end

     0   :  { %s3744_s0 = inlined_call_operand.hbm [shape: s8[512,512], index: 0, kind: input, shape index: {}]   ;;  %s3745_s1 = inlined_call_operand.hbm [shape: bf16[512,128], index: 1, kind: input, shape index: {}]   ;;  %s3746_s2 = inlined_call_operand.hbm [shape: bf16[512,128], index: 2, kind: input, shape index: {}]   ;;  %s3747_s3 = inlined_call_operand.hbm [shape: bf16[128,128], index: 3, kind: input, shape index: {}]   ;;  %s3748_s4 = inlined_call_operand.hbm [shape: f32[512,1], index: 4, kind: input, shape index: {}]   ;;  %s3749_s5 = inlined_call_operand.hbm [shape: f32[1,128], index: 5, kind: input, shape index: {}]   ;;  %s3750_s6 = inlined_call_operand.hbm [shape: bf16[512,128], index: 6, kind: output, shape index: {}]  }
   0x1   :  { %3773 = sst [smem:[#allocation32_spill]] %s3744_s0 }
   0x2   :  { %3774 = sst [smem:[#allocation33_spill]] %s3745_s1 }
   0x3   :  { %3775 = sst [smem:[#allocation34_spill]] %s3748_s4 }
   0x4   :  { %3776 = sst [smem:[#allocation35_spill]] %s3749_s5 }
   0x5   :  { %3777 = sst [smem:[#allocation36_spill]] %s3750_s6 }
   0x6   :  { %11 = vsyncpa [#allocation4], 0 }
   0x7   :  { %13 = vsyncpa [#allocation4 + $0x1], 0 }
   0x8   :  { %14 = vsyncpa [#allocation7], 0 }
   0x9   :  { %16 = vsyncpa [#allocation7 + $0x1], 0 }
   0xa   :  { %17 = vsyncpa [#allocation10], 0 }
   0xb   :  { %18 = vsyncpa [#allocation5], 0 }
   0xc   :  { %20 = vsyncpa [#allocation5 + $0x1], 0  ;;  %s3037_s21 = smov 0   ;;  %s3039_s22 = smov 0  }
   0xd   :  { %s3041_s23 = smov 0   ;;  %s3043_s24 = smov 0  }
   0xe   :  { %s3045_s25 = smov 0   ;;  %s3047_s26 = smov 0  }
   0xf   :  { %s3049_s27 = smov 0   ;;  %s3051_s28 = smov 0  }
  0x10   :  { %s3053_s29 = smov 0   ;;  %s3055_s30 = smov 0  }
  0x11   :  { %s3057_s7 = smov 0   ;;  %s3059_s8 = smov 0  }
  0x12   :  { %s3061_s9 = smov 0   ;;  %s3063_s10 = smov 0  }
  0x13 LB: > { %3778 = sst [smem:[#allocation21_spill]] %s2930_s21  ;;  %s3104_s11 = sadd.s32 4294967295, %s2982_s10   ;;  %s2982_s10 = sphi %s3063_s10, %s26_s10   ;;  %s2978_s9 = sphi %s3061_s9, %s3851_s9   ;;  %s2974_s8 = sphi %s3059_s8, %s3850_s8   ;;  %s2970_s7 = sphi %s3057_s7, %s3849_s7   ;;  %s2966_s30 = sphi %s3055_s30, %s3848_s30   ;;  %s2962_s29 = sphi %s3053_s29, %s3847_s29   ;;  %s2958_s28 = sphi %s3051_s28, %s3846_s28   ;;  %s2954_s27 = sphi %s3049_s27, %s3836_s27   ;;  %s2950_s26 = sphi %s3047_s26, %s3845_s26   ;;  %s2946_s25 = sphi %s3045_s25, %s3844_s25   ;;  %s2942_s24 = sphi %s3043_s24, %s3843_s24   ;;  %s2938_s23 = sphi %s3041_s23, %s3842_s23   ;;  %s2934_s22 = sphi %s3039_s22, %s3841_s22   ;;  %s2930_s21 = sphi %s3037_s21, %s3840_s21  }
  0x14   : > { %3779 = sst [smem:[#allocation22_spill]] %s2958_s28  ;;  %s1970_s12 = sadd.s32 4294967294, %s2982_s10  }
  0x15   : > { %3780 = sst [smem:[#allocation23_spill]] %s2966_s30  ;;  %p67_p0 = scmp.ne.s32.totalorder %s2958_s28, %s2954_s27 }
  0x16   : > { %3781 = sst [smem:[#allocation24_spill]] %s2970_s7  ;;  %p3754_p1 = scmp.eq.s32.totalorder %s3104_s11, 0 }
  0x17   : > { %p95_p2 = scmp.ne.s32.totalorder %s2946_s25, %s2942_s24  ;;  %p121_p3 = scmp.ne.s32.totalorder %s2934_s22, %s2930_s21 }
  0x18   : > { %p3114_p4 = por %p3754_p1, %p67_p0  ;;  %p231_p8 = scmp.eq.s32.totalorder %s1970_s12, 3 }
  0x19   : > { %p3121_p6 = por %p95_p2, %p3754_p1  ;;  %p3127_p7 = por %p121_p3, %p3754_p1 }
  0x1a   : > { %s3782_s13 = scalar_select %p3114_p4, 1, 0 }
  0x1b   : > { %s3784_s14 = scalar_select %p3121_p6, 1, 0 }
  0x1c   : > { %3783 = sst [smem:[#allocation25_spill]] %s3782_s13  ;;  %p1971_p9 = scmp.ge.s32.totalorder %s2982_s10, 1 }
  0x1d   : > { %3785 = sst [smem:[#allocation26_spill]] %s3784_s14  ;;  %p238_p10 = scmp.lt.s32.totalorder %s2982_s10, 5 }
  0x1e   : > { %s3786_s15 = scalar_select %p3127_p7, 1, 0 }
  0x1f   : > { %p3133_p11 = por %p231_p8, %p121_p3  ;;  %p3137_p12 = pnand %p1971_p9, %p238_p10 }
  0x20   : > { %3787 = sst [smem:[#allocation27_spill]] %s3786_s15  ;;  %s2984_s18 = smov [#allocation12]  }
  0x21   : > { %s3788_s16 = scalar_select %p3133_p11, 1, 0 }
  0x22   : > { %s3790_s17 = scalar_select %p3137_p12, 1, 0 }
  0x23   : > { %3789 = sst [smem:[#allocation28_spill]] %s3788_s16  ;;  %s268_s19 = sshll.u32 %s2984_s18, 4  ;;  %s269_s19 = int_to_ptr.vmem [resolvable:$true] %s268_s19 }
  0x24   : > { %3791 = sst [smem:[#allocation29_spill]] %s3790_s17  ;;  %p2443_p13 = pneg %p3137_p12 }
  0x25   : > { %s38_s24 = sadd.s32 1, %s2974_s8  ;;  %s3793_s5 = sld [smem:[#allocation35_spill]] }
  0x26   : > { %p3145_p0 = pnand %p2443_p13, %p3754_p1 }
  0x28   : > { %p3770_p3 = pneg %p3145_p0 }
  0x2b   : > { %s2640_s16 = scalar_lea.hbm %s3793_s5, 16 }
  0x2c   : > { %p2641_p2 = scmp.ne.s32.totalorder %s3793_s5, %s2640_s16  ;;  %p2647_p10 = scmp.lt.u32.totalorder %s2640_s16, %s3793_s5 }
  0x2e   : > { %p2643_p8 = pnand %p3770_p3, %p2641_p2 }
  0x30   : > { %p2644_p9 = pneg %p2643_p8 }
  0x32   : > { %p2649_p13 = pnand %p2647_p10, %p2644_p9 }
  0x34   : > { %2652 = shalt.err (!%p2649_p13)
}
  0x35   : > { %s2653_s30 = scalar_lea.vmem %s269_s19, 16  ;;  %s2660_s6 = scalar_lea.vmem %s269_s19, 32 }
  0x36   : > { %p2654_p1 = scmp.ne.s32.totalorder %s269_s19, %s2653_s30  ;;  %p2661_p7 = scmp.lt.s32.totalorder %s269_s19, %s269_s19 }
  0x37   : > { %p2662_p6 = scmp.lt.s32.totalorder %s2660_s6, %s2653_s30 }
  0x38   : > { %p2656_p5 = pnand %p2654_p1, %p3770_p3 }
  0x39   : > { %p2663_p4 = por %p2662_p6, %p2661_p7 }
  0x3a   : > { %p2657_p11 = pneg %p2656_p5 }
  0x3c   : > { %p2664_p12 = pnand %p2663_p4, %p2657_p11 }
  0x3e   : > { %2667 = shalt.err (!%p2664_p12)
}
  0x3f   : > { %2449 = dma.hbm_to_vmem [thread:$0]  (!%p3145_p0), %s3793_s5, 16, %s269_s19, [#allocation7]  }
  0x40   : > { %p39_p1 = scmp.ge.s32.totalorder %s38_s24, 2  ;;  %s45_s30 = sadd.s32 1, %s2978_s9 }
  0x41   : > { %s54_s16 = sadd.s32 1, %s2962_s29  ;;  %p61_p4 = scmp.ne.s32.totalorder %s2962_s29, %s2958_s28 }
  0x42   : > { %s3853_s24 = smov (%p39_p1, %s38_s24), 0  ;;  %s3855_s30 = smov (!%p39_p1, %s45_s30), %s2978_s9 }
  0x43   : > { %3794 = sst [smem:[#allocation30_spill]] %s3853_s24  ;;  %s3181_s27 = ssub.s32 %s2974_s8, %s3853_s24 }
  0x44   : > { %p3772_p5 = scmp.eq.s32.totalorder %s2982_s10, 0  ;;  %p47_p6 = scmp.ge.s32.totalorder %s3855_s30, 2 }
  0x45   : > { %p3771_p12 = scmp.lt.s32.totalorder %s2982_s10, 4  ;;  %s281_s18 = sand.u32 1, %s2962_s29  }
  0x46   : > { %p3187_p11 = por %p3772_p5, %p61_p4  ;;  %s3857_s30 = smov (%p47_p6, %s3855_s30), 0 }
  0x47   : > { %3796 = sst [smem:[#allocation31_spill]] %s3857_s30  ;;  %s3198_s6 = ssub.s32 %s2978_s9, %s3857_s30 }
  0x48   : > { %s51_s21 = sor.u32 %s3181_s27, %s3198_s6  ;;  %s1975_s7 = sshll.u32 %s281_s18, 7 }
  0x49   : > { %p52_p8 = scmp.eq.s32.totalorder %s51_s21, 0  ;;  %s1977_s5 = sshll.u32 %s2974_s8, 1 }
  0x4a   : > { %s2077_s15 = sshll.u32 %s2978_s9, 5  ;;  %s283_s14 = scalar_lea.vmem [#allocation3], %s1975_s7 }
  0x4b   : > { %s3205_s24 = scalar_select %p52_p8, %s2962_s29, %s54_s16  }
  0x4c   : > { %s293_s13 = sshll.u32 %s283_s14, 4  ;;  %s290_s28 = sadd.s32 %s2077_s15, %s1977_s5  ;;  %s3208_s13 = int_to_ptr.vmem [resolvable:$true] %s293_s13 }
  0x4d   : > { %s1979_s12 = sshll.u32 %s290_s28, 7  ;;  %p3214_p9 = pnand %p3771_p12, %p3187_p11 }
  0x4e   : > { %s3798_s0 = sld [smem:[#allocation32_spill]]  ;;  %s3799_s18 = sand.u32 1, %s2982_s10  }
  0x4f   : > { %s3225_s5 = scalar_lea.sflag [#allocation4], %s3799_s18  ;;  %p2670_p13 = pneg %p3214_p9 }
  0x54   : > { %s3221_s16 = scalar_lea.hbm %s3798_s0, %s1979_s12  ;;  %s2673_s15 = scalar_lea.hbm %s3798_s0, 8192 }
  0x55   : > { %s2668_s28 = scalar_lea.hbm %s3221_s16, 2048  ;;  %p2674_p6 = scmp.lt.u32.totalorder %s3221_s16, %s3798_s0 }
  0x56   : > { %p2669_p10 = scmp.ne.s32.totalorder %s3221_s16, %s2668_s28  ;;  %p2675_p11 = scmp.lt.u32.totalorder %s2673_s15, %s2668_s28 }
  0x57   : > { %p2677_p2 = scmp.lt.u32.totalorder %s2668_s28, %s3221_s16 }
  0x58   : > { %p2671_p1 = pnand %p2670_p13, %p2669_p10  ;;  %p2676_p8 = por %p2675_p11, %p2674_p6 }
  0x5a   : > { %p2672_p4 = pneg %p2671_p1  ;;  %p2678_p3 = por %p2677_p2, %p2676_p8 }
  0x5c   : > { %p2679_p12 = pnand %p2678_p3, %p2672_p4 }
  0x5e   : > { %2682 = shalt.err (!%p2679_p12)
}
  0x5f   : > { %s2683_s12 = scalar_lea.vmem %s3208_s13, 2048  ;;  %s2985_s21 = smov [#allocation3]  }
  0x60   : > { %p2684_p10 = scmp.ne.s32.totalorder %s3208_s13, %s2683_s12  ;;  %s2688_s7 = sshll.u32 %s2985_s21, 4  ;;  %s2689_s7 = int_to_ptr.vmem [resolvable:$false] %s2688_s7 }
  0x61   : > { %s2690_s18 = scalar_lea.vmem %s2689_s7, 4096  ;;  %p2691_p7 = scmp.lt.s32.totalorder %s3208_s13, %s2689_s7 }
  0x62   : > { %p2686_p1 = pnand %p2684_p10, %p2670_p13  ;;  %p2692_p6 = scmp.lt.s32.totalorder %s2690_s18, %s2683_s12 }
  0x64   : > { %p2687_p5 = pneg %p2686_p1  ;;  %p2693_p11 = por %p2692_p6, %p2691_p7 }
  0x66   : > { %p2694_p2 = pnand %p2693_p11, %p2687_p5 }
  0x68   : > { %2697 = shalt.err (!%p2694_p2)
}
  0x69   : > { %s2986_s28 = smov 512   ;;  %s2987_s4 = smov 256  }
  0x6a   : > { %s2988_s14 = smov 16   ;;  %s82_s15 = sadd.s32 1, %s2950_s26 }
  0x6b   : > { %2453 = dma.hbm_to_vmem [thread:$0]  (!%p3214_p9), %s3221_s16, 2048, %s3208_s13, %s3225_s5, %s2986_s28, %s2987_s4, %s2988_s14  }
  0x6c   : > { %p89_p3 = scmp.ne.s32.totalorder %s2950_s26, %s2946_s25  ;;  %p3800_p5 = scmp.eq.s32.totalorder %s3181_s27, 0 }
  0x6d   : > { %p3801_p7 = scmp.eq.s32.totalorder %s2982_s10, 0  ;;  %s305_s19 = sand.u32 1, %s2950_s26  }
  0x6e   : > { %s3259_s17 = scalar_select %p3800_p5, %s2950_s26, %s82_s15  }
  0x6f   : > { %p91_p12 = por %p89_p3, %p3801_p7  ;;  %s1980_s12 = sshll.u32 %s305_s19, 7 }
  0x70   : > { %s2078_s21 = sshll.u32 %s2974_s8, 11  ;;  %s3802_s1 = sld [smem:[#allocation33_spill]] }
  0x71   : > { %s307_s13 = scalar_lea.vmem [#allocation6], %s1980_s12  ;;  %p3803_p9 = scmp.lt.s32.totalorder %s2982_s10, 4 }
  0x72   : > { %s315_s30 = sshll.u32 %s307_s13, 4  ;;  %s3805_s16 = sand.u32 1, %s2982_s10   ;;  %s3276_s30 = int_to_ptr.vmem [resolvable:$true] %s315_s30 }
  0x73   : > { %p3272_p13 = pnand %p3803_p9, %p91_p12  ;;  %s3280_s28 = scalar_lea.sflag [#allocation7], %s3805_s16 }
  0x75   : > { %p2700_p8 = pneg %p3272_p13 }
  0x76   : > { %s3268_s0 = scalar_lea.hbm %s3802_s1, %s2078_s21  ;;  %s2703_s19 = scalar_lea.hbm %s3802_s1, 4096 }
  0x77   : > { %s2698_s4 = scalar_lea.hbm %s3268_s0, 2048  ;;  %p2704_p6 = scmp.lt.u32.totalorder %s3268_s0, %s3802_s1 }
  0x78   : > { %p2699_p4 = scmp.ne.s32.totalorder %s3268_s0, %s2698_s4  ;;  %p2705_p11 = scmp.lt.u32.totalorder %s2703_s19, %s2698_s4 }
  0x79   : > { %p2707_p3 = scmp.lt.u32.totalorder %s2698_s4, %s3268_s0 }
  0x7a   : > { %p2701_p10 = pnand %p2700_p8, %p2699_p4  ;;  %p2706_p2 = por %p2705_p11, %p2704_p6 }
  0x7c   : > { %p2702_p1 = pneg %p2701_p10  ;;  %p2708_p5 = por %p2707_p3, %p2706_p2 }
  0x7e   : > { %p2709_p7 = pnand %p2708_p5, %p2702_p1 }
  0x80   : > { %2712 = shalt.err (!%p2709_p7)
}
  0x81   : > { %s2713_s7 = scalar_lea.vmem %s3276_s30, 2048  ;;  %s2989_s18 = smov [#allocation6]  }
  0x82   : > { %p2714_p12 = scmp.ne.s32.totalorder %s3276_s30, %s2713_s7  ;;  %s2718_s13 = sshll.u32 %s2989_s18, 4  ;;  %s2719_s13 = int_to_ptr.vmem [resolvable:$false] %s2718_s13 }
  0x83   : > { %s2720_s16 = scalar_lea.vmem %s2719_s13, 4096  ;;  %p2721_p10 = scmp.lt.s32.totalorder %s3276_s30, %s2719_s13 }
  0x84   : > { %p2716_p9 = pnand %p2714_p12, %p2700_p8  ;;  %p2722_p6 = scmp.lt.s32.totalorder %s2720_s16, %s2713_s7 }
  0x86   : > { %p2717_p4 = pneg %p2716_p9  ;;  %p2723_p11 = por %p2722_p6, %p2721_p10 }
  0x88   : > { %p2724_p2 = pnand %p2723_p11, %p2717_p4 }
  0x8a   : > { %2727 = shalt.err (!%p2724_p2)
}
  0x8b   : > { %s2990_s4 = smov 64   ;;  %s2991_s14 = smov 4  }
  0x8c   : > { %2456 = dma.hbm_to_vmem [thread:$0]  (!%p3272_p13), %s3268_s0, 2048, %s3276_s30, %s3280_s28, %s2990_s4, %s2990_s4, %s2991_s14  }
  0x8d   : > { %s2992_s15 = smov [#allocation9]   ;;  %s108_s12 = sadd.s32 1, %s2938_s23 }
  0x8e   : > { %s252_s19 = sshll.u32 %s2992_s15, 4  ;;  %s2728_s18 = scalar_lea.hbm %s3747_s3, 1024  ;;  %s253_s19 = int_to_ptr.vmem [resolvable:$true] %s252_s19 }
  0x8f   : > { %p2729_p8 = scmp.ne.s32.totalorder %s3747_s3, %s2728_s18  ;;  %p3806_p1 = pneg %p3145_p0 }
  0x90   : > { %p2735_p13 = scmp.lt.u32.totalorder %s2728_s18, %s3747_s3 }
  0x91   : > { %p2731_p3 = pnand %p2729_p8, %p3806_p1 }
  0x93   : > { %p2732_p5 = pneg %p2731_p3 }
  0x95   : > { %p2737_p7 = pnand %p2735_p13, %p2732_p5 }
  0x97   : > { %2740 = shalt.err (!%p2737_p7)
}
  0x98   : > { %s2741_s0 = scalar_lea.vmem %s253_s19, 1024  ;;  %p3807_p9 = pmov %p3806_p1 }
  0x99   : > { %p2742_p12 = scmp.ne.s32.totalorder %s253_s19, %s2741_s0  ;;  %p2749_p6 = scmp.lt.s32.totalorder %s253_s19, %s253_s19 }
  0x9a   : > { %p2750_p11 = scmp.lt.s32.totalorder %s2741_s0, %s2741_s0 }
  0x9b   : > { %p2744_p4 = pnand %p2742_p12, %p3807_p9 }
  0x9c   : > { %p2751_p2 = por %p2750_p11, %p2749_p6 }
  0x9d   : > { %p2745_p10 = pneg %p2744_p4 }
  0x9f   : > { %p2752_p1 = pnand %p2751_p2, %p2745_p10 }
  0xa1   : > { %2755 = shalt.err (!%p2752_p1)
}
  0xa2   : > { %2446 = dma.hbm_to_vmem [thread:$0]  (!%p3145_p0), %s3747_s3, 1024, %s253_s19, [#allocation10], %s2990_s4, %s2990_s4, %s2991_s14  }
  0xa3   : > { %p3808_p8 = scmp.eq.s32.totalorder %s3198_s6, 0  ;;  %p115_p3 = scmp.ne.s32.totalorder %s2938_s23, %s2934_s22 }
  0xa4   : > { %s327_s20 = sand.u32 1, %s2938_s23   ;;  %s2079_s7 = sshll.u32 %s2978_s9, 11 }
  0xa5   : > { %s3338_s15 = scalar_select %p3808_p8, %s2938_s23, %s108_s12  }
  0xa6   : > { %s1983_s21 = sshll.u32 %s327_s20, 7  ;;  %p3809_p5 = scmp.eq.s32.totalorder %s2982_s10, 0 }
  0xa7   : > { %p3810_p7 = scmp.eq.s32.totalorder %s3104_s11, 3  ;;  %s3355_s27 = scalar_lea.hbm %s3746_s2, %s2079_s7 }
  0xa8   : > { %p117_p13 = por %p115_p3, %p3809_p5  ;;  %s329_s6 = scalar_lea.vmem [#allocation8], %s1983_s21 }
  0xa9   : > { %p3348_p12 = por %p3810_p7, %p115_p3  ;;  %s336_s19 = sshll.u32 %s329_s6, 4  ;;  %s3363_s19 = int_to_ptr.vmem [resolvable:$true] %s336_s19 }
  0xaa   : > { %p3812_p0 = scmp.lt.s32.totalorder %s2982_s10, 4  ;;  %s3365_s0 = sshll.u32 %s327_s20, 8 }
  0xab   : > { %s2756_s1 = scalar_lea.hbm %s3355_s27, 2048  ;;  %s2761_s7 = scalar_lea.hbm %s3746_s2, 4096 }
  0xac   : > { %p3359_p9 = pnand %p3812_p0, %p117_p13  ;;  %p2757_p4 = scmp.ne.s32.totalorder %s3355_s27, %s2756_s1 }
  0xad   : > { %p2762_p2 = scmp.lt.u32.totalorder %s3355_s27, %s3746_s2  ;;  %p2763_p1 = scmp.lt.u32.totalorder %s2761_s7, %s2756_s1 }
  0xae   : > { %p2758_p10 = pneg %p3359_p9  ;;  %p2765_p3 = scmp.lt.u32.totalorder %s2756_s1, %s3355_s27 }
  0xaf   : > { %p2764_p8 = por %p2763_p1, %p2762_p2 }
  0xb0   : > { %p2759_p6 = pnand %p2758_p10, %p2757_p4 }
  0xb1   : > { %p2766_p5 = por %p2765_p3, %p2764_p8 }
  0xb2   : > { %p2760_p11 = pneg %p2759_p6 }
  0xb4   : > { %p2767_p13 = pnand %p2766_p5, %p2760_p11 }
  0xb6   : > { %2770 = shalt.err (!%p2767_p13)
}
  0xb7   : > { %s2771_s20 = scalar_lea.vmem %s3363_s19, 2048  ;;  %s2993_s6 = smov [#allocation8]  }
  0xb8   : > { %p2772_p7 = scmp.ne.s32.totalorder %s3363_s19, %s2771_s20  ;;  %s2776_s30 = sshll.u32 %s2993_s6, 4  ;;  %s2777_s30 = int_to_ptr.vmem [resolvable:$false] %s2776_s30 }
  0xb9   : > { %s2778_s21 = scalar_lea.vmem %s2777_s30, 4096  ;;  %p2779_p6 = scmp.lt.s32.totalorder %s3363_s19, %s2777_s30 }
  0xba   : > { %p2774_p0 = pnand %p2772_p7, %p2758_p10  ;;  %p2780_p2 = scmp.lt.s32.totalorder %s2778_s21, %s2771_s20 }
  0xbc   : > { %p2775_p4 = pneg %p2774_p0  ;;  %p2781_p1 = por %p2780_p2, %p2779_p6 }
  0xbe   : > { %p2782_p8 = pnand %p2781_p1, %p2775_p4 }
  0xc0   : > { %2785 = shalt.err (!%p2782_p8)
}
  0xc1   : > { %2459 = dma.hbm_to_vmem [thread:$0]  (!%p3359_p9), %s3355_s27, 2048, %s3363_s19, %s3280_s28, %s2990_s4, %s2990_s4, %s2991_s14  }
  0xc2   : > { %s2080_s1 = sshll.u32 %s2978_s9, 12  ;;  %s350_s7 = scalar_lea.vmem [#allocation11], %s3365_s0 }
  0xc3   : > { %s357_s13 = sshll.u32 %s350_s7, 4  ;;  %s3814_s6 = sld [smem:[#allocation34_spill]]  ;;  %s3403_s13 = int_to_ptr.vmem [resolvable:$true] %s357_s13 }
  0xc9   : > { %s3401_s30 = scalar_lea.hbm %s3814_s6, %s2080_s1  ;;  %s2791_s14 = scalar_lea.hbm %s3814_s6, 8192 }
  0xca   : > { %s2786_s21 = scalar_lea.hbm %s3401_s30, 4096  ;;  %p2792_p13 = scmp.lt.u32.totalorder %s3401_s30, %s3814_s6 }
  0xcb   : > { %p2787_p11 = scmp.ne.s32.totalorder %s3401_s30, %s2786_s21  ;;  %p2793_p7 = scmp.lt.u32.totalorder %s2791_s14, %s2786_s21 }
  0xcc   : > { %p2795_p4 = scmp.lt.u32.totalorder %s2786_s21, %s3401_s30 }
  0xcd   : > { %p2789_p3 = pnand %p2787_p11, %p2758_p10  ;;  %p2794_p0 = por %p2793_p7, %p2792_p13 }
  0xcf   : > { %p2790_p5 = pneg %p2789_p3  ;;  %p2796_p6 = por %p2795_p4, %p2794_p0 }
  0xd1   : > { %p2797_p2 = pnand %p2796_p6, %p2790_p5 }
  0xd3   : > { %2800 = shalt.err (!%p2797_p2)
}
  0xd4   : > { %s2801_s0 = scalar_lea.vmem %s3403_s13, 4096  ;;  %s2994_s1 = smov [#allocation11]  }
  0xd5   : > { %p2802_p1 = scmp.ne.s32.totalorder %s3403_s13, %s2801_s0  ;;  %s2806_s7 = sshll.u32 %s2994_s1, 4  ;;  %s2807_s7 = int_to_ptr.vmem [resolvable:$false] %s2806_s7 }
  0xd6   : > { %s2808_s16 = scalar_lea.vmem %s2807_s7, 8192  ;;  %p2809_p3 = scmp.lt.s32.totalorder %s3403_s13, %s2807_s7 }
  0xd7   : > { %p2804_p8 = pnand %p2802_p1, %p2758_p10  ;;  %p2810_p13 = scmp.lt.s32.totalorder %s2808_s16, %s2801_s0 }
  0xd9   : > { %p2805_p11 = pneg %p2804_p8  ;;  %p2811_p7 = por %p2810_p13, %p2809_p3 }
  0xdb   : > { %p2812_p0 = pnand %p2811_p7, %p2805_p11 }
  0xdd   : > { %2815 = shalt.err (!%p2812_p0)
}
  0xde   : > { %s2995_s20 = smov 128   ;;  %s2996_s21 = smov 8  }
  0xdf   : > { %2462 = dma.hbm_to_vmem [thread:$0]  (!%p3359_p9), %s3401_s30, 4096, %s3403_s13, %s3225_s5, %s2995_s20, %s2995_s20, %s2996_s21  }
  0xe0   : > { %s3815_s28 = sld [smem:[#allocation29_spill]] }
  0xe6   : > { %p3816_p10 = scmp.ne.s32.totalorder %s3815_s28, 0 }
  0xe7   : > { %s3817_s4 = sld [smem:[#allocation22_spill]] (!%p3816_p10)  ;;  %s3818_s14 = sld [smem:[#allocation25_spill]] (!%p3816_p10) }
  0xe8   : > { %369 = sbr.rel (%p3816_p10) target bundleno = 880 (0x370), region = 44  ;;  %s371_s27 = sand.u32 (!%p3816_p10), 1, %s3104_s11  }
  0xe9   : > { %s372_s1 = scalar_lea.sflag (!%p3816_p10), [#allocation4], %s371_s27 }
  0xed   : > { %s373_s19 = sand.u32 (!%p3816_p10), 1, %s3817_s4   ;;  %p3819_p5 = scmp.ne.s32.totalorder (!%p3816_p10), %s3818_s14, 0 }
  0xee   : > { %s1990_s0 = sshll.u32 (!%p3816_p10), %s373_s19, 7 }
  0xef   : > { %s3433_s7 = scalar_lea.vmem [#allocation3], %s1990_s0 }
  0xf0   : > { %2901 = dma.done.wait (%p3819_p5), %s372_s1, 2048  }
  0xf1   : > { %2903 = vsyncadd (%p3819_p5), %s372_s1, 4294965248  ;;  %s3820_s12 = sld [smem:[#allocation26_spill]]  ;;  %s382_s5 = sand.u32 1, %s2946_s25  }
  0xf2   : > { %s1991_s13 = sshll.u32 %s382_s5, 7  ;;  %s381_s30 = scalar_lea.sflag [#allocation7], %s371_s27 }
  0xf3   : > { %s3440_s16 = scalar_lea.vmem [#allocation6], %s1991_s13 }
  0xf7   : > { %p3821_p9 = scmp.ne.s32.totalorder %s3820_s12, 0 }
  0xf9   : > { %2905 = dma.done.wait (%p3821_p9), %s381_s30, 2048  }
  0xfa   : > { %2907 = vsyncadd (%p3821_p9), %s381_s30, 4294965248  ;;  %s3822_s20 = sld [smem:[#allocation27_spill]]  ;;  %s3447_s21 = sand.u32 1, %s2934_s22  }
  0xfb   : > { %s1992_s28 = sshll.u32 %s3447_s21, 7 }
  0xfc   : > { %s3450_s4 = scalar_lea.vmem [#allocation8], %s1992_s28 }
 0x100   : > { %p3823_p4 = scmp.ne.s32.totalorder %s3822_s20, 0 }
 0x102   : > { %2909 = dma.done.wait (%p3823_p4), %s381_s30, 2048  }
 0x103   : > { %2911 = vsyncadd (%p3823_p4), %s381_s30, 4294965248  ;;  %p3824_p6 = scmp.eq.s32.totalorder %s3104_s11, 0 }
 0x105   : > { %2913 = dma.done.wait (%p3824_p6), [#allocation10], 1024   ;;  %p3825_p2 = pmov %p3824_p6 }
 0x106   : > { %s1994_s14 = sshll.u32 %s3447_s21, 8 }
 0x107   : > { %2915 = vsyncadd (%p3825_p2), [#allocation10], 4294966272  ;;  %s3461_s27 = scalar_lea.vmem [#allocation11], %s1994_s14 }
 0x108   : > { %2917 = dma.done.wait (%p3823_p4), %s372_s1, 4096  }
 0x109   : > { %2919 = vsyncadd (%p3823_p4), %s372_s1, 4294963200  ;;  %p3826_p1 = pmov %p3825_p2 }
 0x10b   : > { %2921 = dma.done.wait (%p3826_p1), [#allocation7], 16   ;;  %p3827_p8 = pmov %p3826_p1 }
 0x10c   : > { %s3471_s19 = scalar_lea.vmem [#allocation13], %s1992_s28  ;;  %s3828_s0 = sld [smem:[#allocation23_spill]] }
 0x10d   : > { %2923 = vsyncadd (%p3827_p8), [#allocation7], 4294967280 }
 0x112   : > { %p1997_p11 = scmp.ne.s32.totalorder %s3828_s0, 0 }
 0x113   : > { %v2997_v0 = vmov (!%p1997_p11), 0.0  }
 0x114   : > { %464 = sbr.rel (%p1997_p11) target bundleno = 292 (0x124), region = 72  ;;  %465 = vst [vmem:[#allocation2] sm:$0xff] (!%p1997_p11), %v2997_v0  ;;  %466 = vst [vmem:[#allocation2 + $0x8] sm:$0xff] (!%p1997_p11), %v2997_v0 }
 0x115   : > { %467 = vst [vmem:[#allocation2 + $0x10] sm:$0xff] (!%p1997_p11), %v2997_v0  ;;  %468 = vst [vmem:[#allocation2 + $0x18] sm:$0xff] (!%p1997_p11), %v2997_v0 }
 0x116   : > { %469 = vst [vmem:[#allocation2 + $0x20] sm:$0xff] (!%p1997_p11), %v2997_v0  ;;  %470 = vst [vmem:[#allocation2 + $0x28] sm:$0xff] (!%p1997_p11), %v2997_v0 }
 0x117   : > { %471 = vst [vmem:[#allocation2 + $0x30] sm:$0xff] (!%p1997_p11), %v2997_v0  ;;  %472 = vst [vmem:[#allocation2 + $0x38] sm:$0xff] (!%p1997_p11), %v2997_v0 }
 0x118   : > { %473 = vst [vmem:[#allocation2 + $0x40] sm:$0xff] (!%p1997_p11), %v2997_v0  ;;  %474 = vst [vmem:[#allocation2 + $0x48] sm:$0xff] (!%p1997_p11), %v2997_v0 }
 0x119   : > { %475 = vst [vmem:[#allocation2 + $0x50] sm:$0xff] (!%p1997_p11), %v2997_v0  ;;  %476 = vst [vmem:[#allocation2 + $0x58] sm:$0xff] (!%p1997_p11), %v2997_v0 }
 0x11a   : > { %477 = vst [vmem:[#allocation2 + $0x60] sm:$0xff] (!%p1997_p11), %v2997_v0  ;;  %478 = vst [vmem:[#allocation2 + $0x68] sm:$0xff] (!%p1997_p11), %v2997_v0 }
 0x11b   : > { %479 = vst [vmem:[#allocation2 + $0x70] sm:$0xff] %v2997_v0  ;;  %480 = vst [vmem:[#allocation2 + $0x78] sm:$0xff] %v2997_v0 }
 0x11c   : > { %481 = vst [vmem:[#allocation2 + $0x80] sm:$0xff] %v2997_v0  ;;  %482 = vst [vmem:[#allocation2 + $0x88] sm:$0xff] %v2997_v0 }
 0x11d   : > { %483 = vst [vmem:[#allocation2 + $0x90] sm:$0xff] %v2997_v0  ;;  %484 = vst [vmem:[#allocation2 + $0x98] sm:$0xff] %v2997_v0 }
 0x11e   : > { %485 = vst [vmem:[#allocation2 + $0xa0] sm:$0xff] %v2997_v0  ;;  %486 = vst [vmem:[#allocation2 + $0xa8] sm:$0xff] %v2997_v0 }
 0x11f   : > { %487 = vst [vmem:[#allocation2 + $0xb0] sm:$0xff] %v2997_v0  ;;  %488 = vst [vmem:[#allocation2 + $0xb8] sm:$0xff] %v2997_v0 }
 0x120   : > { %489 = vst [vmem:[#allocation2 + $0xc0] sm:$0xff] %v2997_v0  ;;  %490 = vst [vmem:[#allocation2 + $0xc8] sm:$0xff] %v2997_v0 }
 0x121   : > { %491 = vst [vmem:[#allocation2 + $0xd0] sm:$0xff] %v2997_v0  ;;  %492 = vst [vmem:[#allocation2 + $0xd8] sm:$0xff] %v2997_v0 }
 0x122   : > { %493 = vst [vmem:[#allocation2 + $0xe0] sm:$0xff] %v2997_v0  ;;  %494 = vst [vmem:[#allocation2 + $0xe8] sm:$0xff] %v2997_v0 }
 0x123   : > { %495 = vst [vmem:[#allocation2 + $0xf0] sm:$0xff] %v2997_v0  ;;  %496 = vst [vmem:[#allocation2 + $0xf8] sm:$0xff] %v2997_v0 }
 0x124 PF: > { %v2598_v1 = vld [vmem:[%s3440_s16 + $0x40] sm:$0xff]   ;;  %v2600_v3 = vld [vmem:[%s3440_s16 + $0x48] sm:$0xff]   ;;  %v2602_v5 = vld [vmem:[%s3440_s16 + $0x50] sm:$0xff]   ;;  %s3829_s11 = sld [smem:[#allocation23_spill]] }
 0x125   : > { %v2599_v2 = vld [vmem:[%s3440_s16] sm:$0xff]   ;;  %2209 = vmatprep.subr.bf16.mxu0 %v2598_v1  ;;  %2393 = vmatprep.subr.bf16.mxu1 %v2598_v1  ;;  %v2601_v4 = vld [vmem:[%s3440_s16 + $0x8] sm:$0xff]   ;;  %v2603_v6 = vld [vmem:[%s3440_s16 + $0x10] sm:$0xff]  }
 0x126   : > { %2210 = vmatpush3.bf16.msra.mxu0 %v2599_v2  ;;  %2401 = vmatpush3.bf16.msra.mxu1 %v2599_v2  ;;  %v2604_v7 = vld [vmem:[%s3440_s16 + $0x58] sm:$0xff]   ;;  %v2606_v9 = vld [vmem:[%s3440_s16 + $0x60] sm:$0xff]   ;;  %v2608_v11 = vld [vmem:[%s3440_s16 + $0x68] sm:$0xff]  }
 0x127   : > { %2211 = vmatprep.subr.bf16.mxu0 %v2600_v3  ;;  %2394 = vmatprep.subr.bf16.mxu1 %v2600_v3  ;;  %v2605_v8 = vld [vmem:[%s3440_s16 + $0x18] sm:$0xff]   ;;  %v2607_v10 = vld [vmem:[%s3440_s16 + $0x20] sm:$0xff]   ;;  %v498_v12 = vld [vmem:[%s3433_s7 + $0x8] sm:$0xff] }
 0x128   : > { %v506_v13 = vld [vmem:[%s3433_s7 + $0x48] sm:$0xff]  ;;  %v514_v14 = vunpack.c.l.s8.bf16 %v498_v12  ;;  %v2610_v17 = vld [vmem:[%s3440_s16 + $0x70] sm:$0xff]   ;;  %v2612_v19 = vld [vmem:[%s3440_s16 + $0x78] sm:$0xff]   ;;  %v516_v25 = vunpack.c.h.s8.bf16 %v498_v12 }
 0x129   : > { %v530_v15 = vunpack.c.l.s8.bf16 %v506_v13  ;;  %v2609_v16 = vld [vmem:[%s3440_s16 + $0x28] sm:$0xff]   ;;  %v2611_v18 = vld [vmem:[%s3440_s16 + $0x30] sm:$0xff]   ;;  %v2613_v20 = vld [vmem:[%s3440_s16 + $0x38] sm:$0xff]   ;;  %v532_v26 = vunpack.c.h.s8.bf16 %v506_v13 }
 0x12a   : > { %2212 = vmatpush3.bf16.msra.mxu0 %v2601_v4  ;;  %2402 = vmatpush3.bf16.msra.mxu1 %v2601_v4  ;;  %v497_v21 = vld [vmem:[%s3433_s7] sm:$0xff]  ;;  %v500_v27 = vld [vmem:[%s3433_s7 + $0x18] sm:$0xff]  ;;  %v499_v33 = vld [vmem:[%s3433_s7 + $0x10] sm:$0xff]  ;;  %p2014_p3 = scmp.ne.s32.totalorder %s3829_s11, 1 }
 0x12b   : > { %2213 = vmatprep.subr.bf16.mxu0 %v2602_v5  ;;  %2395 = vmatprep.subr.bf16.mxu1 %v2602_v5  ;;  %v505_v22 = vld [vmem:[%s3433_s7 + $0x40] sm:$0xff]  ;;  %v513_v23 = vunpack.c.l.s8.bf16 %v497_v21  ;;  %v508_v28 = vld [vmem:[%s3433_s7 + $0x58] sm:$0xff]  ;;  %v515_v29 = vunpack.c.h.s8.bf16 %v497_v21  ;;  %v518_v31 = vunpack.c.l.s8.bf16 %v500_v27  ;;  %v507_v34 = vld [vmem:[%s3433_s7 + $0x50] sm:$0xff]  ;;  %v517_v35 = vunpack.c.l.s8.bf16 %v499_v33 }
 0x12c   : > { %737 = vmatprep.mubr.bf16.mxu0 %v514_v14  ;;  %801 = vmatprep.mubr.bf16.mxu1 %v530_v15  ;;  %v529_v24 = vunpack.c.l.s8.bf16 %v505_v22  ;;  %v531_v30 = vunpack.c.h.s8.bf16 %v505_v22  ;;  %v534_v32 = vunpack.c.l.s8.bf16 %v508_v28  ;;  %v533_v36 = vunpack.c.l.s8.bf16 %v507_v34  ;;  %v502_v39 = vld [vmem:[%s3433_s7 + $0x28] sm:$0xff]  ;;  %v501_v45 = vld [vmem:[%s3433_s7 + $0x20] sm:$0xff]  ;;  %v504_v51 = vld [vmem:[%s3433_s7 + $0x38] sm:$0xff] }
 0x12d   : > { %v520_v37 = vunpack.c.h.s8.bf16 %v500_v27  ;;  %v536_v38 = vunpack.c.h.s8.bf16 %v508_v28  ;;  %v510_v40 = vld [vmem:[%s3433_s7 + $0x68] sm:$0xff]  ;;  %v519_v41 = vunpack.c.h.s8.bf16 %v499_v33  ;;  %v535_v42 = vunpack.c.h.s8.bf16 %v507_v34  ;;  %v509_v46 = vld [vmem:[%s3433_s7 + $0x60] sm:$0xff]  ;;  %v512_v52 = vld [vmem:[%s3433_s7 + $0x78] sm:$0xff] }
 0x12e   : > { %2214 = vmatpush3.bf16.msra.mxu0 %v2603_v6  ;;  %2403 = vmatpush3.bf16.msra.mxu1 %v2603_v6  ;;  %v522_v43 = vunpack.c.l.s8.bf16 %v502_v39  ;;  %v538_v44 = vunpack.c.l.s8.bf16 %v510_v40  ;;  %v521_v47 = vunpack.c.l.s8.bf16 %v501_v45  ;;  %v537_v48 = vunpack.c.l.s8.bf16 %v509_v46  ;;  %v503_v57 = vld [vmem:[%s3433_s7 + $0x30] sm:$0xff]  ;;  %v545_v3 = vld [vmem:[#allocation2] sm:$0xff]  ;;  %v562_v13 = vld [vmem:[#allocation2 + $0x88] sm:$0xff] }
 0x12f   : > { %2215 = vmatprep.subr.bf16.mxu0 %v2604_v7  ;;  %2396 = vmatprep.subr.bf16.mxu1 %v2604_v7  ;;  %v524_v49 = vunpack.c.h.s8.bf16 %v502_v39  ;;  %v540_v50 = vunpack.c.h.s8.bf16 %v510_v40  ;;  %v523_v53 = vunpack.c.h.s8.bf16 %v501_v45  ;;  %v539_v54 = vunpack.c.h.s8.bf16 %v509_v46  ;;  %v511_v58 = vld [vmem:[%s3433_s7 + $0x70] sm:$0xff]  ;;  %v561_v5 = vld [vmem:[#allocation2 + $0x80] sm:$0xff]  ;;  %v564_v33 = vld [vmem:[#allocation2 + $0x98] sm:$0xff] }
 0x130   : > { %v526_v55 = vunpack.c.l.s8.bf16 %v504_v51  ;;  %v542_v56 = vunpack.c.l.s8.bf16 %v512_v52  ;;  %v525_v59 = vunpack.c.l.s8.bf16 %v503_v57  ;;  %v541_v60 = vunpack.c.l.s8.bf16 %v511_v58  ;;  %v565_v45 = vld [vmem:[#allocation2 + $0xa0] sm:$0xff] }
 0x131   : > { %v528_v61 = vunpack.c.h.s8.bf16 %v504_v51  ;;  %v544_v62 = vunpack.c.h.s8.bf16 %v512_v52  ;;  %v527_v63 = vunpack.c.h.s8.bf16 %v503_v57  ;;  %v543_v0 = vunpack.c.h.s8.bf16 %v511_v58  ;;  %v550_v51 = vld [vmem:[#allocation2 + $0x28] sm:$0xff] }
 0x132   : > { %2216 = vmatpush3.bf16.msra.mxu0 %v2605_v8  ;;  %2404 = vmatpush3.bf16.msra.mxu1 %v2605_v8 }
 0x133   : > { %2217 = vmatprep.subr.bf16.mxu0 %v2606_v9  ;;  %2397 = vmatprep.subr.bf16.mxu1 %v2606_v9 }
 0x136   : > { %2218 = vmatpush3.bf16.msra.mxu0 %v2607_v10  ;;  %2405 = vmatpush3.bf16.msra.mxu1 %v2607_v10 }
 0x137   : > { %2219 = vmatprep.subr.bf16.mxu0 %v2608_v11  ;;  %2398 = vmatprep.subr.bf16.mxu1 %v2608_v11  ;;  %v546_v11 = vld [vmem:[#allocation2 + $0x8] sm:$0xff] }
 0x13a   : > { %2220 = vmatpush3.bf16.msra.mxu0 %v2609_v16  ;;  %2406 = vmatpush3.bf16.msra.mxu1 %v2609_v16 }
 0x13b   : > { %2221 = vmatprep.subr.bf16.mxu0 %v2610_v17  ;;  %2399 = vmatprep.subr.bf16.mxu1 %v2610_v17 }
 0x13e   : > { %2222 = vmatpush3.bf16.msra.mxu0 %v2611_v18  ;;  %2407 = vmatpush3.bf16.msra.mxu1 %v2611_v18 }
 0x13f   : > { %2223 = vmatprep.subr.bf16.mxu0 %v2612_v19  ;;  %2400 = vmatprep.subr.bf16.mxu1 %v2612_v19 }
 0x142   : > { %2224 = vmatpush3.bf16.msra.mxu0 %v2613_v20  ;;  %2408 = vmatpush3.bf16.msra.mxu1 %v2613_v20 }
 0x145   : > { %738 = vmatmul.mubr.bf16.vlgmr.msra.gmra.mrb[0].mxu0 %v513_v23  ;;  %802 = vmatmul.mubr.bf16.vlgmr.msra.gmra.mrb[0].mxu1 %v529_v24  ;;  %v547_v23 = vld [vmem:[#allocation2 + $0x10] sm:$0xff] }
 0x146   : > { %745 = vmatprep.mubr.bf16.mxu0 %v516_v25  ;;  %809 = vmatprep.mubr.bf16.mxu1 %v532_v26  ;;  %v563_v25 = vld [vmem:[#allocation2 + $0x90] sm:$0xff] }
 0x14d   : > { %746 = vmatmul.mubr.bf16.gmra.mrb[4].mxu0 %v515_v29  ;;  %810 = vmatmul.mubr.bf16.gmra.mrb[4].mxu1 %v531_v30 }
 0x14e   : > { %753 = vmatprep.mubr.bf16.mxu0 %v518_v31  ;;  %817 = vmatprep.mubr.bf16.mxu1 %v534_v32  ;;  %v548_v31 = vld [vmem:[#allocation2 + $0x18] sm:$0xff] }
 0x155   : > { %754 = vmatmul.mubr.bf16.gmra.mrb[8].mxu0 %v517_v35  ;;  %818 = vmatmul.mubr.bf16.gmra.mrb[8].mxu1 %v533_v36 }
 0x156   : > { %761 = vmatprep.mubr.bf16.mxu0 %v520_v37  ;;  %825 = vmatprep.mubr.bf16.mxu1 %v536_v38 }
 0x15d   : > { %762 = vmatmul.mubr.bf16.gmra.mrb[12].mxu0 %v519_v41  ;;  %826 = vmatmul.mubr.bf16.gmra.mrb[12].mxu1 %v535_v42 }
 0x15e   : > { %769 = vmatprep.mubr.bf16.mxu0 %v522_v43  ;;  %833 = vmatprep.mubr.bf16.mxu1 %v538_v44  ;;  %v549_v43 = vld [vmem:[#allocation2 + $0x20] sm:$0xff] }
 0x165   : > { %770 = vmatmul.mubr.bf16.gmra.mrb[16].mxu0 %v521_v47  ;;  %834 = vmatmul.mubr.bf16.gmra.mrb[16].mxu1 %v537_v48 }
 0x166   : > { %777 = vmatprep.mubr.bf16.mxu0 %v524_v49  ;;  %841 = vmatprep.mubr.bf16.mxu1 %v540_v50 }
 0x16d   : > { %778 = vmatmul.mubr.bf16.gmra.mrb[20].mxu0 %v523_v53  ;;  %842 = vmatmul.mubr.bf16.gmra.mrb[20].mxu1 %v539_v54  ;;  %v566_v53 = vld [vmem:[#allocation2 + $0xa8] sm:$0xff] }
 0x16e   : > { %785 = vmatprep.mubr.bf16.mxu0 %v526_v55  ;;  %849 = vmatprep.mubr.bf16.mxu1 %v542_v56 }
 0x175   : > { %786 = vmatmul.mubr.bf16.gmra.mrb[24].mxu0 %v525_v59  ;;  %850 = vmatmul.mubr.bf16.gmra.mrb[24].mxu1 %v541_v60 }
 0x176   : > { %793 = vmatprep.mubr.bf16.mxu0 %v528_v61  ;;  %857 = vmatprep.mubr.bf16.mxu1 %v544_v62 }
 0x17d   : > { %794 = vmatmul.mubr.bf16.gmra.mrb[28].mxu0 %v527_v63  ;;  %858 = vmatmul.mubr.bf16.gmra.mrb[28].mxu1 %v543_v0  ;;  %v551_v63 = vld [vmem:[#allocation2 + $0x30] sm:$0xff] }
 0x218   : > { %v2225_v1 = vpop.f32.mrb[0].mxu0  ;;  %v2273_v2 = vpop.f32.mrb[0].mxu1 }
 0x219   : > { %v2226_v4 = vpop.f32.mrb[1].mxu0  ;;  %v2274_v6 = vpop.f32.mrb[1].mxu1 }
 0x21a   : > { %v2227_v7 = vadd.f32 %v2226_v4, %v2225_v1  ;;  %v2275_v8 = vadd.f32 %v2274_v6, %v2273_v2  ;;  %v2228_v9 = vpop.f32.mrb[2].mxu0  ;;  %v2276_v10 = vpop.f32.mrb[2].mxu1  ;;  %v567_v1 = vld [vmem:[#allocation2 + $0xb0] sm:$0xff] }
 0x21b   : > { %v2229_v12 = vpop.f32.mrb[3].mxu0  ;;  %v2277_v14 = vpop.f32.mrb[3].mxu1 }
 0x21c   : > { %v866_v15 = vadd.f32 %v2227_v7, %v545_v3  ;;  %v882_v16 = vadd.f32 %v2275_v8, %v561_v5  ;;  %v2230_v17 = vadd.f32 %v2229_v12, %v2228_v9  ;;  %v2278_v18 = vadd.f32 %v2277_v14, %v2276_v10  ;;  %v552_v7 = vld [vmem:[#allocation2 + $0x38] sm:$0xff] }
 0x21d   : > { %v568_v9 = vld [vmem:[#allocation2 + $0xb8] sm:$0xff] }
 0x21e   : > { %898 = vst [vmem:[#allocation2] sm:$0xff] %v866_v15  ;;  %914 = vst [vmem:[#allocation2 + $0x80] sm:$0xff] %v882_v16  ;;  %v867_v19 = vadd.f32 %v2230_v17, %v546_v11  ;;  %v883_v20 = vadd.f32 %v2278_v18, %v562_v13 }
 0x220   : > { %899 = vst [vmem:[#allocation2 + $0x8] sm:$0xff] %v867_v19  ;;  %915 = vst [vmem:[#allocation2 + $0x88] sm:$0xff] %v883_v20  ;;  %v2231_v21 = vpop.f32.mrb[4].mxu0  ;;  %v2279_v22 = vpop.f32.mrb[4].mxu1  ;;  %v553_v19 = vld [vmem:[#allocation2 + $0x40] sm:$0xff] }
 0x221   : > { %v2232_v24 = vpop.f32.mrb[5].mxu0  ;;  %v2280_v26 = vpop.f32.mrb[5].mxu1 }
 0x222   : > { %v2233_v27 = vadd.f32 %v2232_v24, %v2231_v21  ;;  %v2281_v28 = vadd.f32 %v2280_v26, %v2279_v22  ;;  %v2234_v29 = vpop.f32.mrb[6].mxu0  ;;  %v2282_v30 = vpop.f32.mrb[6].mxu1  ;;  %v569_v21 = vld [vmem:[#allocation2 + $0xc0] sm:$0xff] }
 0x223   : > { %v2235_v32 = vpop.f32.mrb[7].mxu0  ;;  %v2283_v34 = vpop.f32.mrb[7].mxu1 }
 0x224   : > { %v868_v35 = vadd.f32 %v2233_v27, %v547_v23  ;;  %v884_v36 = vadd.f32 %v2281_v28, %v563_v25  ;;  %v2236_v37 = vadd.f32 %v2235_v32, %v2234_v29  ;;  %v2284_v38 = vadd.f32 %v2283_v34, %v2282_v30  ;;  %v554_v27 = vld [vmem:[#allocation2 + $0x48] sm:$0xff] }
 0x225   : > { %v570_v29 = vld [vmem:[#allocation2 + $0xc8] sm:$0xff] }
 0x226   : > { %900 = vst [vmem:[#allocation2 + $0x10] sm:$0xff] %v868_v35  ;;  %916 = vst [vmem:[#allocation2 + $0x90] sm:$0xff] %v884_v36  ;;  %v869_v39 = vadd.f32 %v2236_v37, %v548_v31  ;;  %v885_v40 = vadd.f32 %v2284_v38, %v564_v33 }
 0x228   : > { %901 = vst [vmem:[#allocation2 + $0x18] sm:$0xff] %v869_v39  ;;  %917 = vst [vmem:[#allocation2 + $0x98] sm:$0xff] %v885_v40  ;;  %v2237_v41 = vpop.f32.mrb[8].mxu0  ;;  %v2285_v42 = vpop.f32.mrb[8].mxu1  ;;  %v555_v39 = vld [vmem:[#allocation2 + $0x50] sm:$0xff] }
 0x229   : > { %v2238_v44 = vpop.f32.mrb[9].mxu0  ;;  %v2286_v46 = vpop.f32.mrb[9].mxu1 }
 0x22a   : > { %v2239_v47 = vadd.f32 %v2238_v44, %v2237_v41  ;;  %v2287_v48 = vadd.f32 %v2286_v46, %v2285_v42  ;;  %v2240_v49 = vpop.f32.mrb[10].mxu0  ;;  %v2288_v50 = vpop.f32.mrb[10].mxu1  ;;  %v571_v41 = vld [vmem:[#allocation2 + $0xd0] sm:$0xff] }
 0x22b   : > { %v2241_v52 = vpop.f32.mrb[11].mxu0  ;;  %v2289_v54 = vpop.f32.mrb[11].mxu1 }
 0x22c   : > { %v870_v55 = vadd.f32 %v2239_v47, %v549_v43  ;;  %v886_v56 = vadd.f32 %v2287_v48, %v565_v45  ;;  %v2242_v57 = vadd.f32 %v2241_v52, %v2240_v49  ;;  %v2290_v58 = vadd.f32 %v2289_v54, %v2288_v50  ;;  %v556_v47 = vld [vmem:[#allocation2 + $0x58] sm:$0xff] }
 0x22d   : > { %v572_v49 = vld [vmem:[#allocation2 + $0xd8] sm:$0xff] }
 0x22e   : > { %902 = vst [vmem:[#allocation2 + $0x20] sm:$0xff] %v870_v55  ;;  %918 = vst [vmem:[#allocation2 + $0xa0] sm:$0xff] %v886_v56  ;;  %v871_v59 = vadd.f32 %v2242_v57, %v550_v51  ;;  %v887_v60 = vadd.f32 %v2290_v58, %v566_v53 }
 0x230   : > { %903 = vst [vmem:[#allocation2 + $0x28] sm:$0xff] %v871_v59  ;;  %919 = vst [vmem:[#allocation2 + $0xa8] sm:$0xff] %v887_v60  ;;  %v2243_v61 = vpop.f32.mrb[12].mxu0  ;;  %v2291_v62 = vpop.f32.mrb[12].mxu1  ;;  %v557_v59 = vld [vmem:[#allocation2 + $0x60] sm:$0xff] }
 0x231   : > { %v2244_v0 = vpop.f32.mrb[13].mxu0  ;;  %v2292_v2 = vpop.f32.mrb[13].mxu1 }
 0x232   : > { %v2245_v3 = vadd.f32 %v2244_v0, %v2243_v61  ;;  %v2293_v4 = vadd.f32 %v2292_v2, %v2291_v62  ;;  %v2246_v5 = vpop.f32.mrb[14].mxu0  ;;  %v2294_v6 = vpop.f32.mrb[14].mxu1  ;;  %v573_v61 = vld [vmem:[#allocation2 + $0xe0] sm:$0xff] }
 0x233   : > { %v2247_v8 = vpop.f32.mrb[15].mxu0  ;;  %v2295_v10 = vpop.f32.mrb[15].mxu1 }
 0x234   : > { %v872_v11 = vadd.f32 %v2245_v3, %v551_v63  ;;  %v888_v12 = vadd.f32 %v2293_v4, %v567_v1  ;;  %v2248_v13 = vadd.f32 %v2247_v8, %v2246_v5  ;;  %v2296_v14 = vadd.f32 %v2295_v10, %v2294_v6  ;;  %v558_v3 = vld [vmem:[#allocation2 + $0x68] sm:$0xff] }
 0x235   : > { %v574_v5 = vld [vmem:[#allocation2 + $0xe8] sm:$0xff] }
 0x236   : > { %904 = vst [vmem:[#allocation2 + $0x30] sm:$0xff] %v872_v11  ;;  %920 = vst [vmem:[#allocation2 + $0xb0] sm:$0xff] %v888_v12  ;;  %v873_v15 = vadd.f32 %v2248_v13, %v552_v7  ;;  %v889_v16 = vadd.f32 %v2296_v14, %v568_v9 }
 0x238   : > { %905 = vst [vmem:[#allocation2 + $0x38] sm:$0xff] %v873_v15  ;;  %921 = vst [vmem:[#allocation2 + $0xb8] sm:$0xff] %v889_v16  ;;  %v2249_v17 = vpop.f32.mrb[16].mxu0  ;;  %v2297_v18 = vpop.f32.mrb[16].mxu1  ;;  %v559_v15 = vld [vmem:[#allocation2 + $0x70] sm:$0xff] }
 0x239   : > { %v2250_v20 = vpop.f32.mrb[17].mxu0  ;;  %v2298_v22 = vpop.f32.mrb[17].mxu1 }
 0x23a   : > { %v2251_v23 = vadd.f32 %v2250_v20, %v2249_v17  ;;  %v2299_v24 = vadd.f32 %v2298_v22, %v2297_v18  ;;  %v2252_v25 = vpop.f32.mrb[18].mxu0  ;;  %v2300_v26 = vpop.f32.mrb[18].mxu1  ;;  %v575_v17 = vld [vmem:[#allocation2 + $0xf0] sm:$0xff] }
 0x23b   : > { %v2253_v28 = vpop.f32.mrb[19].mxu0  ;;  %v2301_v30 = vpop.f32.mrb[19].mxu1 }
 0x23c   : > { %v874_v31 = vadd.f32 %v2251_v23, %v553_v19  ;;  %v890_v32 = vadd.f32 %v2299_v24, %v569_v21  ;;  %v2254_v33 = vadd.f32 %v2253_v28, %v2252_v25  ;;  %v2302_v34 = vadd.f32 %v2301_v30, %v2300_v26  ;;  %v560_v23 = vld [vmem:[#allocation2 + $0x78] sm:$0xff] }
 0x23d   : > { %v576_v25 = vld [vmem:[#allocation2 + $0xf8] sm:$0xff] }
 0x23e   : > { %906 = vst [vmem:[#allocation2 + $0x40] sm:$0xff] %v874_v31  ;;  %922 = vst [vmem:[#allocation2 + $0xc0] sm:$0xff] %v890_v32  ;;  %v875_v35 = vadd.f32 %v2254_v33, %v554_v27  ;;  %v891_v36 = vadd.f32 %v2302_v34, %v570_v29  ;;  %v2616_v33 = vld [vmem:[#allocation9] sm:$0xff] (!%p2014_p3)   ;;  %v2617_v34 = vld [vmem:[#allocation9 + $0x8] sm:$0xff] (!%p2014_p3)  }
 0x23f   : > { %2345 = vmatprep.subr.bf16.mxu0 (!%p2014_p3), %v2616_v33  ;;  %2409 = vmatprep.subr.bf16.mxu1 (!%p2014_p3), %v2616_v33 }
 0x240   : > { %907 = vst [vmem:[#allocation2 + $0x48] sm:$0xff] %v875_v35  ;;  %923 = vst [vmem:[#allocation2 + $0xc8] sm:$0xff] %v891_v36  ;;  %v2255_v37 = vpop.f32.mrb[20].mxu0  ;;  %v2303_v38 = vpop.f32.mrb[20].mxu1  ;;  %v2998_v35 = vmov (!%p2014_p3), 0   ;;  %2346 = vmatpush3.bf16.msra.mxu0 (!%p2014_p3), %v2616_v33  ;;  %2417 = vmatpush3.bf16.msra.mxu1 (!%p2014_p3), %v2616_v33  ;;  %v2618_v36 = vld [vmem:[#allocation9 + $0x10] sm:$0xff] (!%p2014_p3)  }
 0x241   : > { %v2256_v40 = vpop.f32.mrb[21].mxu0  ;;  %v2304_v42 = vpop.f32.mrb[21].mxu1  ;;  %2615 = vset.pattern.permute.xlu1 (!%p2014_p3), %v2998_v35  ;;  %2614 = vset.pattern.permute.xlu0 (!%p2014_p3), %v2998_v35 }
 0x242   : > { %v2257_v43 = vadd.f32 %v2256_v40, %v2255_v37  ;;  %v2305_v44 = vadd.f32 %v2304_v42, %v2303_v38  ;;  %v2258_v45 = vpop.f32.mrb[22].mxu0  ;;  %v2306_v46 = vpop.f32.mrb[22].mxu1  ;;  %2347 = vmatprep.subr.bf16.mxu0 (!%p2014_p3), %v2617_v34  ;;  %2410 = vmatprep.subr.bf16.mxu1 (!%p2014_p3), %v2617_v34  ;;  %v1289_v37 = vld [vmem:[%s3461_s27 + $0x10] sm:$0xff] (!%p2014_p3)  ;;  %v1287_v38 = vld [vmem:[%s3461_s27] sm:$0xff] (!%p2014_p3)  ;;  %v1290_v40 = vld [vmem:[%s3461_s27 + $0x18] sm:$0xff] (!%p2014_p3) }
 0x243   : > { %v2259_v48 = vpop.f32.mrb[23].mxu0  ;;  %v2307_v50 = vpop.f32.mrb[23].mxu1  ;;  %1363 = vperm.xlu1 (!%p2014_p3), %2615, %v1289_v37   ;;  %1353 = vperm.xlu0 (!%p2014_p3), %2614, %v1287_v38   ;;  %v2624_v42 = vld [vmem:[%s3450_s4] sm:$0xff] (!%p2014_p3)  }
 0x244   : > { %v876_v51 = vadd.f32 %v2257_v43, %v555_v39  ;;  %v892_v52 = vadd.f32 %v2305_v44, %v571_v41  ;;  %v2260_v53 = vadd.f32 %v2259_v48, %v2258_v45  ;;  %v2308_v54 = vadd.f32 %v2307_v50, %v2306_v46  ;;  %2348 = vmatpush3.bf16.msra.mxu0 (!%p2014_p3), %v2617_v34  ;;  %v2619_v39 = vld [vmem:[#allocation9 + $0x18] sm:$0xff] (!%p2014_p3)   ;;  %v1288_v41 = vld [vmem:[%s3461_s27 + $0x8] sm:$0xff] (!%p2014_p3)  ;;  %v2625_v43 = vld [vmem:[%s3450_s4 + $0x40] sm:$0xff] (!%p2014_p3)  }
 0x245   : > { %2418 = vmatpush3.bf16.msra.mxu1 (!%p2014_p3), %v2617_v34  ;;  %2349 = vmatprep.subr.bf16.mxu0 (!%p2014_p3), %v2618_v36  ;;  %v2620_v44 = vld [vmem:[#allocation9 + $0x20] sm:$0xff] (!%p2014_p3)   ;;  %v1292_v45 = vld [vmem:[%s3461_s27 + $0x28] sm:$0xff] (!%p2014_p3)  ;;  %v1294_v48 = vld [vmem:[%s3461_s27 + $0x38] sm:$0xff] (!%p2014_p3) }
 0x246   : > { %908 = vst [vmem:[#allocation2 + $0x50] sm:$0xff] %v876_v51  ;;  %924 = vst [vmem:[#allocation2 + $0xd0] sm:$0xff] %v892_v52  ;;  %v877_v55 = vadd.f32 %v2260_v53, %v556_v47  ;;  %v893_v56 = vadd.f32 %v2308_v54, %v572_v49  ;;  %2411 = vmatprep.subr.bf16.mxu1 (!%p2014_p3), %v2618_v36  ;;  %v1291_v46 = vld [vmem:[%s3461_s27 + $0x20] sm:$0xff] (!%p2014_p3)  ;;  %2361 = vmatprep.mubr.bf16.mxu0 (!%p2014_p3), %v2624_v42  ;;  %v2621_v47 = vld [vmem:[#allocation9 + $0x28] sm:$0xff] (!%p2014_p3)  }
 0x247   : > { %1368 = vperm.xlu1 (!%p2014_p3), %2615, %v1290_v40   ;;  %1358 = vperm.xlu0 (!%p2014_p3), %2614, %v1288_v41   ;;  %v1293_v49 = vld [vmem:[%s3461_s27 + $0x30] sm:$0xff] (!%p2014_p3)  ;;  %v1296_v51 = vld [vmem:[%s3461_s27 + $0x48] sm:$0xff] (!%p2014_p3)  ;;  %v1295_v52 = vld [vmem:[%s3461_s27 + $0x40] sm:$0xff] (!%p2014_p3) }
 0x248   : > { %909 = vst [vmem:[#allocation2 + $0x58] sm:$0xff] %v877_v55  ;;  %925 = vst [vmem:[#allocation2 + $0xd8] sm:$0xff] %v893_v56  ;;  %v2261_v57 = vpop.f32.mrb[24].mxu0  ;;  %v2309_v58 = vpop.f32.mrb[24].mxu1  ;;  %2350 = vmatpush3.bf16.msra.mxu0 (!%p2014_p3), %v2618_v36  ;;  %2377 = vmatprep.mubr.bf16.mxu1 (!%p2014_p3), %v2625_v43  ;;  %v2622_v50 = vld [vmem:[#allocation9 + $0x30] sm:$0xff] (!%p2014_p3)   ;;  %v2623_v53 = vld [vmem:[#allocation9 + $0x38] sm:$0xff] (!%p2014_p3)  }
 0x249   : > { %v2262_v60 = vpop.f32.mrb[25].mxu0  ;;  %v2310_v62 = vpop.f32.mrb[25].mxu1  ;;  %2419 = vmatpush3.bf16.msra.mxu1 (!%p2014_p3), %v2618_v36  ;;  %2351 = vmatprep.subr.bf16.mxu0 (!%p2014_p3), %v2619_v39  ;;  %v1298_v54 = vld [vmem:[%s3461_s27 + $0x58] sm:$0xff] (!%p2014_p3)  ;;  %v1297_v55 = vld [vmem:[%s3461_s27 + $0x50] sm:$0xff] (!%p2014_p3)  ;;  %v2626_v56 = vld [vmem:[%s3450_s4 + $0x8] sm:$0xff] (!%p2014_p3)  }
 0x24a   : > { %v2263_v63 = vadd.f32 %v2262_v60, %v2261_v57  ;;  %v2311_v0 = vadd.f32 %v2310_v62, %v2309_v58  ;;  %v2264_v1 = vpop.f32.mrb[26].mxu0  ;;  %v2312_v2 = vpop.f32.mrb[26].mxu1  ;;  %2412 = vmatprep.subr.bf16.mxu1 (!%p2014_p3), %v2619_v39  ;;  %v2627_v57 = vld [vmem:[%s3450_s4 + $0x48] sm:$0xff] (!%p2014_p3)   ;;  %v2628_v60 = vld [vmem:[%s3450_s4 + $0x10] sm:$0xff] (!%p2014_p3)   ;;  %v1302_v62 = vld [vmem:[%s3461_s27 + $0x78] sm:$0xff] (!%p2014_p3) }
 0x24b   : > { %v2265_v4 = vpop.f32.mrb[27].mxu0  ;;  %v2313_v6 = vpop.f32.mrb[27].mxu1  ;;  %1378 = vperm.xlu1 (!%p2014_p3), %2615, %v1292_v45   ;;  %1373 = vperm.xlu0 (!%p2014_p3), %2614, %v1291_v46   ;;  %v1300_v58 = vld [vmem:[%s3461_s27 + $0x68] sm:$0xff] (!%p2014_p3) }
 0x24c   : > { %v878_v7 = vadd.f32 %v2263_v63, %v557_v59  ;;  %v894_v8 = vadd.f32 %v2311_v0, %v573_v61  ;;  %v2266_v9 = vadd.f32 %v2265_v4, %v2264_v1  ;;  %v2314_v10 = vadd.f32 %v2313_v6, %v2312_v2  ;;  %2352 = vmatpush3.bf16.msra.mxu0 (!%p2014_p3), %v2619_v39  ;;  %v1299_v59 = vld [vmem:[%s3461_s27 + $0x60] sm:$0xff] (!%p2014_p3)  ;;  %v2629_v61 = vld [vmem:[%s3450_s4 + $0x50] sm:$0xff] (!%p2014_p3)   ;;  %v2630_v0 = vld [vmem:[%s3450_s4 + $0x18] sm:$0xff] (!%p2014_p3)  }
 0x24d   : > { %2420 = vmatpush3.bf16.msra.mxu1 (!%p2014_p3), %v2619_v39  ;;  %2353 = vmatprep.subr.bf16.mxu0 (!%p2014_p3), %v2620_v44  ;;  %v1301_v63 = vld [vmem:[%s3461_s27 + $0x70] sm:$0xff] (!%p2014_p3)  ;;  %v2631_v1 = vld [vmem:[%s3450_s4 + $0x58] sm:$0xff] (!%p2014_p3)   ;;  %v1304_v2 = vld [vmem:[%s3461_s27 + $0x88] sm:$0xff] (!%p2014_p3) }
 0x24e   : > { %910 = vst [vmem:[#allocation2 + $0x60] sm:$0xff] %v878_v7  ;;  %926 = vst [vmem:[#allocation2 + $0xe0] sm:$0xff] %v894_v8  ;;  %v879_v11 = vadd.f32 %v2266_v9, %v558_v3  ;;  %v895_v12 = vadd.f32 %v2314_v10, %v574_v5  ;;  %2413 = vmatprep.subr.bf16.mxu1 (!%p2014_p3), %v2620_v44  ;;  %v1303_v3 = vld [vmem:[%s3461_s27 + $0x80] sm:$0xff] (!%p2014_p3)  ;;  %v1306_v6 = vld [vmem:[%s3461_s27 + $0x98] sm:$0xff] (!%p2014_p3) }
 0x24f   : > { %1388 = vperm.xlu1 (!%p2014_p3), %2615, %v1294_v48   ;;  %1383 = vperm.xlu0 (!%p2014_p3), %2614, %v1293_v49   ;;  %v2632_v4 = vld [vmem:[%s3450_s4 + $0x20] sm:$0xff] (!%p2014_p3)   ;;  %v1305_v7 = vld [vmem:[%s3461_s27 + $0x90] sm:$0xff] (!%p2014_p3)  ;;  %v2634_v8 = vld [vmem:[%s3450_s4 + $0x28] sm:$0xff] (!%p2014_p3)  }
 0x250   : > { %911 = vst [vmem:[#allocation2 + $0x68] sm:$0xff] %v879_v11  ;;  %927 = vst [vmem:[#allocation2 + $0xe8] sm:$0xff] %v895_v12  ;;  %v2267_v13 = vpop.f32.mrb[28].mxu0  ;;  %v2315_v14 = vpop.f32.mrb[28].mxu1  ;;  %2354 = vmatpush3.bf16.msra.mxu0 (!%p2014_p3), %v2620_v44  ;;  %v2633_v5 = vld [vmem:[%s3450_s4 + $0x60] sm:$0xff] (!%p2014_p3)   ;;  %v2635_v9 = vld [vmem:[%s3450_s4 + $0x68] sm:$0xff] (!%p2014_p3)  }
 0x251   : > { %v2268_v16 = vpop.f32.mrb[29].mxu0  ;;  %v2316_v18 = vpop.f32.mrb[29].mxu1  ;;  %2421 = vmatpush3.bf16.msra.mxu1 (!%p2014_p3), %v2620_v44  ;;  %2355 = vmatprep.subr.bf16.mxu0 (!%p2014_p3), %v2621_v47  ;;  %v1308_v10 = vld [vmem:[%s3461_s27 + $0xa8] sm:$0xff] (!%p2014_p3)  ;;  %v1307_v11 = vld [vmem:[%s3461_s27 + $0xa0] sm:$0xff] (!%p2014_p3)  ;;  %v2636_v12 = vld [vmem:[%s3450_s4 + $0x30] sm:$0xff] (!%p2014_p3)  }
 0x252   : > { %v2269_v19 = vadd.f32 %v2268_v16, %v2267_v13  ;;  %v2317_v20 = vadd.f32 %v2316_v18, %v2315_v14  ;;  %v2270_v21 = vpop.f32.mrb[30].mxu0  ;;  %v2318_v22 = vpop.f32.mrb[30].mxu1  ;;  %933 = sbr.rel (%p2014_p3) target bundleno = 854 (0x356), region = 76  ;;  %2414 = vmatprep.subr.bf16.mxu1 (!%p2014_p3), %v2621_v47  ;;  %v2637_v13 = vld [vmem:[%s3450_s4 + $0x70] sm:$0xff] (!%p2014_p3)   ;;  %v1310_v14 = vld [vmem:[%s3461_s27 + $0xb8] sm:$0xff] (!%p2014_p3)  ;;  %v1312_v18 = vld [vmem:[%s3461_s27 + $0xc8] sm:$0xff] (!%p2014_p3) }
 0x253   : > { %v2271_v24 = vpop.f32.mrb[31].mxu0  ;;  %v2319_v26 = vpop.f32.mrb[31].mxu1  ;;  %1398 = vperm.xlu1 (!%p2014_p3), %2615, %v1296_v51   ;;  %1393 = vperm.xlu0 (!%p2014_p3), %2614, %v1295_v52   ;;  %v2638_v16 = vld [vmem:[%s3450_s4 + $0x38] sm:$0xff] (!%p2014_p3)   ;;  %v1337_v51 = vld [vmem:[#allocation2 + $0x90] sm:$0xff] (!%p2014_p3)  ;;  %v1319_v52 = vld [vmem:[#allocation2] sm:$0xff] (!%p2014_p3) }
 0x254   : > { %v880_v27 = vadd.f32 %v2269_v19, %v559_v15  ;;  %v896_v28 = vadd.f32 %v2317_v20, %v575_v17  ;;  %v2272_v29 = vadd.f32 %v2271_v24, %v2270_v21  ;;  %v2320_v30 = vadd.f32 %v2319_v26, %v2318_v22  ;;  %2356 = vmatpush3.bf16.msra.mxu0 (!%p2014_p3), %v2621_v47  ;;  %v1309_v15 = vld [vmem:[%s3461_s27 + $0xb0] sm:$0xff] (!%p2014_p3)  ;;  %v2639_v17 = vld [vmem:[%s3450_s4 + $0x78] sm:$0xff] (!%p2014_p3)   ;;  %v1311_v19 = vld [vmem:[%s3461_s27 + $0xc0] sm:$0xff] (!%p2014_p3) }
 0x255   : > { %2422 = vmatpush3.bf16.msra.mxu1 (!%p2014_p3), %v2621_v47  ;;  %2357 = vmatprep.subr.bf16.mxu0 (!%p2014_p3), %v2622_v50  ;;  %v1314_v20 = vld [vmem:[%s3461_s27 + $0xd8] sm:$0xff] (!%p2014_p3)  ;;  %v1313_v21 = vld [vmem:[%s3461_s27 + $0xd0] sm:$0xff] (!%p2014_p3)  ;;  %v1316_v22 = vld [vmem:[%s3461_s27 + $0xe8] sm:$0xff] (!%p2014_p3) }
 0x256   : > { %912 = vst [vmem:[#allocation2 + $0x70] sm:$0xff] %v880_v27  ;;  %928 = vst [vmem:[#allocation2 + $0xf0] sm:$0xff] %v896_v28  ;;  %v881_v31 = vadd.f32 %v2272_v29, %v560_v23  ;;  %v897_v32 = vadd.f32 %v2320_v30, %v576_v25  ;;  %2415 = vmatprep.subr.bf16.mxu1 (!%p2014_p3), %v2622_v50  ;;  %v1315_v23 = vld [vmem:[%s3461_s27 + $0xe0] sm:$0xff] (!%p2014_p3)  ;;  %v1318_v24 = vld [vmem:[%s3461_s27 + $0xf8] sm:$0xff] (!%p2014_p3) }
 0x257   : > { %1408 = vperm.xlu1 (!%p2014_p3), %2615, %v1298_v54   ;;  %1403 = vperm.xlu0 (!%p2014_p3), %2614, %v1297_v55   ;;  %v1317_v25 = vld [vmem:[%s3461_s27 + $0xf0] sm:$0xff] (!%p2014_p3)  ;;  %v1322_v54 = vld [vmem:[#allocation2 + $0x18] sm:$0xff] (!%p2014_p3) }
 0x258   : > { %913 = vst [vmem:[#allocation2 + $0x78] sm:$0xff] %v881_v31  ;;  %929 = vst [vmem:[#allocation2 + $0xf8] sm:$0xff] %v897_v32  ;;  %2358 = vmatpush3.bf16.msra.mxu0 (!%p2014_p3), %v2622_v50  ;;  %v1338_v55 = vld [vmem:[#allocation2 + $0x98] sm:$0xff] (!%p2014_p3) }
 0x259   : > { %2423 = vmatpush3.bf16.msra.mxu1 %v2622_v50  ;;  %2359 = vmatprep.subr.bf16.mxu0 %v2623_v53  ;;  %v1321_v50 = vld [vmem:[#allocation2 + $0x10] sm:$0xff] }
 0x25a   : > { %2416 = vmatprep.subr.bf16.mxu1 %v2623_v53 }
 0x25b   : > { %1418 = vperm.xlu1 %2615, %v1300_v58   ;;  %1413 = vperm.xlu0 %2614, %v1299_v59   ;;  %v1336_v58 = vld [vmem:[#allocation2 + $0x88] sm:$0xff] }
 0x25c   : > { %2360 = vmatpush3.bf16.msra.mxu0 %v2623_v53 }
 0x25d   : > { %2424 = vmatpush3.bf16.msra.mxu1 %v2623_v53  ;;  %v1335_v53 = vld [vmem:[#allocation2 + $0x80] sm:$0xff] }
 0x25f   : > { %2362 = vmatmul.mubr.bf16.vlgmr.msra.gmra.mrb[0].mxu0 %v2626_v56  ;;  %1428 = vperm.xlu1 %2615, %v1302_v62  }
 0x260   : > { %2378 = vmatmul.mubr.bf16.vlgmr.msra.gmra.mrb[0].mxu1 %v2627_v57  ;;  %2365 = vmatprep.mubr.bf16.mxu0 %v2628_v60  ;;  %v1320_v57 = vld [vmem:[#allocation2 + $0x8] sm:$0xff] }
 0x261   : > { %2381 = vmatprep.mubr.bf16.mxu1 %v2629_v61  ;;  %1423 = vperm.xlu0 %2614, %v1301_v63  }
 0x263   : > { %1438 = vperm.xlu1 %2615, %v1304_v2  }
 0x265   : > { %1433 = vperm.xlu0 %2614, %v1303_v3  }
 0x267   : > { %2366 = vmatmul.mubr.bf16.gmra.mrb[4].mxu0 %v2630_v0  ;;  %1448 = vperm.xlu1 %2615, %v1306_v6  }
 0x268   : > { %2382 = vmatmul.mubr.bf16.gmra.mrb[4].mxu1 %v2631_v1  ;;  %2369 = vmatprep.mubr.bf16.mxu0 %v2632_v4 }
 0x269   : > { %2385 = vmatprep.mubr.bf16.mxu1 %v2633_v5  ;;  %1443 = vperm.xlu0 %2614, %v1305_v7  }
 0x26b   : > { %1458 = vperm.xlu1 %2615, %v1308_v10   ;;  %v3587_v10 = vld [vmem:[#allocation12] ss:$0 sm:$0xff] }
 0x26d   : > { %1453 = vperm.xlu0 %2614, %v1307_v11  }
 0x26f   : > { %2370 = vmatmul.mubr.bf16.gmra.mrb[8].mxu0 %v2634_v8  ;;  %1468 = vperm.xlu1 %2615, %v1310_v14  }
 0x270   : > { %2386 = vmatmul.mubr.bf16.gmra.mrb[8].mxu1 %v2635_v9  ;;  %2373 = vmatprep.mubr.bf16.mxu0 %v2636_v12 }
 0x271   : > { %2389 = vmatprep.mubr.bf16.mxu1 %v2637_v13  ;;  %1463 = vperm.xlu0 %2614, %v1309_v15  }
 0x273   : > { %1478 = vperm.xlu1 %2615, %v1312_v18  }
 0x275   : > { %1473 = vperm.xlu0 %2614, %v1311_v19   ;;  %v1325_v19 = vld [vmem:[#allocation2 + $0x30] sm:$0xff] }
 0x277   : > { %2374 = vmatmul.mubr.bf16.gmra.mrb[12].mxu0 %v2638_v16  ;;  %1488 = vperm.xlu1 %2615, %v1314_v20   ;;  %v1341_v20 = vld [vmem:[#allocation2 + $0xb0] sm:$0xff] }
 0x278   : > { %2390 = vmatmul.mubr.bf16.gmra.mrb[12].mxu1 %v2639_v17 }
 0x279   : > { %1483 = vperm.xlu0 %2614, %v1313_v21  }
 0x27b   : > { %1498 = vperm.xlu1 %2615, %v1316_v22  }
 0x27d   : > { %1493 = vperm.xlu0 %2614, %v1315_v23   ;;  %v1323_v23 = vld [vmem:[#allocation2 + $0x20] sm:$0xff] }
 0x27f   : > { %1508 = vperm.xlu1 %2615, %v1318_v24   ;;  %v1339_v24 = vld [vmem:[#allocation2 + $0xa0] sm:$0xff] }
 0x281   : > { %1503 = vperm.xlu0 %2614, %v1317_v25  }
 0x2c2   : > { %v1364_v26 = vpop.permute.xlu1 %1363  ;;  %v1354_v27 = vpop.permute.xlu0 %1353 }
 0x2c3   : > { %v1513_v56 = vmul.f32 %v1364_v26, %v1321_v50  ;;  %v1511_v62 = vmul.f32 %v1354_v27, %v1319_v52 }
 0x2c6   : > { %v1369_v28 = vpop.permute.xlu1 %1368  ;;  %v1359_v29 = vpop.permute.xlu0 %1358 }
 0x2c7   : > { %v1514_v2 = vmul.f32 %v1369_v28, %v1322_v54  ;;  %v1512_v8 = vmul.f32 %v1359_v29, %v1320_v57  ;;  %v1326_v29 = vld [vmem:[#allocation2 + $0x38] sm:$0xff] }
 0x2ca   : > { %v3555_v30 = vpop.permute.xlu1 %1378  ;;  %v3557_v31 = vpop.permute.xlu0 %1373 }
 0x2ce   : > { %v3559_v32 = vpop.permute.xlu1 %1388  ;;  %v3561_v33 = vpop.permute.xlu0 %1383 }
 0x2cf   : > { %v1517_v52 = vmul.f32 %v3561_v33, %v1325_v19  ;;  %v1343_v19 = vld [vmem:[#allocation2 + $0xc0] sm:$0xff] }
 0x2d2   : > { %v3563_v34 = vpop.permute.xlu1 %1398  ;;  %v3565_v35 = vpop.permute.xlu0 %1393 }
 0x2d6   : > { %v3567_v36 = vpop.permute.xlu1 %1408  ;;  %v3569_v37 = vpop.permute.xlu0 %1403 }
 0x2da   : > { %v3571_v38 = vpop.permute.xlu1 %1418  ;;  %v3573_v39 = vpop.permute.xlu0 %1413 }
 0x2de   : > { %v3575_v40 = vpop.permute.xlu1 %1428 }
 0x2e0   : > { %v3577_v41 = vpop.permute.xlu0 %1423 }
 0x2e2   : > { %v1439_v42 = vpop.permute.xlu1 %1438 }
 0x2e3   : > { %v1528_v9 = vmul.f32 %v1439_v42, %v1336_v58  ;;  %v1342_v42 = vld [vmem:[#allocation2 + $0xb8] sm:$0xff] }
 0x2e4   : > { %v1434_v43 = vpop.permute.xlu0 %1433 }
 0x2e5   : > { %v1527_v63 = vmul.f32 %v1434_v43, %v1335_v53  ;;  %v1340_v53 = vld [vmem:[#allocation2 + $0xa8] sm:$0xff] }
 0x2e6   : > { %v1449_v44 = vpop.permute.xlu1 %1448 }
 0x2e7   : > { %v1530_v3 = vmul.f32 %v1449_v44, %v1338_v55 }
 0x2e8   : > { %v1444_v45 = vpop.permute.xlu0 %1443 }
 0x2e9   : > { %v1529_v59 = vmul.f32 %v1444_v45, %v1337_v51  ;;  %v1324_v51 = vld [vmem:[#allocation2 + $0x28] sm:$0xff] }
 0x2ea   : > { %v3579_v46 = vpop.permute.xlu1 %1458 }
 0x2ec   : > { %v1454_v47 = vpop.permute.xlu0 %1453 }
 0x2ee   : > { %v3581_v48 = vpop.permute.xlu1 %1468 }
 0x2ef   : > { %v1534_v33 = vmul.f32 %v3581_v48, %v1342_v42 }
 0x2f0   : > { %v1464_v49 = vpop.permute.xlu0 %1463 }
 0x2f1   : > { %v1533_v54 = vmul.f32 %v1464_v49, %v1341_v20 }
 0x2f2   : > { %v3583_v60 = vpop.permute.xlu1 %1478 }
 0x2f4   : > { %v3585_v61 = vpop.permute.xlu0 %1473 }
 0x2f6   : > { %v1489_v55 = vpop.permute.xlu1 %1488 }
 0x332   : > { %v2363_v0 = vpop.f32.mrb[0].mxu0 }
 0x333   : > { %v2379_v1 = vpop.f32.mrb[0].mxu1  ;;  %v1545_v4 = vadd.f32 %v2363_v0, %v1513_v56  ;;  %v1160_v6 = vpop.f32.mrb[1].mxu0 }
 0x334   : > { %v1561_v5 = vadd.f32 %v2379_v1, %v1529_v59  ;;  %v1224_v7 = vpop.f32.mrb[1].mxu1  ;;  %v1543_v11 = vadd.f32 %v1511_v62, %v1160_v6  ;;  %v2364_v13 = vpop.f32.mrb[2].mxu0  ;;  %v1515_v59 = vmul.f32 %v3557_v31, %v1323_v23  ;;  %v1531_v62 = vmul.f32 %v1454_v47, %v1339_v24  ;;  %v1346_v23 = vld [vmem:[#allocation2 + $0xd8] sm:$0xff] }
 0x335   : > { %v1559_v12 = vadd.f32 %v1527_v63, %v1224_v7  ;;  %v2380_v14 = vpop.f32.mrb[2].mxu1  ;;  %v1546_v15 = vadd.f32 %v2364_v13, %v1514_v2  ;;  %v1163_v17 = vpop.f32.mrb[3].mxu0  ;;  %v1584_v25 = vadd.f32 %v3587_v10, %v1545_v4  ;;  %v1516_v7 = vmul.f32 %v3555_v30, %v1324_v51 }
 0x336   : > { %v1562_v16 = vadd.f32 %v2380_v14, %v1530_v3  ;;  %v1227_v18 = vpop.f32.mrb[3].mxu1  ;;  %v1544_v21 = vadd.f32 %v1512_v8, %v1163_v17  ;;  %v1600_v26 = vadd.f32 %v3587_v10, %v1561_v5  ;;  %v1582_v43 = vadd.f32 %v3587_v10, %v1543_v11  ;;  %v1484_v56 = vpop.permute.xlu0 %1483  ;;  %v1329_v14 = vld [vmem:[#allocation2 + $0x50] sm:$0xff] }
 0x337   : > { %v1560_v22 = vadd.f32 %v1528_v9, %v1227_v18  ;;  %v1585_v27 = vadd.f32 %v3587_v10, %v1546_v15  ;;  %v1598_v44 = vadd.f32 %v3587_v10, %v1559_v12  ;;  %v1518_v3 = vmul.f32 %v3559_v32, %v1326_v29  ;;  %v1345_v15 = vld [vmem:[#allocation2 + $0xd0] sm:$0xff]  ;;  %v1327_v18 = vld [vmem:[#allocation2 + $0x40] sm:$0xff]  ;;  %v1328_v29 = vld [vmem:[#allocation2 + $0x48] sm:$0xff] }
 0x338   : > { %v1601_v28 = vadd.f32 %v3587_v10, %v1562_v16  ;;  %v1583_v45 = vadd.f32 %v3587_v10, %v1544_v21  ;;  %v1532_v31 = vmul.f32 %v3579_v46, %v1340_v53  ;;  %v1521_v42 = vmul.f32 %v3569_v37, %v1329_v14 }
 0x339   : > { %v1599_v50 = vadd.f32 %v3587_v10, %v1560_v22  ;;  %v2122_v57 = vpack.c.bf16 %v1585_v27, %v1584_v25  ;;  %v1330_v22 = vld [vmem:[#allocation2 + $0x58] sm:$0xff]  ;;  %v1535_v53 = vmul.f32 %v3585_v61, %v1343_v19  ;;  %v1332_v19 = vld [vmem:[#allocation2 + $0x68] sm:$0xff] }
 0x33a   : > { %v2162_v58 = vpack.c.bf16 %v1601_v28, %v1600_v26  ;;  %v2117_v63 = vpack.c.bf16 %v1583_v45, %v1582_v43  ;;  %v2367_v1 = vpop.f32.mrb[4].mxu0  ;;  %v3611_v24 = vpop.permute.xlu0 %1493  ;;  %v1344_v43 = vld [vmem:[#allocation2 + $0xc8] sm:$0xff] }
 0x33b   : > { %v2157_v0 = vpack.c.bf16 %v1599_v50, %v1598_v44  ;;  %v2383_v2 = vpop.f32.mrb[4].mxu1  ;;  %2194 = vst [vmem:[%s3471_s19 + $0x8] sm:$0xff] %v2122_v57   ;;  %v1549_v49 = vadd.f32 %v2367_v1, %v1517_v52  ;;  %v1176_v5 = vpop.f32.mrb[5].mxu0  ;;  %v1537_v44 = vmul.f32 %v1484_v56, %v1345_v15  ;;  %v1519_v52 = vmul.f32 %v3565_v35, %v1327_v18 }
 0x33c   : > { %2202 = vst [vmem:[%s3471_s19 + $0x48] sm:$0xff] %v2162_v58   ;;  %v1565_v4 = vadd.f32 %v2383_v2, %v1533_v54  ;;  %v1240_v6 = vpop.f32.mrb[5].mxu1  ;;  %2118 = vst [vmem:[%s3471_s19] sm:$0xff] %v2117_v63   ;;  %v1547_v47 = vadd.f32 %v1515_v59, %v1176_v5  ;;  %v2368_v9 = vpop.f32.mrb[6].mxu0  ;;  %v1538_v63 = vmul.f32 %v1489_v55, %v1346_v23 }
 0x33d   : > { %2201 = vst [vmem:[%s3471_s19 + $0x40] sm:$0xff] %v2157_v0   ;;  %v1563_v8 = vadd.f32 %v1531_v62, %v1240_v6  ;;  %v2384_v11 = vpop.f32.mrb[6].mxu1  ;;  %v1550_v12 = vadd.f32 %v2368_v9, %v1518_v3  ;;  %v1179_v13 = vpop.f32.mrb[7].mxu0  ;;  %v1588_v30 = vadd.f32 %v3587_v10, %v1549_v49  ;;  %v1522_v62 = vmul.f32 %v3567_v36, %v1330_v22  ;;  %v1333_v6 = vld [vmem:[#allocation2 + $0x70] sm:$0xff]  ;;  %v1331_v9 = vld [vmem:[#allocation2 + $0x60] sm:$0xff] }
 0x33e   : > { %v1566_v32 = vadd.f32 %v2384_v11, %v1534_v33  ;;  %v1243_v48 = vpop.f32.mrb[7].mxu1  ;;  %v1548_v16 = vadd.f32 %v1516_v7, %v1179_v13  ;;  %v1604_v46 = vadd.f32 %v3587_v10, %v1565_v4  ;;  %v1586_v25 = vadd.f32 %v3587_v10, %v1547_v47  ;;  %v3618_v45 = vpop.permute.xlu1 %1498  ;;  %v1349_v7 = vld [vmem:[#allocation2 + $0xf0] sm:$0xff]  ;;  %v1347_v11 = vld [vmem:[#allocation2 + $0xe0] sm:$0xff]  ;;  %v1334_v13 = vld [vmem:[#allocation2 + $0x78] sm:$0xff] }
 0x33f   : > { %v1564_v17 = vadd.f32 %v1532_v31, %v1243_v48  ;;  %v1589_v20 = vadd.f32 %v3587_v10, %v1550_v12  ;;  %v1602_v26 = vadd.f32 %v3587_v10, %v1563_v8  ;;  %v1520_v2 = vmul.f32 %v3563_v34, %v1328_v29  ;;  %v1504_v31 = vpop.permute.xlu0 %1503  ;;  %v1350_v48 = vld [vmem:[#allocation2 + $0xf8] sm:$0xff] }
 0x340   : > { %v1605_v21 = vadd.f32 %v3587_v10, %v1566_v32  ;;  %v1587_v27 = vadd.f32 %v3587_v10, %v1548_v16  ;;  %v1536_v35 = vmul.f32 %v3583_v60, %v1344_v43  ;;  %v1523_v23 = vmul.f32 %v3573_v39, %v1331_v9 }
 0x341   : > { %v1603_v28 = vadd.f32 %v3587_v10, %v1564_v17  ;;  %v2132_v50 = vpack.c.bf16 %v1589_v20, %v1588_v30  ;;  %v1525_v30 = vmul.f32 %v3577_v41, %v1333_v6  ;;  %v1541_v20 = vmul.f32 %v1504_v31, %v1349_v7 }
 0x342   : > { %v2172_v51 = vpack.c.bf16 %v1605_v21, %v1604_v46  ;;  %v2127_v54 = vpack.c.bf16 %v1587_v27, %v1586_v25  ;;  %v2371_v58 = vpop.f32.mrb[8].mxu0  ;;  %v1509_v14 = vpop.permute.xlu1 %1508  ;;  %v1348_v46 = vld [vmem:[#allocation2 + $0xe8] sm:$0xff]  ;;  %v1539_v25 = vmul.f32 %v3611_v24, %v1347_v11 }
 0x343   : > { %v2167_v57 = vpack.c.bf16 %v1603_v28, %v1602_v26  ;;  %v2387_v59 = vpop.f32.mrb[8].mxu1  ;;  %2196 = vst [vmem:[%s3471_s19 + $0x18] sm:$0xff] %v2132_v50   ;;  %v1553_v37 = vadd.f32 %v2371_v58, %v1521_v42  ;;  %v1192_v0 = vpop.f32.mrb[9].mxu0  ;;  %v1526_v42 = vmul.f32 %v3575_v40, %v1334_v13  ;;  %v1542_v43 = vmul.f32 %v1509_v14, %v1350_v48 }
 0x344   : > { %2204 = vst [vmem:[%s3471_s19 + $0x58] sm:$0xff] %v2172_v51   ;;  %v1569_v56 = vadd.f32 %v2387_v59, %v1537_v44  ;;  %v1256_v1 = vpop.f32.mrb[9].mxu1  ;;  %2195 = vst [vmem:[%s3471_s19 + $0x10] sm:$0xff] %v2127_v54   ;;  %v1551_v61 = vadd.f32 %v1519_v52, %v1192_v0  ;;  %v2372_v33 = vpop.f32.mrb[10].mxu0  ;;  %v1524_v52 = vmul.f32 %v3571_v38, %v1332_v19 }
 0x345   : > { %2203 = vst [vmem:[%s3471_s19 + $0x50] sm:$0xff] %v2167_v57   ;;  %v1567_v3 = vadd.f32 %v1535_v53, %v1256_v1  ;;  %v2388_v49 = vpop.f32.mrb[10].mxu1  ;;  %v1554_v4 = vadd.f32 %v2372_v33, %v1522_v62  ;;  %v1195_v36 = vpop.f32.mrb[11].mxu0  ;;  %v1592_v34 = vadd.f32 %v3587_v10, %v1553_v37  ;;  %v1540_v39 = vmul.f32 %v3618_v45, %v1348_v46 }
 0x346   : > { %v1570_v5 = vadd.f32 %v2388_v49, %v1538_v63  ;;  %v1259_v55 = vpop.f32.mrb[11].mxu1  ;;  %v1552_v47 = vadd.f32 %v1520_v2, %v1195_v36  ;;  %v1608_v60 = vadd.f32 %v3587_v10, %v1569_v56  ;;  %v1590_v15 = vadd.f32 %v3587_v10, %v1551_v61 }
 0x347   : > { %v1568_v8 = vadd.f32 %v1536_v35, %v1259_v55  ;;  %v1593_v12 = vadd.f32 %v3587_v10, %v1554_v4  ;;  %v1606_v16 = vadd.f32 %v3587_v10, %v1567_v3 }
 0x348   : > { %v1609_v32 = vadd.f32 %v3587_v10, %v1570_v5  ;;  %v1591_v17 = vadd.f32 %v3587_v10, %v1552_v47 }
 0x349   : > { %v1607_v18 = vadd.f32 %v3587_v10, %v1568_v8  ;;  %v2142_v21 = vpack.c.bf16 %v1593_v12, %v1592_v34 }
 0x34a   : > { %v2182_v22 = vpack.c.bf16 %v1609_v32, %v1608_v60  ;;  %v2137_v26 = vpack.c.bf16 %v1591_v17, %v1590_v15  ;;  %v2375_v28 = vpop.f32.mrb[12].mxu0 }
 0x34b   : > { %v2177_v27 = vpack.c.bf16 %v1607_v18, %v1606_v16  ;;  %v2391_v29 = vpop.f32.mrb[12].mxu1  ;;  %2198 = vst [vmem:[%s3471_s19 + $0x28] sm:$0xff] %v2142_v21   ;;  %v1557_v41 = vadd.f32 %v2375_v28, %v1525_v30  ;;  %v1208_v50 = vpop.f32.mrb[13].mxu0 }
 0x34c   : > { %2206 = vst [vmem:[%s3471_s19 + $0x68] sm:$0xff] %v2182_v22   ;;  %v1573_v44 = vadd.f32 %v2391_v29, %v1541_v20  ;;  %v1272_v51 = vpop.f32.mrb[13].mxu1  ;;  %2197 = vst [vmem:[%s3471_s19 + $0x20] sm:$0xff] %v2137_v26   ;;  %v1555_v24 = vadd.f32 %v1523_v23, %v1208_v50  ;;  %v2376_v54 = vpop.f32.mrb[14].mxu0 }
 0x34d   : > { %2205 = vst [vmem:[%s3471_s19 + $0x60] sm:$0xff] %v2177_v27   ;;  %v1571_v53 = vadd.f32 %v1539_v25, %v1272_v51  ;;  %v2392_v57 = vpop.f32.mrb[14].mxu1  ;;  %v1558_v58 = vadd.f32 %v2376_v54, %v1526_v42  ;;  %v1211_v40 = vpop.f32.mrb[15].mxu0  ;;  %v1596_v38 = vadd.f32 %v3587_v10, %v1557_v41 }
 0x34e   : > { %v1574_v59 = vadd.f32 %v2392_v57, %v1542_v43  ;;  %v1275_v62 = vpop.f32.mrb[15].mxu1  ;;  %v1556_v63 = vadd.f32 %v1524_v52, %v1211_v40  ;;  %v1612_v45 = vadd.f32 %v3587_v10, %v1573_v44  ;;  %v1594_v1 = vadd.f32 %v3587_v10, %v1555_v24 }
 0x34f   : > { %v1572_v37 = vadd.f32 %v1540_v39, %v1275_v62  ;;  %v1597_v56 = vadd.f32 %v3587_v10, %v1558_v58  ;;  %v1610_v2 = vadd.f32 %v3587_v10, %v1571_v53 }
 0x350   : > { %v1613_v0 = vadd.f32 %v3587_v10, %v1574_v59  ;;  %v1595_v35 = vadd.f32 %v3587_v10, %v1556_v63 }
 0x351   : > { %v1611_v61 = vadd.f32 %v3587_v10, %v1572_v37  ;;  %v2152_v3 = vpack.c.bf16 %v1597_v56, %v1596_v38 }
 0x352   : > { %v2192_v33 = vpack.c.bf16 %v1613_v0, %v1612_v45  ;;  %v2147_v49 = vpack.c.bf16 %v1595_v35, %v1594_v1 }
 0x353   : > { %v2187_v4 = vpack.c.bf16 %v1611_v61, %v1610_v2  ;;  %2200 = vst [vmem:[%s3471_s19 + $0x38] sm:$0xff] %v2152_v3  }
 0x354   : > { %2208 = vst [vmem:[%s3471_s19 + $0x78] sm:$0xff] %v2192_v33   ;;  %2199 = vst [vmem:[%s3471_s19 + $0x30] sm:$0xff] %v2147_v49  }
 0x355   : > { %2207 = vst [vmem:[%s3471_s19 + $0x70] sm:$0xff] %v2187_v4  }
 0x356 PF: > { %s3830_s1 = sld [smem:[#allocation24_spill]]  ;;  %s3831_s13 = sld [smem:[#allocation36_spill]] }
 0x357   : > { %s1789_s16 = sshll.u32 %s3471_s19, 4  ;;  %s1775_s20 = scalar_lea.sflag [#allocation5], %s3447_s21  ;;  %s3666_s16 = int_to_ptr.vmem [resolvable:$true] %s1789_s16 }
 0x358   : > { %s2816_s28 = scalar_lea.vmem %s3666_s16, 2048  ;;  %s2999_s4 = smov [#allocation13]  }
 0x359   : > { %p2817_p13 = scmp.ne.s32.totalorder %s3666_s16, %s2816_s28  ;;  %s2820_s14 = sshll.u32 %s2999_s4, 4  ;;  %s2821_s14 = int_to_ptr.vmem [resolvable:$false] %s2820_s14 }
 0x35a   : > { %s2822_s27 = scalar_lea.vmem %s2821_s14, 4096  ;;  %p2823_p10 = scmp.lt.s32.totalorder %s3666_s16, %s2821_s14 }
 0x35b   : > { %p2818_p7 = pnand %p2817_p13, %p3348_p12  ;;  %p2824_p5 = scmp.lt.s32.totalorder %s2822_s27, %s2816_s28 }
 0x35c   : > { %s2113_s7 = sshll.u32 %s3830_s1, 11 }
 0x35d   : > { %s3663_s30 = scalar_lea.hbm %s3831_s13, %s2113_s7  ;;  %p2819_p0 = pneg %p2818_p7 }
 0x35e   : > { %p2825_p9 = por %p2824_p5, %p2823_p10 }
 0x360   : > { %p2826_p4 = pnand %p2825_p9, %p2819_p0 }
 0x362   : > { %2829 = shalt.err (!%p2826_p4)
}
 0x363   : > { %s2830_s19 = scalar_lea.hbm %s3663_s30, 2048  ;;  %s2834_s1 = scalar_lea.hbm %s3831_s13, 4096 }
 0x364   : > { %p2831_p6 = scmp.ne.s32.totalorder %s3663_s30, %s2830_s19  ;;  %p2835_p8 = scmp.lt.u32.totalorder %s3663_s30, %s3831_s13 }
 0x365   : > { %p2836_p11 = scmp.lt.u32.totalorder %s2834_s1, %s2830_s19  ;;  %p2838_p13 = scmp.lt.u32.totalorder %s2830_s19, %s3663_s30 }
 0x366   : > { %p2832_p2 = pnand %p2831_p6, %p3348_p12 }
 0x367   : > { %p2837_p3 = por %p2836_p11, %p2835_p8 }
 0x368   : > { %p2833_p1 = pneg %p2832_p2 }
 0x369   : > { %p2839_p7 = por %p2838_p13, %p2837_p3 }
 0x36b   : > { %p2840_p0 = pnand %p2839_p7, %p2833_p1 }
 0x36d   : > { %2843 = shalt.err (!%p2840_p0)
}
 0x36e   : > { %s3000_s5 = smov 64   ;;  %s3001_s28 = smov 4  }
 0x36f   : > { %2441 = dma.vmem_to_hbm [thread:$0]  (%p3348_p12), %s3666_s16, 2048, %s3663_s30, %s1775_s20, %s3000_s5, %s3000_s5, %s3001_s28  }
 0x370 PF: > { %s3832_s4 = sld [smem:[#allocation21_spill]]  ;;  %s3833_s14 = sld [smem:[#allocation28_spill]] }
 0x371   : > { %p2472_p10 = scmp.ge.s32.totalorder %s2982_s10, 2 }
 0x376   : > { %s1804_s27 = sand.u32 1, %s3832_s4   ;;  %p3834_p5 = scmp.ne.s32.totalorder %s3833_s14, 0 }
 0x377   : > { %s1805_s19 = scalar_lea.sflag [#allocation5], %s1804_s27 }
 0x378   : > { %p2464_p9 = pnand %p2472_p10, %p3834_p5 }
 0x37a   : > { %2925 = dma.done.wait (!%p2464_p9), %s1805_s19, 2048  }
 0x37b   : > { %2927 = vsyncadd (!%p2464_p9), %s1805_s19, 4294965248  ;;  %s26_s10 = sadd.s32 1, %s2982_s10   ;;  %s3836_s27 = sld [smem:[#allocation22_spill]] }
 0x37c   : > { %p3697_p4 = scmp.ge.s32.totalorder %s26_s10, 6   ;;  %s3837_s18 = smov %s3205_s24 }
 0x37d   : > { %s3838_s16 = sld [smem:[#allocation30_spill]]  ;;  %s3839_s20 = sld [smem:[#allocation31_spill]] }
 0x37e   : > { %s3840_s21 = smov %s2934_s22  ;;  %s3841_s22 = smov %s2938_s23 }
 0x37f   : > { %s3842_s23 = smov %s3338_s15  ;;  %s3843_s24 = smov %s2946_s25 }
 0x380   : > { %s3844_s25 = smov %s2950_s26  ;;  %s3845_s26 = smov %s3259_s17 }
 0x381   : > { %s3846_s28 = smov %s2962_s29  ;;  %s3847_s29 = smov %s3837_s18 }
 0x382   : > { %s3848_s30 = smov %s2974_s8  ;;  %s3849_s7 = smov %s2978_s9 }
 0x383   : > { %s3850_s8 = smov %s3838_s16  ;;  %s3851_s9 = smov %s3839_s20 }
 0x384   :  { %25 = sbr.rel (!%p3697_p4) target bundleno = 19 (0x13), region = 142 }
 0x38b   :  { %1810 = vsyncpa [#allocation4], 1 }
 0x38c   :  { %1812 = vsyncpa [#allocation4 + $0x1], 1 }
 0x38d   :  { %1813 = vsyncpa [#allocation7], 1 }
 0x38e   :  { %1815 = vsyncpa [#allocation7 + $0x1], 1 }
 0x38f   :  { %1816 = vsyncpa [#allocation10], 1 }
 0x390   :  { %1817 = vsyncpa [#allocation5], 1 }
 0x391   :  { %1819 = vsyncpa [#allocation5 + $0x1], 1 }

// kernel: graphsage_forward.6
= control target key start
LH: loop header
LB: loop body
LE: loop exit
PB: predicated region body
PF: predicated region fallthrough
CT: control target
= control target key end

     0   :  { %s3788_s0 = inlined_call_operand.hbm [shape: s8[512,512], index: 0, kind: input, shape index: {}]   ;;  %s3789_s1 = inlined_call_operand.hbm [shape: bf16[512,128], index: 1, kind: input, shape index: {}]   ;;  %s3790_s2 = inlined_call_operand.hbm [shape: bf16[512,128], index: 2, kind: input, shape index: {}]   ;;  %s3791_s3 = inlined_call_operand.hbm [shape: bf16[128,128], index: 3, kind: input, shape index: {}]   ;;  %s3792_s4 = inlined_call_operand.hbm [shape: f32[512,1], index: 4, kind: input, shape index: {}]   ;;  %s3793_s5 = inlined_call_operand.hbm [shape: f32[1,128], index: 5, kind: input, shape index: {}]   ;;  %s3794_s6 = inlined_call_operand.hbm [shape: bf16[512,128], index: 6, kind: output, shape index: {}]  }
   0x1   :  { %3817 = sst [smem:[#allocation32_spill]] %s3788_s0 }
   0x2   :  { %3818 = sst [smem:[#allocation33_spill]] %s3789_s1 }
   0x3   :  { %3819 = sst [smem:[#allocation34_spill]] %s3792_s4 }
   0x4   :  { %3820 = sst [smem:[#allocation35_spill]] %s3793_s5 }
   0x5   :  { %3821 = sst [smem:[#allocation36_spill]] %s3794_s6 }
   0x6   :  { %11 = vsyncpa [#allocation4], 0 }
   0x7   :  { %13 = vsyncpa [#allocation4 + $0x1], 0 }
   0x8   :  { %14 = vsyncpa [#allocation7], 0 }
   0x9   :  { %16 = vsyncpa [#allocation7 + $0x1], 0 }
   0xa   :  { %17 = vsyncpa [#allocation10], 0 }
   0xb   :  { %18 = vsyncpa [#allocation5], 0 }
   0xc   :  { %20 = vsyncpa [#allocation5 + $0x1], 0  ;;  %s3069_s21 = smov 0   ;;  %s3071_s22 = smov 0  }
   0xd   :  { %s3073_s23 = smov 0   ;;  %s3075_s24 = smov 0  }
   0xe   :  { %s3077_s25 = smov 0   ;;  %s3079_s26 = smov 0  }
   0xf   :  { %s3081_s27 = smov 0   ;;  %s3083_s28 = smov 0  }
  0x10   :  { %s3085_s29 = smov 0   ;;  %s3087_s30 = smov 0  }
  0x11   :  { %s3089_s7 = smov 0   ;;  %s3091_s8 = smov 0  }
  0x12   :  { %s3093_s9 = smov 0   ;;  %s3095_s10 = smov 0  }
  0x13 LB: > { %3822 = sst [smem:[#allocation21_spill]] %s2962_s21  ;;  %s3136_s11 = sadd.s32 4294967295, %s3014_s10   ;;  %s3014_s10 = sphi %s3095_s10, %s26_s10   ;;  %s3010_s9 = sphi %s3093_s9, %s3895_s9   ;;  %s3006_s8 = sphi %s3091_s8, %s3894_s8   ;;  %s3002_s7 = sphi %s3089_s7, %s3893_s7   ;;  %s2998_s30 = sphi %s3087_s30, %s3892_s30   ;;  %s2994_s29 = sphi %s3085_s29, %s3891_s29   ;;  %s2990_s28 = sphi %s3083_s28, %s3890_s28   ;;  %s2986_s27 = sphi %s3081_s27, %s3880_s27   ;;  %s2982_s26 = sphi %s3079_s26, %s3889_s26   ;;  %s2978_s25 = sphi %s3077_s25, %s3888_s25   ;;  %s2974_s24 = sphi %s3075_s24, %s3887_s24   ;;  %s2970_s23 = sphi %s3073_s23, %s3886_s23   ;;  %s2966_s22 = sphi %s3071_s22, %s3885_s22   ;;  %s2962_s21 = sphi %s3069_s21, %s3884_s21  }
  0x14   : > { %3823 = sst [smem:[#allocation22_spill]] %s2990_s28  ;;  %s2002_s12 = sadd.s32 4294967294, %s3014_s10  }
  0x15   : > { %3824 = sst [smem:[#allocation23_spill]] %s2998_s30  ;;  %p67_p0 = scmp.ne.s32.totalorder %s2990_s28, %s2986_s27 }
  0x16   : > { %3825 = sst [smem:[#allocation24_spill]] %s3002_s7  ;;  %p3798_p1 = scmp.eq.s32.totalorder %s3136_s11, 0 }
  0x17   : > { %p95_p2 = scmp.ne.s32.totalorder %s2978_s25, %s2974_s24  ;;  %p121_p3 = scmp.ne.s32.totalorder %s2966_s22, %s2962_s21 }
  0x18   : > { %p3146_p4 = por %p3798_p1, %p67_p0  ;;  %p231_p8 = scmp.eq.s32.totalorder %s2002_s12, 3 }
  0x19   : > { %p3153_p6 = por %p95_p2, %p3798_p1  ;;  %p3159_p7 = por %p121_p3, %p3798_p1 }
  0x1a   : > { %s3826_s13 = scalar_select %p3146_p4, 1, 0 }
  0x1b   : > { %s3828_s14 = scalar_select %p3153_p6, 1, 0 }
  0x1c   : > { %3827 = sst [smem:[#allocation25_spill]] %s3826_s13  ;;  %p2003_p9 = scmp.ge.s32.totalorder %s3014_s10, 1 }
  0x1d   : > { %3829 = sst [smem:[#allocation26_spill]] %s3828_s14  ;;  %p238_p10 = scmp.lt.s32.totalorder %s3014_s10, 5 }
  0x1e   : > { %s3830_s15 = scalar_select %p3159_p7, 1, 0 }
  0x1f   : > { %p3165_p11 = por %p231_p8, %p121_p3  ;;  %p3169_p12 = pnand %p2003_p9, %p238_p10 }
  0x20   : > { %3831 = sst [smem:[#allocation27_spill]] %s3830_s15  ;;  %s3016_s18 = smov [#allocation12]  }
  0x21   : > { %s3832_s16 = scalar_select %p3165_p11, 1, 0 }
  0x22   : > { %s3834_s17 = scalar_select %p3169_p12, 1, 0 }
  0x23   : > { %3833 = sst [smem:[#allocation28_spill]] %s3832_s16  ;;  %s268_s19 = sshll.u32 %s3016_s18, 4  ;;  %s269_s19 = int_to_ptr.vmem [resolvable:$true] %s268_s19 }
  0x24   : > { %3835 = sst [smem:[#allocation29_spill]] %s3834_s17  ;;  %p2475_p13 = pneg %p3169_p12 }
  0x25   : > { %s38_s24 = sadd.s32 1, %s3006_s8  ;;  %s3837_s5 = sld [smem:[#allocation35_spill]] }
  0x26   : > { %p3177_p0 = pnand %p2475_p13, %p3798_p1 }
  0x28   : > { %p3814_p3 = pneg %p3177_p0 }
  0x2b   : > { %s2672_s16 = scalar_lea.hbm %s3837_s5, 16 }
  0x2c   : > { %p2673_p2 = scmp.ne.s32.totalorder %s3837_s5, %s2672_s16  ;;  %p2679_p10 = scmp.lt.u32.totalorder %s2672_s16, %s3837_s5 }
  0x2e   : > { %p2675_p8 = pnand %p3814_p3, %p2673_p2 }
  0x30   : > { %p2676_p9 = pneg %p2675_p8 }
  0x32   : > { %p2681_p13 = pnand %p2679_p10, %p2676_p9 }
  0x34   : > { %2684 = shalt.err (!%p2681_p13)
}
  0x35   : > { %s2685_s30 = scalar_lea.vmem %s269_s19, 16  ;;  %s2692_s6 = scalar_lea.vmem %s269_s19, 32 }
  0x36   : > { %p2686_p1 = scmp.ne.s32.totalorder %s269_s19, %s2685_s30  ;;  %p2693_p7 = scmp.lt.s32.totalorder %s269_s19, %s269_s19 }
  0x37   : > { %p2694_p6 = scmp.lt.s32.totalorder %s2692_s6, %s2685_s30 }
  0x38   : > { %p2688_p5 = pnand %p2686_p1, %p3814_p3 }
  0x39   : > { %p2695_p4 = por %p2694_p6, %p2693_p7 }
  0x3a   : > { %p2689_p11 = pneg %p2688_p5 }
  0x3c   : > { %p2696_p12 = pnand %p2695_p4, %p2689_p11 }
  0x3e   : > { %2699 = shalt.err (!%p2696_p12)
}
  0x3f   : > { %2481 = dma.hbm_to_vmem [thread:$0]  (!%p3177_p0), %s3837_s5, 16, %s269_s19, [#allocation7]  }
  0x40   : > { %p39_p1 = scmp.ge.s32.totalorder %s38_s24, 2  ;;  %s45_s30 = sadd.s32 1, %s3010_s9 }
  0x41   : > { %s54_s16 = sadd.s32 1, %s2994_s29  ;;  %p61_p4 = scmp.ne.s32.totalorder %s2994_s29, %s2990_s28 }
  0x42   : > { %s3897_s24 = smov (%p39_p1, %s38_s24), 0  ;;  %s3899_s30 = smov (!%p39_p1, %s45_s30), %s3010_s9 }
  0x43   : > { %3838 = sst [smem:[#allocation30_spill]] %s3897_s24  ;;  %s3213_s27 = ssub.s32 %s3006_s8, %s3897_s24 }
  0x44   : > { %p3816_p5 = scmp.eq.s32.totalorder %s3014_s10, 0  ;;  %p47_p6 = scmp.ge.s32.totalorder %s3899_s30, 2 }
  0x45   : > { %p3815_p12 = scmp.lt.s32.totalorder %s3014_s10, 4  ;;  %s281_s18 = sand.u32 1, %s2994_s29  }
  0x46   : > { %p3219_p11 = por %p3816_p5, %p61_p4  ;;  %s3901_s30 = smov (%p47_p6, %s3899_s30), 0 }
  0x47   : > { %3840 = sst [smem:[#allocation31_spill]] %s3901_s30  ;;  %s3230_s6 = ssub.s32 %s3010_s9, %s3901_s30 }
  0x48   : > { %s51_s21 = sor.u32 %s3213_s27, %s3230_s6  ;;  %s2007_s7 = sshll.u32 %s281_s18, 7 }
  0x49   : > { %p52_p8 = scmp.eq.s32.totalorder %s51_s21, 0  ;;  %s2009_s5 = sshll.u32 %s3006_s8, 1 }
  0x4a   : > { %s2109_s15 = sshll.u32 %s3010_s9, 5  ;;  %s283_s14 = scalar_lea.vmem [#allocation3], %s2007_s7 }
  0x4b   : > { %s3237_s24 = scalar_select %p52_p8, %s2994_s29, %s54_s16  }
  0x4c   : > { %s293_s13 = sshll.u32 %s283_s14, 4  ;;  %s290_s28 = sadd.s32 %s2109_s15, %s2009_s5  ;;  %s3240_s13 = int_to_ptr.vmem [resolvable:$true] %s293_s13 }
  0x4d   : > { %s2011_s12 = sshll.u32 %s290_s28, 7  ;;  %p3246_p9 = pnand %p3815_p12, %p3219_p11 }
  0x4e   : > { %s3842_s0 = sld [smem:[#allocation32_spill]]  ;;  %s3843_s18 = sand.u32 1, %s3014_s10  }
  0x4f   : > { %s3257_s5 = scalar_lea.sflag [#allocation4], %s3843_s18  ;;  %p2702_p13 = pneg %p3246_p9 }
  0x54   : > { %s3253_s16 = scalar_lea.hbm %s3842_s0, %s2011_s12  ;;  %s2705_s15 = scalar_lea.hbm %s3842_s0, 8192 }
  0x55   : > { %s2700_s28 = scalar_lea.hbm %s3253_s16, 2048  ;;  %p2706_p6 = scmp.lt.u32.totalorder %s3253_s16, %s3842_s0 }
  0x56   : > { %p2701_p10 = scmp.ne.s32.totalorder %s3253_s16, %s2700_s28  ;;  %p2707_p11 = scmp.lt.u32.totalorder %s2705_s15, %s2700_s28 }
  0x57   : > { %p2709_p2 = scmp.lt.u32.totalorder %s2700_s28, %s3253_s16 }
  0x58   : > { %p2703_p1 = pnand %p2702_p13, %p2701_p10  ;;  %p2708_p8 = por %p2707_p11, %p2706_p6 }
  0x5a   : > { %p2704_p4 = pneg %p2703_p1  ;;  %p2710_p3 = por %p2709_p2, %p2708_p8 }
  0x5c   : > { %p2711_p12 = pnand %p2710_p3, %p2704_p4 }
  0x5e   : > { %2714 = shalt.err (!%p2711_p12)
}
  0x5f   : > { %s2715_s12 = scalar_lea.vmem %s3240_s13, 2048  ;;  %s3017_s21 = smov [#allocation3]  }
  0x60   : > { %p2716_p10 = scmp.ne.s32.totalorder %s3240_s13, %s2715_s12  ;;  %s2720_s7 = sshll.u32 %s3017_s21, 4  ;;  %s2721_s7 = int_to_ptr.vmem [resolvable:$false] %s2720_s7 }
  0x61   : > { %s2722_s18 = scalar_lea.vmem %s2721_s7, 4096  ;;  %p2723_p7 = scmp.lt.s32.totalorder %s3240_s13, %s2721_s7 }
  0x62   : > { %p2718_p1 = pnand %p2716_p10, %p2702_p13  ;;  %p2724_p6 = scmp.lt.s32.totalorder %s2722_s18, %s2715_s12 }
  0x64   : > { %p2719_p5 = pneg %p2718_p1  ;;  %p2725_p11 = por %p2724_p6, %p2723_p7 }
  0x66   : > { %p2726_p2 = pnand %p2725_p11, %p2719_p5 }
  0x68   : > { %2729 = shalt.err (!%p2726_p2)
}
  0x69   : > { %s3018_s28 = smov 512   ;;  %s3019_s4 = smov 256  }
  0x6a   : > { %s3020_s14 = smov 16   ;;  %s82_s15 = sadd.s32 1, %s2982_s26 }
  0x6b   : > { %2485 = dma.hbm_to_vmem [thread:$0]  (!%p3246_p9), %s3253_s16, 2048, %s3240_s13, %s3257_s5, %s3018_s28, %s3019_s4, %s3020_s14  }
  0x6c   : > { %p89_p3 = scmp.ne.s32.totalorder %s2982_s26, %s2978_s25  ;;  %p3844_p5 = scmp.eq.s32.totalorder %s3213_s27, 0 }
  0x6d   : > { %p3845_p7 = scmp.eq.s32.totalorder %s3014_s10, 0  ;;  %s305_s19 = sand.u32 1, %s2982_s26  }
  0x6e   : > { %s3291_s17 = scalar_select %p3844_p5, %s2982_s26, %s82_s15  }
  0x6f   : > { %p91_p12 = por %p89_p3, %p3845_p7  ;;  %s2012_s12 = sshll.u32 %s305_s19, 7 }
  0x70   : > { %s2110_s21 = sshll.u32 %s3006_s8, 11  ;;  %s3846_s1 = sld [smem:[#allocation33_spill]] }
  0x71   : > { %s307_s13 = scalar_lea.vmem [#allocation6], %s2012_s12  ;;  %p3847_p9 = scmp.lt.s32.totalorder %s3014_s10, 4 }
  0x72   : > { %s315_s30 = sshll.u32 %s307_s13, 4  ;;  %s3849_s16 = sand.u32 1, %s3014_s10   ;;  %s3308_s30 = int_to_ptr.vmem [resolvable:$true] %s315_s30 }
  0x73   : > { %p3304_p13 = pnand %p3847_p9, %p91_p12  ;;  %s3312_s28 = scalar_lea.sflag [#allocation7], %s3849_s16 }
  0x75   : > { %p2732_p8 = pneg %p3304_p13 }
  0x76   : > { %s3300_s0 = scalar_lea.hbm %s3846_s1, %s2110_s21  ;;  %s2735_s19 = scalar_lea.hbm %s3846_s1, 4096 }
  0x77   : > { %s2730_s4 = scalar_lea.hbm %s3300_s0, 2048  ;;  %p2736_p6 = scmp.lt.u32.totalorder %s3300_s0, %s3846_s1 }
  0x78   : > { %p2731_p4 = scmp.ne.s32.totalorder %s3300_s0, %s2730_s4  ;;  %p2737_p11 = scmp.lt.u32.totalorder %s2735_s19, %s2730_s4 }
  0x79   : > { %p2739_p3 = scmp.lt.u32.totalorder %s2730_s4, %s3300_s0 }
  0x7a   : > { %p2733_p10 = pnand %p2732_p8, %p2731_p4  ;;  %p2738_p2 = por %p2737_p11, %p2736_p6 }
  0x7c   : > { %p2734_p1 = pneg %p2733_p10  ;;  %p2740_p5 = por %p2739_p3, %p2738_p2 }
  0x7e   : > { %p2741_p7 = pnand %p2740_p5, %p2734_p1 }
  0x80   : > { %2744 = shalt.err (!%p2741_p7)
}
  0x81   : > { %s2745_s7 = scalar_lea.vmem %s3308_s30, 2048  ;;  %s3021_s18 = smov [#allocation6]  }
  0x82   : > { %p2746_p12 = scmp.ne.s32.totalorder %s3308_s30, %s2745_s7  ;;  %s2750_s13 = sshll.u32 %s3021_s18, 4  ;;  %s2751_s13 = int_to_ptr.vmem [resolvable:$false] %s2750_s13 }
  0x83   : > { %s2752_s16 = scalar_lea.vmem %s2751_s13, 4096  ;;  %p2753_p10 = scmp.lt.s32.totalorder %s3308_s30, %s2751_s13 }
  0x84   : > { %p2748_p9 = pnand %p2746_p12, %p2732_p8  ;;  %p2754_p6 = scmp.lt.s32.totalorder %s2752_s16, %s2745_s7 }
  0x86   : > { %p2749_p4 = pneg %p2748_p9  ;;  %p2755_p11 = por %p2754_p6, %p2753_p10 }
  0x88   : > { %p2756_p2 = pnand %p2755_p11, %p2749_p4 }
  0x8a   : > { %2759 = shalt.err (!%p2756_p2)
}
  0x8b   : > { %s3022_s4 = smov 64   ;;  %s3023_s14 = smov 4  }
  0x8c   : > { %2488 = dma.hbm_to_vmem [thread:$0]  (!%p3304_p13), %s3300_s0, 2048, %s3308_s30, %s3312_s28, %s3022_s4, %s3022_s4, %s3023_s14  }
  0x8d   : > { %s3024_s15 = smov [#allocation9]   ;;  %s108_s12 = sadd.s32 1, %s2970_s23 }
  0x8e   : > { %s252_s19 = sshll.u32 %s3024_s15, 4  ;;  %s2760_s18 = scalar_lea.hbm %s3791_s3, 1024  ;;  %s253_s19 = int_to_ptr.vmem [resolvable:$true] %s252_s19 }
  0x8f   : > { %p2761_p8 = scmp.ne.s32.totalorder %s3791_s3, %s2760_s18  ;;  %p3850_p1 = pneg %p3177_p0 }
  0x90   : > { %p2767_p13 = scmp.lt.u32.totalorder %s2760_s18, %s3791_s3 }
  0x91   : > { %p2763_p3 = pnand %p2761_p8, %p3850_p1 }
  0x93   : > { %p2764_p5 = pneg %p2763_p3 }
  0x95   : > { %p2769_p7 = pnand %p2767_p13, %p2764_p5 }
  0x97   : > { %2772 = shalt.err (!%p2769_p7)
}
  0x98   : > { %s2773_s0 = scalar_lea.vmem %s253_s19, 1024  ;;  %p3851_p9 = pmov %p3850_p1 }
  0x99   : > { %p2774_p12 = scmp.ne.s32.totalorder %s253_s19, %s2773_s0  ;;  %p2781_p6 = scmp.lt.s32.totalorder %s253_s19, %s253_s19 }
  0x9a   : > { %p2782_p11 = scmp.lt.s32.totalorder %s2773_s0, %s2773_s0 }
  0x9b   : > { %p2776_p4 = pnand %p2774_p12, %p3851_p9 }
  0x9c   : > { %p2783_p2 = por %p2782_p11, %p2781_p6 }
  0x9d   : > { %p2777_p10 = pneg %p2776_p4 }
  0x9f   : > { %p2784_p1 = pnand %p2783_p2, %p2777_p10 }
  0xa1   : > { %2787 = shalt.err (!%p2784_p1)
}
  0xa2   : > { %2478 = dma.hbm_to_vmem [thread:$0]  (!%p3177_p0), %s3791_s3, 1024, %s253_s19, [#allocation10], %s3022_s4, %s3022_s4, %s3023_s14  }
  0xa3   : > { %p3852_p8 = scmp.eq.s32.totalorder %s3230_s6, 0  ;;  %p115_p3 = scmp.ne.s32.totalorder %s2970_s23, %s2966_s22 }
  0xa4   : > { %s327_s20 = sand.u32 1, %s2970_s23   ;;  %s2111_s7 = sshll.u32 %s3010_s9, 11 }
  0xa5   : > { %s3370_s15 = scalar_select %p3852_p8, %s2970_s23, %s108_s12  }
  0xa6   : > { %s2015_s21 = sshll.u32 %s327_s20, 7  ;;  %p3853_p5 = scmp.eq.s32.totalorder %s3014_s10, 0 }
  0xa7   : > { %p3854_p7 = scmp.eq.s32.totalorder %s3136_s11, 3  ;;  %s3387_s27 = scalar_lea.hbm %s3790_s2, %s2111_s7 }
  0xa8   : > { %p117_p13 = por %p115_p3, %p3853_p5  ;;  %s329_s6 = scalar_lea.vmem [#allocation8], %s2015_s21 }
  0xa9   : > { %p3380_p12 = por %p3854_p7, %p115_p3  ;;  %s336_s19 = sshll.u32 %s329_s6, 4  ;;  %s3395_s19 = int_to_ptr.vmem [resolvable:$true] %s336_s19 }
  0xaa   : > { %p3856_p0 = scmp.lt.s32.totalorder %s3014_s10, 4  ;;  %s3397_s0 = sshll.u32 %s327_s20, 8 }
  0xab   : > { %s2788_s1 = scalar_lea.hbm %s3387_s27, 2048  ;;  %s2793_s7 = scalar_lea.hbm %s3790_s2, 4096 }
  0xac   : > { %p3391_p9 = pnand %p3856_p0, %p117_p13  ;;  %p2789_p4 = scmp.ne.s32.totalorder %s3387_s27, %s2788_s1 }
  0xad   : > { %p2794_p2 = scmp.lt.u32.totalorder %s3387_s27, %s3790_s2  ;;  %p2795_p1 = scmp.lt.u32.totalorder %s2793_s7, %s2788_s1 }
  0xae   : > { %p2790_p10 = pneg %p3391_p9  ;;  %p2797_p3 = scmp.lt.u32.totalorder %s2788_s1, %s3387_s27 }
  0xaf   : > { %p2796_p8 = por %p2795_p1, %p2794_p2 }
  0xb0   : > { %p2791_p6 = pnand %p2790_p10, %p2789_p4 }
  0xb1   : > { %p2798_p5 = por %p2797_p3, %p2796_p8 }
  0xb2   : > { %p2792_p11 = pneg %p2791_p6 }
  0xb4   : > { %p2799_p13 = pnand %p2798_p5, %p2792_p11 }
  0xb6   : > { %2802 = shalt.err (!%p2799_p13)
}
  0xb7   : > { %s2803_s20 = scalar_lea.vmem %s3395_s19, 2048  ;;  %s3025_s6 = smov [#allocation8]  }
  0xb8   : > { %p2804_p7 = scmp.ne.s32.totalorder %s3395_s19, %s2803_s20  ;;  %s2808_s30 = sshll.u32 %s3025_s6, 4  ;;  %s2809_s30 = int_to_ptr.vmem [resolvable:$false] %s2808_s30 }
  0xb9   : > { %s2810_s21 = scalar_lea.vmem %s2809_s30, 4096  ;;  %p2811_p6 = scmp.lt.s32.totalorder %s3395_s19, %s2809_s30 }
  0xba   : > { %p2806_p0 = pnand %p2804_p7, %p2790_p10  ;;  %p2812_p2 = scmp.lt.s32.totalorder %s2810_s21, %s2803_s20 }
  0xbc   : > { %p2807_p4 = pneg %p2806_p0  ;;  %p2813_p1 = por %p2812_p2, %p2811_p6 }
  0xbe   : > { %p2814_p8 = pnand %p2813_p1, %p2807_p4 }
  0xc0   : > { %2817 = shalt.err (!%p2814_p8)
}
  0xc1   : > { %2491 = dma.hbm_to_vmem [thread:$0]  (!%p3391_p9), %s3387_s27, 2048, %s3395_s19, %s3312_s28, %s3022_s4, %s3022_s4, %s3023_s14  }
  0xc2   : > { %s2112_s1 = sshll.u32 %s3010_s9, 12  ;;  %s350_s7 = scalar_lea.vmem [#allocation11], %s3397_s0 }
  0xc3   : > { %s357_s13 = sshll.u32 %s350_s7, 4  ;;  %s3858_s6 = sld [smem:[#allocation34_spill]]  ;;  %s3435_s13 = int_to_ptr.vmem [resolvable:$true] %s357_s13 }
  0xc9   : > { %s3433_s30 = scalar_lea.hbm %s3858_s6, %s2112_s1  ;;  %s2823_s14 = scalar_lea.hbm %s3858_s6, 8192 }
  0xca   : > { %s2818_s21 = scalar_lea.hbm %s3433_s30, 4096  ;;  %p2824_p13 = scmp.lt.u32.totalorder %s3433_s30, %s3858_s6 }
  0xcb   : > { %p2819_p11 = scmp.ne.s32.totalorder %s3433_s30, %s2818_s21  ;;  %p2825_p7 = scmp.lt.u32.totalorder %s2823_s14, %s2818_s21 }
  0xcc   : > { %p2827_p4 = scmp.lt.u32.totalorder %s2818_s21, %s3433_s30 }
  0xcd   : > { %p2821_p3 = pnand %p2819_p11, %p2790_p10  ;;  %p2826_p0 = por %p2825_p7, %p2824_p13 }
  0xcf   : > { %p2822_p5 = pneg %p2821_p3  ;;  %p2828_p6 = por %p2827_p4, %p2826_p0 }
  0xd1   : > { %p2829_p2 = pnand %p2828_p6, %p2822_p5 }
  0xd3   : > { %2832 = shalt.err (!%p2829_p2)
}
  0xd4   : > { %s2833_s0 = scalar_lea.vmem %s3435_s13, 4096  ;;  %s3026_s1 = smov [#allocation11]  }
  0xd5   : > { %p2834_p1 = scmp.ne.s32.totalorder %s3435_s13, %s2833_s0  ;;  %s2838_s7 = sshll.u32 %s3026_s1, 4  ;;  %s2839_s7 = int_to_ptr.vmem [resolvable:$false] %s2838_s7 }
  0xd6   : > { %s2840_s16 = scalar_lea.vmem %s2839_s7, 8192  ;;  %p2841_p3 = scmp.lt.s32.totalorder %s3435_s13, %s2839_s7 }
  0xd7   : > { %p2836_p8 = pnand %p2834_p1, %p2790_p10  ;;  %p2842_p13 = scmp.lt.s32.totalorder %s2840_s16, %s2833_s0 }
  0xd9   : > { %p2837_p11 = pneg %p2836_p8  ;;  %p2843_p7 = por %p2842_p13, %p2841_p3 }
  0xdb   : > { %p2844_p0 = pnand %p2843_p7, %p2837_p11 }
  0xdd   : > { %2847 = shalt.err (!%p2844_p0)
}
  0xde   : > { %s3027_s20 = smov 128   ;;  %s3028_s21 = smov 8  }
  0xdf   : > { %2494 = dma.hbm_to_vmem [thread:$0]  (!%p3391_p9), %s3433_s30, 4096, %s3435_s13, %s3257_s5, %s3027_s20, %s3027_s20, %s3028_s21  }
  0xe0   : > { %s3859_s28 = sld [smem:[#allocation29_spill]] }
  0xe6   : > { %p3860_p10 = scmp.ne.s32.totalorder %s3859_s28, 0 }
  0xe7   : > { %s3861_s4 = sld [smem:[#allocation22_spill]] (!%p3860_p10)  ;;  %s3862_s14 = sld [smem:[#allocation25_spill]] (!%p3860_p10) }
  0xe8   : > { %369 = sbr.rel (%p3860_p10) target bundleno = 883 (0x373), region = 44  ;;  %s371_s27 = sand.u32 (!%p3860_p10), 1, %s3136_s11  }
  0xe9   : > { %s372_s1 = scalar_lea.sflag (!%p3860_p10), [#allocation4], %s371_s27 }
  0xed   : > { %s373_s19 = sand.u32 (!%p3860_p10), 1, %s3861_s4   ;;  %p3863_p5 = scmp.ne.s32.totalorder (!%p3860_p10), %s3862_s14, 0 }
  0xee   : > { %s2022_s0 = sshll.u32 (!%p3860_p10), %s373_s19, 7 }
  0xef   : > { %s3465_s7 = scalar_lea.vmem [#allocation3], %s2022_s0 }
  0xf0   : > { %2933 = dma.done.wait (%p3863_p5), %s372_s1, 2048  }
  0xf1   : > { %2935 = vsyncadd (%p3863_p5), %s372_s1, 4294965248  ;;  %s3864_s12 = sld [smem:[#allocation26_spill]]  ;;  %s382_s5 = sand.u32 1, %s2978_s25  }
  0xf2   : > { %s2023_s13 = sshll.u32 %s382_s5, 7  ;;  %s381_s30 = scalar_lea.sflag [#allocation7], %s371_s27 }
  0xf3   : > { %s3472_s16 = scalar_lea.vmem [#allocation6], %s2023_s13 }
  0xf7   : > { %p3865_p9 = scmp.ne.s32.totalorder %s3864_s12, 0 }
  0xf9   : > { %2937 = dma.done.wait (%p3865_p9), %s381_s30, 2048  }
  0xfa   : > { %2939 = vsyncadd (%p3865_p9), %s381_s30, 4294965248  ;;  %s3866_s20 = sld [smem:[#allocation27_spill]]  ;;  %s3479_s21 = sand.u32 1, %s2966_s22  }
  0xfb   : > { %s2024_s28 = sshll.u32 %s3479_s21, 7 }
  0xfc   : > { %s3482_s4 = scalar_lea.vmem [#allocation8], %s2024_s28 }
 0x100   : > { %p3867_p4 = scmp.ne.s32.totalorder %s3866_s20, 0 }
 0x102   : > { %2941 = dma.done.wait (%p3867_p4), %s381_s30, 2048  }
 0x103   : > { %2943 = vsyncadd (%p3867_p4), %s381_s30, 4294965248  ;;  %p3868_p6 = scmp.eq.s32.totalorder %s3136_s11, 0 }
 0x105   : > { %2945 = dma.done.wait (%p3868_p6), [#allocation10], 1024   ;;  %p3869_p2 = pmov %p3868_p6 }
 0x106   : > { %s2026_s14 = sshll.u32 %s3479_s21, 8 }
 0x107   : > { %2947 = vsyncadd (%p3869_p2), [#allocation10], 4294966272  ;;  %s3493_s27 = scalar_lea.vmem [#allocation11], %s2026_s14 }
 0x108   : > { %2949 = dma.done.wait (%p3867_p4), %s372_s1, 4096  }
 0x109   : > { %2951 = vsyncadd (%p3867_p4), %s372_s1, 4294963200  ;;  %p3870_p1 = pmov %p3869_p2 }
 0x10b   : > { %2953 = dma.done.wait (%p3870_p1), [#allocation7], 16   ;;  %p3871_p8 = pmov %p3870_p1 }
 0x10c   : > { %s3503_s19 = scalar_lea.vmem [#allocation13], %s2024_s28  ;;  %s3872_s0 = sld [smem:[#allocation23_spill]] }
 0x10d   : > { %2955 = vsyncadd (%p3871_p8), [#allocation7], 4294967280 }
 0x112   : > { %p2029_p11 = scmp.ne.s32.totalorder %s3872_s0, 0 }
 0x113   : > { %v3029_v0 = vmov (!%p2029_p11), 0.0  }
 0x114   : > { %464 = sbr.rel (%p2029_p11) target bundleno = 292 (0x124), region = 72  ;;  %465 = vst [vmem:[#allocation2] sm:$0xff] (!%p2029_p11), %v3029_v0  ;;  %466 = vst [vmem:[#allocation2 + $0x8] sm:$0xff] (!%p2029_p11), %v3029_v0 }
 0x115   : > { %467 = vst [vmem:[#allocation2 + $0x10] sm:$0xff] (!%p2029_p11), %v3029_v0  ;;  %468 = vst [vmem:[#allocation2 + $0x18] sm:$0xff] (!%p2029_p11), %v3029_v0 }
 0x116   : > { %469 = vst [vmem:[#allocation2 + $0x20] sm:$0xff] (!%p2029_p11), %v3029_v0  ;;  %470 = vst [vmem:[#allocation2 + $0x28] sm:$0xff] (!%p2029_p11), %v3029_v0 }
 0x117   : > { %471 = vst [vmem:[#allocation2 + $0x30] sm:$0xff] (!%p2029_p11), %v3029_v0  ;;  %472 = vst [vmem:[#allocation2 + $0x38] sm:$0xff] (!%p2029_p11), %v3029_v0 }
 0x118   : > { %473 = vst [vmem:[#allocation2 + $0x40] sm:$0xff] (!%p2029_p11), %v3029_v0  ;;  %474 = vst [vmem:[#allocation2 + $0x48] sm:$0xff] (!%p2029_p11), %v3029_v0 }
 0x119   : > { %475 = vst [vmem:[#allocation2 + $0x50] sm:$0xff] (!%p2029_p11), %v3029_v0  ;;  %476 = vst [vmem:[#allocation2 + $0x58] sm:$0xff] (!%p2029_p11), %v3029_v0 }
 0x11a   : > { %477 = vst [vmem:[#allocation2 + $0x60] sm:$0xff] (!%p2029_p11), %v3029_v0  ;;  %478 = vst [vmem:[#allocation2 + $0x68] sm:$0xff] (!%p2029_p11), %v3029_v0 }
 0x11b   : > { %479 = vst [vmem:[#allocation2 + $0x70] sm:$0xff] %v3029_v0  ;;  %480 = vst [vmem:[#allocation2 + $0x78] sm:$0xff] %v3029_v0 }
 0x11c   : > { %481 = vst [vmem:[#allocation2 + $0x80] sm:$0xff] %v3029_v0  ;;  %482 = vst [vmem:[#allocation2 + $0x88] sm:$0xff] %v3029_v0 }
 0x11d   : > { %483 = vst [vmem:[#allocation2 + $0x90] sm:$0xff] %v3029_v0  ;;  %484 = vst [vmem:[#allocation2 + $0x98] sm:$0xff] %v3029_v0 }
 0x11e   : > { %485 = vst [vmem:[#allocation2 + $0xa0] sm:$0xff] %v3029_v0  ;;  %486 = vst [vmem:[#allocation2 + $0xa8] sm:$0xff] %v3029_v0 }
 0x11f   : > { %487 = vst [vmem:[#allocation2 + $0xb0] sm:$0xff] %v3029_v0  ;;  %488 = vst [vmem:[#allocation2 + $0xb8] sm:$0xff] %v3029_v0 }
 0x120   : > { %489 = vst [vmem:[#allocation2 + $0xc0] sm:$0xff] %v3029_v0  ;;  %490 = vst [vmem:[#allocation2 + $0xc8] sm:$0xff] %v3029_v0 }
 0x121   : > { %491 = vst [vmem:[#allocation2 + $0xd0] sm:$0xff] %v3029_v0  ;;  %492 = vst [vmem:[#allocation2 + $0xd8] sm:$0xff] %v3029_v0 }
 0x122   : > { %493 = vst [vmem:[#allocation2 + $0xe0] sm:$0xff] %v3029_v0  ;;  %494 = vst [vmem:[#allocation2 + $0xe8] sm:$0xff] %v3029_v0 }
 0x123   : > { %495 = vst [vmem:[#allocation2 + $0xf0] sm:$0xff] %v3029_v0  ;;  %496 = vst [vmem:[#allocation2 + $0xf8] sm:$0xff] %v3029_v0 }
 0x124 PF: > { %v2630_v1 = vld [vmem:[%s3472_s16 + $0x40] sm:$0xff]   ;;  %v2632_v3 = vld [vmem:[%s3472_s16 + $0x48] sm:$0xff]   ;;  %v2634_v5 = vld [vmem:[%s3472_s16 + $0x50] sm:$0xff]   ;;  %s3873_s11 = sld [smem:[#allocation23_spill]] }
 0x125   : > { %v2631_v2 = vld [vmem:[%s3472_s16] sm:$0xff]   ;;  %2241 = vmatprep.subr.bf16.mxu0 %v2630_v1  ;;  %2425 = vmatprep.subr.bf16.mxu1 %v2630_v1  ;;  %v2633_v4 = vld [vmem:[%s3472_s16 + $0x8] sm:$0xff]   ;;  %v2635_v6 = vld [vmem:[%s3472_s16 + $0x10] sm:$0xff]  }
 0x126   : > { %2242 = vmatpush3.bf16.msra.mxu0 %v2631_v2  ;;  %2433 = vmatpush3.bf16.msra.mxu1 %v2631_v2  ;;  %v2636_v7 = vld [vmem:[%s3472_s16 + $0x58] sm:$0xff]   ;;  %v2638_v9 = vld [vmem:[%s3472_s16 + $0x60] sm:$0xff]   ;;  %v2640_v11 = vld [vmem:[%s3472_s16 + $0x68] sm:$0xff]  }
 0x127   : > { %2243 = vmatprep.subr.bf16.mxu0 %v2632_v3  ;;  %2426 = vmatprep.subr.bf16.mxu1 %v2632_v3  ;;  %v2637_v8 = vld [vmem:[%s3472_s16 + $0x18] sm:$0xff]   ;;  %v2639_v10 = vld [vmem:[%s3472_s16 + $0x20] sm:$0xff]   ;;  %v498_v12 = vld [vmem:[%s3465_s7 + $0x8] sm:$0xff] }
 0x128   : > { %v506_v13 = vld [vmem:[%s3465_s7 + $0x48] sm:$0xff]  ;;  %v514_v14 = vunpack.c.l.s8.bf16 %v498_v12  ;;  %v2642_v17 = vld [vmem:[%s3472_s16 + $0x70] sm:$0xff]   ;;  %v2644_v19 = vld [vmem:[%s3472_s16 + $0x78] sm:$0xff]   ;;  %v516_v25 = vunpack.c.h.s8.bf16 %v498_v12 }
 0x129   : > { %v530_v15 = vunpack.c.l.s8.bf16 %v506_v13  ;;  %v2641_v16 = vld [vmem:[%s3472_s16 + $0x28] sm:$0xff]   ;;  %v2643_v18 = vld [vmem:[%s3472_s16 + $0x30] sm:$0xff]   ;;  %v2645_v20 = vld [vmem:[%s3472_s16 + $0x38] sm:$0xff]   ;;  %v532_v26 = vunpack.c.h.s8.bf16 %v506_v13 }
 0x12a   : > { %2244 = vmatpush3.bf16.msra.mxu0 %v2633_v4  ;;  %2434 = vmatpush3.bf16.msra.mxu1 %v2633_v4  ;;  %v497_v21 = vld [vmem:[%s3465_s7] sm:$0xff]  ;;  %v500_v27 = vld [vmem:[%s3465_s7 + $0x18] sm:$0xff]  ;;  %v499_v33 = vld [vmem:[%s3465_s7 + $0x10] sm:$0xff]  ;;  %p2046_p3 = scmp.ne.s32.totalorder %s3873_s11, 1 }
 0x12b   : > { %2245 = vmatprep.subr.bf16.mxu0 %v2634_v5  ;;  %2427 = vmatprep.subr.bf16.mxu1 %v2634_v5  ;;  %v505_v22 = vld [vmem:[%s3465_s7 + $0x40] sm:$0xff]  ;;  %v513_v23 = vunpack.c.l.s8.bf16 %v497_v21  ;;  %v508_v28 = vld [vmem:[%s3465_s7 + $0x58] sm:$0xff]  ;;  %v515_v29 = vunpack.c.h.s8.bf16 %v497_v21  ;;  %v518_v31 = vunpack.c.l.s8.bf16 %v500_v27  ;;  %v507_v34 = vld [vmem:[%s3465_s7 + $0x50] sm:$0xff]  ;;  %v517_v35 = vunpack.c.l.s8.bf16 %v499_v33 }
 0x12c   : > { %737 = vmatprep.mubr.bf16.mxu0 %v514_v14  ;;  %801 = vmatprep.mubr.bf16.mxu1 %v530_v15  ;;  %v529_v24 = vunpack.c.l.s8.bf16 %v505_v22  ;;  %v531_v30 = vunpack.c.h.s8.bf16 %v505_v22  ;;  %v534_v32 = vunpack.c.l.s8.bf16 %v508_v28  ;;  %v533_v36 = vunpack.c.l.s8.bf16 %v507_v34  ;;  %v502_v39 = vld [vmem:[%s3465_s7 + $0x28] sm:$0xff]  ;;  %v501_v45 = vld [vmem:[%s3465_s7 + $0x20] sm:$0xff]  ;;  %v504_v51 = vld [vmem:[%s3465_s7 + $0x38] sm:$0xff] }
 0x12d   : > { %v520_v37 = vunpack.c.h.s8.bf16 %v500_v27  ;;  %v536_v38 = vunpack.c.h.s8.bf16 %v508_v28  ;;  %v510_v40 = vld [vmem:[%s3465_s7 + $0x68] sm:$0xff]  ;;  %v519_v41 = vunpack.c.h.s8.bf16 %v499_v33  ;;  %v535_v42 = vunpack.c.h.s8.bf16 %v507_v34  ;;  %v509_v46 = vld [vmem:[%s3465_s7 + $0x60] sm:$0xff]  ;;  %v512_v52 = vld [vmem:[%s3465_s7 + $0x78] sm:$0xff] }
 0x12e   : > { %2246 = vmatpush3.bf16.msra.mxu0 %v2635_v6  ;;  %2435 = vmatpush3.bf16.msra.mxu1 %v2635_v6  ;;  %v522_v43 = vunpack.c.l.s8.bf16 %v502_v39  ;;  %v538_v44 = vunpack.c.l.s8.bf16 %v510_v40  ;;  %v521_v47 = vunpack.c.l.s8.bf16 %v501_v45  ;;  %v537_v48 = vunpack.c.l.s8.bf16 %v509_v46  ;;  %v503_v57 = vld [vmem:[%s3465_s7 + $0x30] sm:$0xff]  ;;  %v545_v3 = vld [vmem:[#allocation2] sm:$0xff]  ;;  %v562_v13 = vld [vmem:[#allocation2 + $0x88] sm:$0xff] }
 0x12f   : > { %2247 = vmatprep.subr.bf16.mxu0 %v2636_v7  ;;  %2428 = vmatprep.subr.bf16.mxu1 %v2636_v7  ;;  %v524_v49 = vunpack.c.h.s8.bf16 %v502_v39  ;;  %v540_v50 = vunpack.c.h.s8.bf16 %v510_v40  ;;  %v523_v53 = vunpack.c.h.s8.bf16 %v501_v45  ;;  %v539_v54 = vunpack.c.h.s8.bf16 %v509_v46  ;;  %v511_v58 = vld [vmem:[%s3465_s7 + $0x70] sm:$0xff]  ;;  %v561_v5 = vld [vmem:[#allocation2 + $0x80] sm:$0xff]  ;;  %v564_v33 = vld [vmem:[#allocation2 + $0x98] sm:$0xff] }
 0x130   : > { %v526_v55 = vunpack.c.l.s8.bf16 %v504_v51  ;;  %v542_v56 = vunpack.c.l.s8.bf16 %v512_v52  ;;  %v525_v59 = vunpack.c.l.s8.bf16 %v503_v57  ;;  %v541_v60 = vunpack.c.l.s8.bf16 %v511_v58  ;;  %v565_v45 = vld [vmem:[#allocation2 + $0xa0] sm:$0xff] }
 0x131   : > { %v528_v61 = vunpack.c.h.s8.bf16 %v504_v51  ;;  %v544_v62 = vunpack.c.h.s8.bf16 %v512_v52  ;;  %v527_v63 = vunpack.c.h.s8.bf16 %v503_v57  ;;  %v543_v0 = vunpack.c.h.s8.bf16 %v511_v58  ;;  %v550_v51 = vld [vmem:[#allocation2 + $0x28] sm:$0xff] }
 0x132   : > { %2248 = vmatpush3.bf16.msra.mxu0 %v2637_v8  ;;  %2436 = vmatpush3.bf16.msra.mxu1 %v2637_v8 }
 0x133   : > { %2249 = vmatprep.subr.bf16.mxu0 %v2638_v9  ;;  %2429 = vmatprep.subr.bf16.mxu1 %v2638_v9 }
 0x136   : > { %2250 = vmatpush3.bf16.msra.mxu0 %v2639_v10  ;;  %2437 = vmatpush3.bf16.msra.mxu1 %v2639_v10 }
 0x137   : > { %2251 = vmatprep.subr.bf16.mxu0 %v2640_v11  ;;  %2430 = vmatprep.subr.bf16.mxu1 %v2640_v11  ;;  %v546_v11 = vld [vmem:[#allocation2 + $0x8] sm:$0xff] }
 0x13a   : > { %2252 = vmatpush3.bf16.msra.mxu0 %v2641_v16  ;;  %2438 = vmatpush3.bf16.msra.mxu1 %v2641_v16 }
 0x13b   : > { %2253 = vmatprep.subr.bf16.mxu0 %v2642_v17  ;;  %2431 = vmatprep.subr.bf16.mxu1 %v2642_v17 }
 0x13e   : > { %2254 = vmatpush3.bf16.msra.mxu0 %v2643_v18  ;;  %2439 = vmatpush3.bf16.msra.mxu1 %v2643_v18 }
 0x13f   : > { %2255 = vmatprep.subr.bf16.mxu0 %v2644_v19  ;;  %2432 = vmatprep.subr.bf16.mxu1 %v2644_v19 }
 0x142   : > { %2256 = vmatpush3.bf16.msra.mxu0 %v2645_v20  ;;  %2440 = vmatpush3.bf16.msra.mxu1 %v2645_v20 }
 0x145   : > { %738 = vmatmul.mubr.bf16.vlgmr.msra.gmra.mrb[0].mxu0 %v513_v23  ;;  %802 = vmatmul.mubr.bf16.vlgmr.msra.gmra.mrb[0].mxu1 %v529_v24  ;;  %v547_v23 = vld [vmem:[#allocation2 + $0x10] sm:$0xff] }
 0x146   : > { %745 = vmatprep.mubr.bf16.mxu0 %v516_v25  ;;  %809 = vmatprep.mubr.bf16.mxu1 %v532_v26  ;;  %v563_v25 = vld [vmem:[#allocation2 + $0x90] sm:$0xff] }
 0x14d   : > { %746 = vmatmul.mubr.bf16.gmra.mrb[4].mxu0 %v515_v29  ;;  %810 = vmatmul.mubr.bf16.gmra.mrb[4].mxu1 %v531_v30 }
 0x14e   : > { %753 = vmatprep.mubr.bf16.mxu0 %v518_v31  ;;  %817 = vmatprep.mubr.bf16.mxu1 %v534_v32  ;;  %v548_v31 = vld [vmem:[#allocation2 + $0x18] sm:$0xff] }
 0x155   : > { %754 = vmatmul.mubr.bf16.gmra.mrb[8].mxu0 %v517_v35  ;;  %818 = vmatmul.mubr.bf16.gmra.mrb[8].mxu1 %v533_v36 }
 0x156   : > { %761 = vmatprep.mubr.bf16.mxu0 %v520_v37  ;;  %825 = vmatprep.mubr.bf16.mxu1 %v536_v38 }
 0x15d   : > { %762 = vmatmul.mubr.bf16.gmra.mrb[12].mxu0 %v519_v41  ;;  %826 = vmatmul.mubr.bf16.gmra.mrb[12].mxu1 %v535_v42 }
 0x15e   : > { %769 = vmatprep.mubr.bf16.mxu0 %v522_v43  ;;  %833 = vmatprep.mubr.bf16.mxu1 %v538_v44  ;;  %v549_v43 = vld [vmem:[#allocation2 + $0x20] sm:$0xff] }
 0x165   : > { %770 = vmatmul.mubr.bf16.gmra.mrb[16].mxu0 %v521_v47  ;;  %834 = vmatmul.mubr.bf16.gmra.mrb[16].mxu1 %v537_v48 }
 0x166   : > { %777 = vmatprep.mubr.bf16.mxu0 %v524_v49  ;;  %841 = vmatprep.mubr.bf16.mxu1 %v540_v50 }
 0x16d   : > { %778 = vmatmul.mubr.bf16.gmra.mrb[20].mxu0 %v523_v53  ;;  %842 = vmatmul.mubr.bf16.gmra.mrb[20].mxu1 %v539_v54  ;;  %v566_v53 = vld [vmem:[#allocation2 + $0xa8] sm:$0xff] }
 0x16e   : > { %785 = vmatprep.mubr.bf16.mxu0 %v526_v55  ;;  %849 = vmatprep.mubr.bf16.mxu1 %v542_v56 }
 0x175   : > { %786 = vmatmul.mubr.bf16.gmra.mrb[24].mxu0 %v525_v59  ;;  %850 = vmatmul.mubr.bf16.gmra.mrb[24].mxu1 %v541_v60 }
 0x176   : > { %793 = vmatprep.mubr.bf16.mxu0 %v528_v61  ;;  %857 = vmatprep.mubr.bf16.mxu1 %v544_v62 }
 0x17d   : > { %794 = vmatmul.mubr.bf16.gmra.mrb[28].mxu0 %v527_v63  ;;  %858 = vmatmul.mubr.bf16.gmra.mrb[28].mxu1 %v543_v0  ;;  %v551_v63 = vld [vmem:[#allocation2 + $0x30] sm:$0xff] }
 0x218   : > { %v2257_v1 = vpop.f32.mrb[0].mxu0  ;;  %v2305_v2 = vpop.f32.mrb[0].mxu1 }
 0x219   : > { %v2258_v4 = vpop.f32.mrb[1].mxu0  ;;  %v2306_v6 = vpop.f32.mrb[1].mxu1 }
 0x21a   : > { %v2259_v7 = vadd.f32 %v2258_v4, %v2257_v1  ;;  %v2307_v8 = vadd.f32 %v2306_v6, %v2305_v2  ;;  %v2260_v9 = vpop.f32.mrb[2].mxu0  ;;  %v2308_v10 = vpop.f32.mrb[2].mxu1  ;;  %v567_v1 = vld [vmem:[#allocation2 + $0xb0] sm:$0xff] }
 0x21b   : > { %v2261_v12 = vpop.f32.mrb[3].mxu0  ;;  %v2309_v14 = vpop.f32.mrb[3].mxu1 }
 0x21c   : > { %v866_v15 = vadd.f32 %v2259_v7, %v545_v3  ;;  %v882_v16 = vadd.f32 %v2307_v8, %v561_v5  ;;  %v2262_v17 = vadd.f32 %v2261_v12, %v2260_v9  ;;  %v2310_v18 = vadd.f32 %v2309_v14, %v2308_v10  ;;  %v552_v7 = vld [vmem:[#allocation2 + $0x38] sm:$0xff] }
 0x21d   : > { %v568_v9 = vld [vmem:[#allocation2 + $0xb8] sm:$0xff] }
 0x21e   : > { %898 = vst [vmem:[#allocation2] sm:$0xff] %v866_v15  ;;  %914 = vst [vmem:[#allocation2 + $0x80] sm:$0xff] %v882_v16  ;;  %v867_v19 = vadd.f32 %v2262_v17, %v546_v11  ;;  %v883_v20 = vadd.f32 %v2310_v18, %v562_v13 }
 0x220   : > { %899 = vst [vmem:[#allocation2 + $0x8] sm:$0xff] %v867_v19  ;;  %915 = vst [vmem:[#allocation2 + $0x88] sm:$0xff] %v883_v20  ;;  %v2263_v21 = vpop.f32.mrb[4].mxu0  ;;  %v2311_v22 = vpop.f32.mrb[4].mxu1  ;;  %v553_v19 = vld [vmem:[#allocation2 + $0x40] sm:$0xff] }
 0x221   : > { %v2264_v24 = vpop.f32.mrb[5].mxu0  ;;  %v2312_v26 = vpop.f32.mrb[5].mxu1 }
 0x222   : > { %v2265_v27 = vadd.f32 %v2264_v24, %v2263_v21  ;;  %v2313_v28 = vadd.f32 %v2312_v26, %v2311_v22  ;;  %v2266_v29 = vpop.f32.mrb[6].mxu0  ;;  %v2314_v30 = vpop.f32.mrb[6].mxu1  ;;  %v569_v21 = vld [vmem:[#allocation2 + $0xc0] sm:$0xff] }
 0x223   : > { %v2267_v32 = vpop.f32.mrb[7].mxu0  ;;  %v2315_v34 = vpop.f32.mrb[7].mxu1 }
 0x224   : > { %v868_v35 = vadd.f32 %v2265_v27, %v547_v23  ;;  %v884_v36 = vadd.f32 %v2313_v28, %v563_v25  ;;  %v2268_v37 = vadd.f32 %v2267_v32, %v2266_v29  ;;  %v2316_v38 = vadd.f32 %v2315_v34, %v2314_v30  ;;  %v554_v27 = vld [vmem:[#allocation2 + $0x48] sm:$0xff] }
 0x225   : > { %v570_v29 = vld [vmem:[#allocation2 + $0xc8] sm:$0xff] }
 0x226   : > { %900 = vst [vmem:[#allocation2 + $0x10] sm:$0xff] %v868_v35  ;;  %916 = vst [vmem:[#allocation2 + $0x90] sm:$0xff] %v884_v36  ;;  %v869_v39 = vadd.f32 %v2268_v37, %v548_v31  ;;  %v885_v40 = vadd.f32 %v2316_v38, %v564_v33 }
 0x228   : > { %901 = vst [vmem:[#allocation2 + $0x18] sm:$0xff] %v869_v39  ;;  %917 = vst [vmem:[#allocation2 + $0x98] sm:$0xff] %v885_v40  ;;  %v2269_v41 = vpop.f32.mrb[8].mxu0  ;;  %v2317_v42 = vpop.f32.mrb[8].mxu1  ;;  %v555_v39 = vld [vmem:[#allocation2 + $0x50] sm:$0xff] }
 0x229   : > { %v2270_v44 = vpop.f32.mrb[9].mxu0  ;;  %v2318_v46 = vpop.f32.mrb[9].mxu1 }
 0x22a   : > { %v2271_v47 = vadd.f32 %v2270_v44, %v2269_v41  ;;  %v2319_v48 = vadd.f32 %v2318_v46, %v2317_v42  ;;  %v2272_v49 = vpop.f32.mrb[10].mxu0  ;;  %v2320_v50 = vpop.f32.mrb[10].mxu1  ;;  %v571_v41 = vld [vmem:[#allocation2 + $0xd0] sm:$0xff] }
 0x22b   : > { %v2273_v52 = vpop.f32.mrb[11].mxu0  ;;  %v2321_v54 = vpop.f32.mrb[11].mxu1 }
 0x22c   : > { %v870_v55 = vadd.f32 %v2271_v47, %v549_v43  ;;  %v886_v56 = vadd.f32 %v2319_v48, %v565_v45  ;;  %v2274_v57 = vadd.f32 %v2273_v52, %v2272_v49  ;;  %v2322_v58 = vadd.f32 %v2321_v54, %v2320_v50  ;;  %v556_v47 = vld [vmem:[#allocation2 + $0x58] sm:$0xff] }
 0x22d   : > { %v572_v49 = vld [vmem:[#allocation2 + $0xd8] sm:$0xff] }
 0x22e   : > { %902 = vst [vmem:[#allocation2 + $0x20] sm:$0xff] %v870_v55  ;;  %918 = vst [vmem:[#allocation2 + $0xa0] sm:$0xff] %v886_v56  ;;  %v871_v59 = vadd.f32 %v2274_v57, %v550_v51  ;;  %v887_v60 = vadd.f32 %v2322_v58, %v566_v53 }
 0x230   : > { %903 = vst [vmem:[#allocation2 + $0x28] sm:$0xff] %v871_v59  ;;  %919 = vst [vmem:[#allocation2 + $0xa8] sm:$0xff] %v887_v60  ;;  %v2275_v61 = vpop.f32.mrb[12].mxu0  ;;  %v2323_v62 = vpop.f32.mrb[12].mxu1  ;;  %v557_v59 = vld [vmem:[#allocation2 + $0x60] sm:$0xff] }
 0x231   : > { %v2276_v0 = vpop.f32.mrb[13].mxu0  ;;  %v2324_v2 = vpop.f32.mrb[13].mxu1 }
 0x232   : > { %v2277_v3 = vadd.f32 %v2276_v0, %v2275_v61  ;;  %v2325_v4 = vadd.f32 %v2324_v2, %v2323_v62  ;;  %v2278_v5 = vpop.f32.mrb[14].mxu0  ;;  %v2326_v6 = vpop.f32.mrb[14].mxu1  ;;  %v573_v61 = vld [vmem:[#allocation2 + $0xe0] sm:$0xff] }
 0x233   : > { %v2279_v8 = vpop.f32.mrb[15].mxu0  ;;  %v2327_v10 = vpop.f32.mrb[15].mxu1 }
 0x234   : > { %v872_v11 = vadd.f32 %v2277_v3, %v551_v63  ;;  %v888_v12 = vadd.f32 %v2325_v4, %v567_v1  ;;  %v2280_v13 = vadd.f32 %v2279_v8, %v2278_v5  ;;  %v2328_v14 = vadd.f32 %v2327_v10, %v2326_v6  ;;  %v558_v3 = vld [vmem:[#allocation2 + $0x68] sm:$0xff] }
 0x235   : > { %v574_v5 = vld [vmem:[#allocation2 + $0xe8] sm:$0xff] }
 0x236   : > { %904 = vst [vmem:[#allocation2 + $0x30] sm:$0xff] %v872_v11  ;;  %920 = vst [vmem:[#allocation2 + $0xb0] sm:$0xff] %v888_v12  ;;  %v873_v15 = vadd.f32 %v2280_v13, %v552_v7  ;;  %v889_v16 = vadd.f32 %v2328_v14, %v568_v9 }
 0x238   : > { %905 = vst [vmem:[#allocation2 + $0x38] sm:$0xff] %v873_v15  ;;  %921 = vst [vmem:[#allocation2 + $0xb8] sm:$0xff] %v889_v16  ;;  %v2281_v17 = vpop.f32.mrb[16].mxu0  ;;  %v2329_v18 = vpop.f32.mrb[16].mxu1  ;;  %v559_v15 = vld [vmem:[#allocation2 + $0x70] sm:$0xff] }
 0x239   : > { %v2282_v20 = vpop.f32.mrb[17].mxu0  ;;  %v2330_v22 = vpop.f32.mrb[17].mxu1 }
 0x23a   : > { %v2283_v23 = vadd.f32 %v2282_v20, %v2281_v17  ;;  %v2331_v24 = vadd.f32 %v2330_v22, %v2329_v18  ;;  %v2284_v25 = vpop.f32.mrb[18].mxu0  ;;  %v2332_v26 = vpop.f32.mrb[18].mxu1  ;;  %v575_v17 = vld [vmem:[#allocation2 + $0xf0] sm:$0xff] }
 0x23b   : > { %v2285_v28 = vpop.f32.mrb[19].mxu0  ;;  %v2333_v30 = vpop.f32.mrb[19].mxu1 }
 0x23c   : > { %v874_v31 = vadd.f32 %v2283_v23, %v553_v19  ;;  %v890_v32 = vadd.f32 %v2331_v24, %v569_v21  ;;  %v2286_v33 = vadd.f32 %v2285_v28, %v2284_v25  ;;  %v2334_v34 = vadd.f32 %v2333_v30, %v2332_v26  ;;  %v560_v23 = vld [vmem:[#allocation2 + $0x78] sm:$0xff] }
 0x23d   : > { %v576_v25 = vld [vmem:[#allocation2 + $0xf8] sm:$0xff] }
 0x23e   : > { %906 = vst [vmem:[#allocation2 + $0x40] sm:$0xff] %v874_v31  ;;  %922 = vst [vmem:[#allocation2 + $0xc0] sm:$0xff] %v890_v32  ;;  %v875_v35 = vadd.f32 %v2286_v33, %v554_v27  ;;  %v891_v36 = vadd.f32 %v2334_v34, %v570_v29  ;;  %v2648_v33 = vld [vmem:[#allocation9] sm:$0xff] (!%p2046_p3)   ;;  %v2649_v34 = vld [vmem:[#allocation9 + $0x8] sm:$0xff] (!%p2046_p3)  }
 0x23f   : > { %2377 = vmatprep.subr.bf16.mxu0 (!%p2046_p3), %v2648_v33  ;;  %2441 = vmatprep.subr.bf16.mxu1 (!%p2046_p3), %v2648_v33 }
 0x240   : > { %907 = vst [vmem:[#allocation2 + $0x48] sm:$0xff] %v875_v35  ;;  %923 = vst [vmem:[#allocation2 + $0xc8] sm:$0xff] %v891_v36  ;;  %v2287_v37 = vpop.f32.mrb[20].mxu0  ;;  %v2335_v38 = vpop.f32.mrb[20].mxu1  ;;  %v3030_v35 = vmov (!%p2046_p3), 0   ;;  %2378 = vmatpush3.bf16.msra.mxu0 (!%p2046_p3), %v2648_v33  ;;  %2449 = vmatpush3.bf16.msra.mxu1 (!%p2046_p3), %v2648_v33  ;;  %v2650_v36 = vld [vmem:[#allocation9 + $0x10] sm:$0xff] (!%p2046_p3)  }
 0x241   : > { %v2288_v40 = vpop.f32.mrb[21].mxu0  ;;  %v2336_v42 = vpop.f32.mrb[21].mxu1  ;;  %2647 = vset.pattern.permute.xlu1 (!%p2046_p3), %v3030_v35  ;;  %2646 = vset.pattern.permute.xlu0 (!%p2046_p3), %v3030_v35 }
 0x242   : > { %v2289_v43 = vadd.f32 %v2288_v40, %v2287_v37  ;;  %v2337_v44 = vadd.f32 %v2336_v42, %v2335_v38  ;;  %v2290_v45 = vpop.f32.mrb[22].mxu0  ;;  %v2338_v46 = vpop.f32.mrb[22].mxu1  ;;  %2379 = vmatprep.subr.bf16.mxu0 (!%p2046_p3), %v2649_v34  ;;  %2442 = vmatprep.subr.bf16.mxu1 (!%p2046_p3), %v2649_v34  ;;  %v1289_v37 = vld [vmem:[%s3493_s27 + $0x10] sm:$0xff] (!%p2046_p3)  ;;  %v1287_v38 = vld [vmem:[%s3493_s27] sm:$0xff] (!%p2046_p3)  ;;  %v1290_v40 = vld [vmem:[%s3493_s27 + $0x18] sm:$0xff] (!%p2046_p3) }
 0x243   : > { %v2291_v48 = vpop.f32.mrb[23].mxu0  ;;  %v2339_v50 = vpop.f32.mrb[23].mxu1  ;;  %1363 = vperm.xlu1 (!%p2046_p3), %2647, %v1289_v37   ;;  %1353 = vperm.xlu0 (!%p2046_p3), %2646, %v1287_v38   ;;  %v2656_v42 = vld [vmem:[%s3482_s4] sm:$0xff] (!%p2046_p3)  }
 0x244   : > { %v876_v51 = vadd.f32 %v2289_v43, %v555_v39  ;;  %v892_v52 = vadd.f32 %v2337_v44, %v571_v41  ;;  %v2292_v53 = vadd.f32 %v2291_v48, %v2290_v45  ;;  %v2340_v54 = vadd.f32 %v2339_v50, %v2338_v46  ;;  %2380 = vmatpush3.bf16.msra.mxu0 (!%p2046_p3), %v2649_v34  ;;  %v2651_v39 = vld [vmem:[#allocation9 + $0x18] sm:$0xff] (!%p2046_p3)   ;;  %v1288_v41 = vld [vmem:[%s3493_s27 + $0x8] sm:$0xff] (!%p2046_p3)  ;;  %v2657_v43 = vld [vmem:[%s3482_s4 + $0x40] sm:$0xff] (!%p2046_p3)  }
 0x245   : > { %2450 = vmatpush3.bf16.msra.mxu1 (!%p2046_p3), %v2649_v34  ;;  %2381 = vmatprep.subr.bf16.mxu0 (!%p2046_p3), %v2650_v36  ;;  %v2652_v44 = vld [vmem:[#allocation9 + $0x20] sm:$0xff] (!%p2046_p3)   ;;  %v1292_v45 = vld [vmem:[%s3493_s27 + $0x28] sm:$0xff] (!%p2046_p3)  ;;  %v1294_v48 = vld [vmem:[%s3493_s27 + $0x38] sm:$0xff] (!%p2046_p3) }
 0x246   : > { %908 = vst [vmem:[#allocation2 + $0x50] sm:$0xff] %v876_v51  ;;  %924 = vst [vmem:[#allocation2 + $0xd0] sm:$0xff] %v892_v52  ;;  %v877_v55 = vadd.f32 %v2292_v53, %v556_v47  ;;  %v893_v56 = vadd.f32 %v2340_v54, %v572_v49  ;;  %2443 = vmatprep.subr.bf16.mxu1 (!%p2046_p3), %v2650_v36  ;;  %v1291_v46 = vld [vmem:[%s3493_s27 + $0x20] sm:$0xff] (!%p2046_p3)  ;;  %2393 = vmatprep.mubr.bf16.mxu0 (!%p2046_p3), %v2656_v42  ;;  %v2653_v47 = vld [vmem:[#allocation9 + $0x28] sm:$0xff] (!%p2046_p3)  }
 0x247   : > { %1368 = vperm.xlu1 (!%p2046_p3), %2647, %v1290_v40   ;;  %1358 = vperm.xlu0 (!%p2046_p3), %2646, %v1288_v41   ;;  %v1293_v49 = vld [vmem:[%s3493_s27 + $0x30] sm:$0xff] (!%p2046_p3)  ;;  %v1296_v51 = vld [vmem:[%s3493_s27 + $0x48] sm:$0xff] (!%p2046_p3)  ;;  %v1295_v52 = vld [vmem:[%s3493_s27 + $0x40] sm:$0xff] (!%p2046_p3) }
 0x248   : > { %909 = vst [vmem:[#allocation2 + $0x58] sm:$0xff] %v877_v55  ;;  %925 = vst [vmem:[#allocation2 + $0xd8] sm:$0xff] %v893_v56  ;;  %v2293_v57 = vpop.f32.mrb[24].mxu0  ;;  %v2341_v58 = vpop.f32.mrb[24].mxu1  ;;  %2382 = vmatpush3.bf16.msra.mxu0 (!%p2046_p3), %v2650_v36  ;;  %2409 = vmatprep.mubr.bf16.mxu1 (!%p2046_p3), %v2657_v43  ;;  %v2654_v50 = vld [vmem:[#allocation9 + $0x30] sm:$0xff] (!%p2046_p3)   ;;  %v2655_v53 = vld [vmem:[#allocation9 + $0x38] sm:$0xff] (!%p2046_p3)  }
 0x249   : > { %v2294_v60 = vpop.f32.mrb[25].mxu0  ;;  %v2342_v62 = vpop.f32.mrb[25].mxu1  ;;  %2451 = vmatpush3.bf16.msra.mxu1 (!%p2046_p3), %v2650_v36  ;;  %2383 = vmatprep.subr.bf16.mxu0 (!%p2046_p3), %v2651_v39  ;;  %v1298_v54 = vld [vmem:[%s3493_s27 + $0x58] sm:$0xff] (!%p2046_p3)  ;;  %v1297_v55 = vld [vmem:[%s3493_s27 + $0x50] sm:$0xff] (!%p2046_p3)  ;;  %v2658_v56 = vld [vmem:[%s3482_s4 + $0x8] sm:$0xff] (!%p2046_p3)  }
 0x24a   : > { %v2295_v63 = vadd.f32 %v2294_v60, %v2293_v57  ;;  %v2343_v0 = vadd.f32 %v2342_v62, %v2341_v58  ;;  %v2296_v1 = vpop.f32.mrb[26].mxu0  ;;  %v2344_v2 = vpop.f32.mrb[26].mxu1  ;;  %2444 = vmatprep.subr.bf16.mxu1 (!%p2046_p3), %v2651_v39  ;;  %v2659_v57 = vld [vmem:[%s3482_s4 + $0x48] sm:$0xff] (!%p2046_p3)   ;;  %v2660_v60 = vld [vmem:[%s3482_s4 + $0x10] sm:$0xff] (!%p2046_p3)   ;;  %v1302_v62 = vld [vmem:[%s3493_s27 + $0x78] sm:$0xff] (!%p2046_p3) }
 0x24b   : > { %v2297_v4 = vpop.f32.mrb[27].mxu0  ;;  %v2345_v6 = vpop.f32.mrb[27].mxu1  ;;  %1378 = vperm.xlu1 (!%p2046_p3), %2647, %v1292_v45   ;;  %1373 = vperm.xlu0 (!%p2046_p3), %2646, %v1291_v46   ;;  %v1300_v58 = vld [vmem:[%s3493_s27 + $0x68] sm:$0xff] (!%p2046_p3) }
 0x24c   : > { %v878_v7 = vadd.f32 %v2295_v63, %v557_v59  ;;  %v894_v8 = vadd.f32 %v2343_v0, %v573_v61  ;;  %v2298_v9 = vadd.f32 %v2297_v4, %v2296_v1  ;;  %v2346_v10 = vadd.f32 %v2345_v6, %v2344_v2  ;;  %2384 = vmatpush3.bf16.msra.mxu0 (!%p2046_p3), %v2651_v39  ;;  %v1299_v59 = vld [vmem:[%s3493_s27 + $0x60] sm:$0xff] (!%p2046_p3)  ;;  %v2661_v61 = vld [vmem:[%s3482_s4 + $0x50] sm:$0xff] (!%p2046_p3)   ;;  %v2662_v0 = vld [vmem:[%s3482_s4 + $0x18] sm:$0xff] (!%p2046_p3)  }
 0x24d   : > { %2452 = vmatpush3.bf16.msra.mxu1 (!%p2046_p3), %v2651_v39  ;;  %2385 = vmatprep.subr.bf16.mxu0 (!%p2046_p3), %v2652_v44  ;;  %v1301_v63 = vld [vmem:[%s3493_s27 + $0x70] sm:$0xff] (!%p2046_p3)  ;;  %v2663_v1 = vld [vmem:[%s3482_s4 + $0x58] sm:$0xff] (!%p2046_p3)   ;;  %v1304_v2 = vld [vmem:[%s3493_s27 + $0x88] sm:$0xff] (!%p2046_p3) }
 0x24e   : > { %910 = vst [vmem:[#allocation2 + $0x60] sm:$0xff] %v878_v7  ;;  %926 = vst [vmem:[#allocation2 + $0xe0] sm:$0xff] %v894_v8  ;;  %v879_v11 = vadd.f32 %v2298_v9, %v558_v3  ;;  %v895_v12 = vadd.f32 %v2346_v10, %v574_v5  ;;  %2445 = vmatprep.subr.bf16.mxu1 (!%p2046_p3), %v2652_v44  ;;  %v1303_v3 = vld [vmem:[%s3493_s27 + $0x80] sm:$0xff] (!%p2046_p3)  ;;  %v1306_v6 = vld [vmem:[%s3493_s27 + $0x98] sm:$0xff] (!%p2046_p3) }
 0x24f   : > { %1388 = vperm.xlu1 (!%p2046_p3), %2647, %v1294_v48   ;;  %1383 = vperm.xlu0 (!%p2046_p3), %2646, %v1293_v49   ;;  %v2664_v4 = vld [vmem:[%s3482_s4 + $0x20] sm:$0xff] (!%p2046_p3)   ;;  %v1305_v7 = vld [vmem:[%s3493_s27 + $0x90] sm:$0xff] (!%p2046_p3)  ;;  %v2666_v8 = vld [vmem:[%s3482_s4 + $0x28] sm:$0xff] (!%p2046_p3)  }
 0x250   : > { %911 = vst [vmem:[#allocation2 + $0x68] sm:$0xff] %v879_v11  ;;  %927 = vst [vmem:[#allocation2 + $0xe8] sm:$0xff] %v895_v12  ;;  %v2299_v13 = vpop.f32.mrb[28].mxu0  ;;  %v2347_v14 = vpop.f32.mrb[28].mxu1  ;;  %2386 = vmatpush3.bf16.msra.mxu0 (!%p2046_p3), %v2652_v44  ;;  %v2665_v5 = vld [vmem:[%s3482_s4 + $0x60] sm:$0xff] (!%p2046_p3)   ;;  %v2667_v9 = vld [vmem:[%s3482_s4 + $0x68] sm:$0xff] (!%p2046_p3)  }
 0x251   : > { %v2300_v16 = vpop.f32.mrb[29].mxu0  ;;  %v2348_v18 = vpop.f32.mrb[29].mxu1  ;;  %2453 = vmatpush3.bf16.msra.mxu1 (!%p2046_p3), %v2652_v44  ;;  %2387 = vmatprep.subr.bf16.mxu0 (!%p2046_p3), %v2653_v47  ;;  %v1308_v10 = vld [vmem:[%s3493_s27 + $0xa8] sm:$0xff] (!%p2046_p3)  ;;  %v1307_v11 = vld [vmem:[%s3493_s27 + $0xa0] sm:$0xff] (!%p2046_p3)  ;;  %v2668_v12 = vld [vmem:[%s3482_s4 + $0x30] sm:$0xff] (!%p2046_p3)  }
 0x252   : > { %v2301_v19 = vadd.f32 %v2300_v16, %v2299_v13  ;;  %v2349_v20 = vadd.f32 %v2348_v18, %v2347_v14  ;;  %v2302_v21 = vpop.f32.mrb[30].mxu0  ;;  %v2350_v22 = vpop.f32.mrb[30].mxu1  ;;  %933 = sbr.rel (%p2046_p3) target bundleno = 857 (0x359), region = 76  ;;  %2446 = vmatprep.subr.bf16.mxu1 (!%p2046_p3), %v2653_v47  ;;  %v2669_v13 = vld [vmem:[%s3482_s4 + $0x70] sm:$0xff] (!%p2046_p3)   ;;  %v1310_v14 = vld [vmem:[%s3493_s27 + $0xb8] sm:$0xff] (!%p2046_p3)  ;;  %v1312_v18 = vld [vmem:[%s3493_s27 + $0xc8] sm:$0xff] (!%p2046_p3) }
 0x253   : > { %v2303_v24 = vpop.f32.mrb[31].mxu0  ;;  %v2351_v26 = vpop.f32.mrb[31].mxu1  ;;  %1398 = vperm.xlu1 (!%p2046_p3), %2647, %v1296_v51   ;;  %1393 = vperm.xlu0 (!%p2046_p3), %2646, %v1295_v52   ;;  %v2670_v16 = vld [vmem:[%s3482_s4 + $0x38] sm:$0xff] (!%p2046_p3)   ;;  %v1319_v51 = vld [vmem:[#allocation2] sm:$0xff] (!%p2046_p3) }
 0x254   : > { %v880_v27 = vadd.f32 %v2301_v19, %v559_v15  ;;  %v896_v28 = vadd.f32 %v2349_v20, %v575_v17  ;;  %v2304_v29 = vadd.f32 %v2303_v24, %v2302_v21  ;;  %v2352_v30 = vadd.f32 %v2351_v26, %v2350_v22  ;;  %2388 = vmatpush3.bf16.msra.mxu0 (!%p2046_p3), %v2653_v47  ;;  %v1309_v15 = vld [vmem:[%s3493_s27 + $0xb0] sm:$0xff] (!%p2046_p3)  ;;  %v2671_v17 = vld [vmem:[%s3482_s4 + $0x78] sm:$0xff] (!%p2046_p3)   ;;  %v1311_v19 = vld [vmem:[%s3493_s27 + $0xc0] sm:$0xff] (!%p2046_p3) }
 0x255   : > { %2454 = vmatpush3.bf16.msra.mxu1 (!%p2046_p3), %v2653_v47  ;;  %2389 = vmatprep.subr.bf16.mxu0 (!%p2046_p3), %v2654_v50  ;;  %v1314_v20 = vld [vmem:[%s3493_s27 + $0xd8] sm:$0xff] (!%p2046_p3)  ;;  %v1313_v21 = vld [vmem:[%s3493_s27 + $0xd0] sm:$0xff] (!%p2046_p3)  ;;  %v1316_v22 = vld [vmem:[%s3493_s27 + $0xe8] sm:$0xff] (!%p2046_p3) }
 0x256   : > { %912 = vst [vmem:[#allocation2 + $0x70] sm:$0xff] %v880_v27  ;;  %928 = vst [vmem:[#allocation2 + $0xf0] sm:$0xff] %v896_v28  ;;  %v881_v31 = vadd.f32 %v2304_v29, %v560_v23  ;;  %v897_v32 = vadd.f32 %v2352_v30, %v576_v25  ;;  %2447 = vmatprep.subr.bf16.mxu1 (!%p2046_p3), %v2654_v50  ;;  %v1315_v23 = vld [vmem:[%s3493_s27 + $0xe0] sm:$0xff] (!%p2046_p3)  ;;  %v1318_v24 = vld [vmem:[%s3493_s27 + $0xf8] sm:$0xff] (!%p2046_p3) }
 0x257   : > { %1408 = vperm.xlu1 (!%p2046_p3), %2647, %v1298_v54   ;;  %1403 = vperm.xlu0 (!%p2046_p3), %2646, %v1297_v55   ;;  %v1317_v25 = vld [vmem:[%s3493_s27 + $0xf0] sm:$0xff] (!%p2046_p3)  ;;  %v1322_v52 = vld [vmem:[#allocation2 + $0x18] sm:$0xff] (!%p2046_p3) }
 0x258   : > { %913 = vst [vmem:[#allocation2 + $0x78] sm:$0xff] %v881_v31  ;;  %929 = vst [vmem:[#allocation2 + $0xf8] sm:$0xff] %v897_v32  ;;  %2390 = vmatpush3.bf16.msra.mxu0 (!%p2046_p3), %v2654_v50 }
 0x259   : > { %2455 = vmatpush3.bf16.msra.mxu1 %v2654_v50  ;;  %2391 = vmatprep.subr.bf16.mxu0 %v2655_v53  ;;  %v1321_v50 = vld [vmem:[#allocation2 + $0x10] sm:$0xff] }
 0x25a   : > { %2448 = vmatprep.subr.bf16.mxu1 %v2655_v53 }
 0x25b   : > { %1418 = vperm.xlu1 %2647, %v1300_v58   ;;  %1413 = vperm.xlu0 %2646, %v1299_v59   ;;  %v1326_v58 = vld [vmem:[#allocation2 + $0x38] sm:$0xff]  ;;  %v1325_v59 = vld [vmem:[#allocation2 + $0x30] sm:$0xff] }
 0x25c   : > { %2392 = vmatpush3.bf16.msra.mxu0 %v2655_v53 }
 0x25d   : > { %2456 = vmatpush3.bf16.msra.mxu1 %v2655_v53  ;;  %v1320_v53 = vld [vmem:[#allocation2 + $0x8] sm:$0xff] }
 0x25f   : > { %2394 = vmatmul.mubr.bf16.vlgmr.msra.gmra.mrb[0].mxu0 %v2658_v56  ;;  %1428 = vperm.xlu1 %2647, %v1302_v62   ;;  %v1324_v56 = vld [vmem:[#allocation2 + $0x28] sm:$0xff]  ;;  %v1330_v62 = vld [vmem:[#allocation2 + $0x58] sm:$0xff] }
 0x260   : > { %2410 = vmatmul.mubr.bf16.vlgmr.msra.gmra.mrb[0].mxu1 %v2659_v57  ;;  %2397 = vmatprep.mubr.bf16.mxu0 %v2660_v60  ;;  %v1323_v57 = vld [vmem:[#allocation2 + $0x20] sm:$0xff]  ;;  %v1328_v60 = vld [vmem:[#allocation2 + $0x48] sm:$0xff] }
 0x261   : > { %2413 = vmatprep.mubr.bf16.mxu1 %v2661_v61  ;;  %1423 = vperm.xlu0 %2646, %v1301_v63   ;;  %v1327_v61 = vld [vmem:[#allocation2 + $0x40] sm:$0xff]  ;;  %v1329_v63 = vld [vmem:[#allocation2 + $0x50] sm:$0xff] }
 0x263   : > { %1438 = vperm.xlu1 %2647, %v1304_v2  }
 0x265   : > { %1433 = vperm.xlu0 %2646, %v1303_v3  }
 0x267   : > { %2398 = vmatmul.mubr.bf16.gmra.mrb[4].mxu0 %v2662_v0  ;;  %1448 = vperm.xlu1 %2647, %v1306_v6   ;;  %v1337_v0 = vld [vmem:[#allocation2 + $0x90] sm:$0xff]  ;;  %v1331_v6 = vld [vmem:[#allocation2 + $0x60] sm:$0xff] }
 0x268   : > { %2414 = vmatmul.mubr.bf16.gmra.mrb[4].mxu1 %v2663_v1  ;;  %2401 = vmatprep.mubr.bf16.mxu0 %v2664_v4 }
 0x269   : > { %2417 = vmatprep.mubr.bf16.mxu1 %v2665_v5  ;;  %1443 = vperm.xlu0 %2646, %v1305_v7   ;;  %v1332_v5 = vld [vmem:[#allocation2 + $0x68] sm:$0xff]  ;;  %v1335_v7 = vld [vmem:[#allocation2 + $0x80] sm:$0xff] }
 0x26b   : > { %1458 = vperm.xlu1 %2647, %v1308_v10  }
 0x26d   : > { %1453 = vperm.xlu0 %2646, %v1307_v11  }
 0x26f   : > { %2402 = vmatmul.mubr.bf16.gmra.mrb[8].mxu0 %v2666_v8  ;;  %1468 = vperm.xlu1 %2647, %v1310_v14  }
 0x270   : > { %2418 = vmatmul.mubr.bf16.gmra.mrb[8].mxu1 %v2667_v9  ;;  %2405 = vmatprep.mubr.bf16.mxu0 %v2668_v12  ;;  %v1334_v12 = vld [vmem:[#allocation2 + $0x78] sm:$0xff] }
 0x271   : > { %2421 = vmatprep.mubr.bf16.mxu1 %v2669_v13  ;;  %1463 = vperm.xlu0 %2646, %v1309_v15   ;;  %v1338_v13 = vld [vmem:[#allocation2 + $0x98] sm:$0xff] }
 0x273   : > { %1478 = vperm.xlu1 %2647, %v1312_v18   ;;  %v1336_v18 = vld [vmem:[#allocation2 + $0x88] sm:$0xff] }
 0x275   : > { %1473 = vperm.xlu0 %2646, %v1311_v19  }
 0x277   : > { %2406 = vmatmul.mubr.bf16.gmra.mrb[12].mxu0 %v2670_v16  ;;  %1488 = vperm.xlu1 %2647, %v1314_v20  }
 0x278   : > { %2422 = vmatmul.mubr.bf16.gmra.mrb[12].mxu1 %v2671_v17  ;;  %v1333_v17 = vld [vmem:[#allocation2 + $0x70] sm:$0xff] }
 0x279   : > { %1483 = vperm.xlu0 %2646, %v1313_v21  }
 0x27b   : > { %1498 = vperm.xlu1 %2647, %v1316_v22  }
 0x27d   : > { %1493 = vperm.xlu0 %2646, %v1315_v23  }
 0x27f   : > { %1508 = vperm.xlu1 %2647, %v1318_v24  }
 0x281   : > { %1503 = vperm.xlu0 %2646, %v1317_v25  }
 0x2c2   : > { %v1364_v26 = vpop.permute.xlu1 %1363  ;;  %v1354_v27 = vpop.permute.xlu0 %1353 }
 0x2c3   : > { %v1513_v1 = vmul.f32 %v1364_v26, %v1321_v50  ;;  %v1511_v2 = vmul.f32 %v1354_v27, %v1319_v51  ;;  %v3623_v27 = vld [vmem:[#allocation12] ss:$0 sm:$0xff]  ;;  %v1342_v51 = vld [vmem:[#allocation2 + $0xb8] sm:$0xff] }
 0x2c6   : > { %v1369_v28 = vpop.permute.xlu1 %1368  ;;  %v1359_v29 = vpop.permute.xlu0 %1358 }
 0x2c7   : > { %v1514_v3 = vmul.f32 %v1369_v28, %v1322_v52  ;;  %v1512_v4 = vmul.f32 %v1359_v29, %v1320_v53  ;;  %v1341_v52 = vld [vmem:[#allocation2 + $0xb0] sm:$0xff] }
 0x2ca   : > { %v1379_v30 = vpop.permute.xlu1 %1378  ;;  %v1374_v31 = vpop.permute.xlu0 %1373 }
 0x2cb   : > { %v3599_v8 = vmul.f32 %v1379_v30, %v1324_v56  ;;  %v3601_v9 = vmul.f32 %v1374_v31, %v1323_v57 }
 0x2ce   : > { %v1389_v32 = vpop.permute.xlu1 %1388  ;;  %v1384_v33 = vpop.permute.xlu0 %1383 }
 0x2cf   : > { %v3603_v10 = vmul.f32 %v1389_v32, %v1326_v58  ;;  %v3605_v11 = vmul.f32 %v1384_v33, %v1325_v59 }
 0x2d2   : > { %v1399_v34 = vpop.permute.xlu1 %1398  ;;  %v1394_v35 = vpop.permute.xlu0 %1393 }
 0x2d3   : > { %v3607_v14 = vmul.f32 %v1399_v34, %v1328_v60  ;;  %v3609_v15 = vmul.f32 %v1394_v35, %v1327_v61 }
 0x2d6   : > { %v1409_v36 = vpop.permute.xlu1 %1408  ;;  %v1404_v37 = vpop.permute.xlu0 %1403 }
 0x2d7   : > { %v3611_v16 = vmul.f32 %v1409_v36, %v1330_v62  ;;  %v3617_v22 = vmul.f32 %v1404_v37, %v1329_v63  ;;  %v1340_v37 = vld [vmem:[#allocation2 + $0xa8] sm:$0xff] }
 0x2da   : > { %v1419_v38 = vpop.permute.xlu1 %1418  ;;  %v1414_v39 = vpop.permute.xlu0 %1413 }
 0x2db   : > { %v3619_v23 = vmul.f32 %v1419_v38, %v1332_v5  ;;  %v3621_v24 = vmul.f32 %v1414_v39, %v1331_v6  ;;  %v1339_v38 = vld [vmem:[#allocation2 + $0xa0] sm:$0xff] }
 0x2de   : > { %v1429_v40 = vpop.permute.xlu1 %1428 }
 0x2df   : > { %v3625_v29 = vmul.f32 %v1429_v40, %v1334_v12 }
 0x2e0   : > { %v1424_v41 = vpop.permute.xlu0 %1423 }
 0x2e1   : > { %v3627_v35 = vmul.f32 %v1424_v41, %v1333_v17 }
 0x2e2   : > { %v1439_v42 = vpop.permute.xlu1 %1438 }
 0x2e3   : > { %v1528_v36 = vmul.f32 %v1439_v42, %v1336_v18 }
 0x2e4   : > { %v1434_v43 = vpop.permute.xlu0 %1433 }
 0x2e5   : > { %v1527_v25 = vmul.f32 %v1434_v43, %v1335_v7 }
 0x2e6   : > { %v1449_v44 = vpop.permute.xlu1 %1448 }
 0x2e7   : > { %v1530_v30 = vmul.f32 %v1449_v44, %v1338_v13 }
 0x2e8   : > { %v1444_v45 = vpop.permute.xlu0 %1443 }
 0x2e9   : > { %v1529_v19 = vmul.f32 %v1444_v45, %v1337_v0 }
 0x2ea   : > { %v3587_v46 = vpop.permute.xlu1 %1458 }
 0x2eb   : > { %v1532_v61 = vmul.f32 %v3587_v46, %v1340_v37 }
 0x2ec   : > { %v3589_v47 = vpop.permute.xlu0 %1453 }
 0x2ed   : > { %v1531_v62 = vmul.f32 %v3589_v47, %v1339_v38 }
 0x2ee   : > { %v3591_v48 = vpop.permute.xlu1 %1468 }
 0x2f0   : > { %v3593_v49 = vpop.permute.xlu0 %1463 }
 0x2f2   : > { %v3595_v54 = vpop.permute.xlu1 %1478 }
 0x2f4   : > { %v3597_v55 = vpop.permute.xlu0 %1473 }
 0x2f6   : > { %v3613_v20 = vpop.permute.xlu1 %1488 }
 0x2f8   : > { %v3615_v21 = vpop.permute.xlu0 %1483 }
 0x2fa   : > { %v3641_v6 = vpop.permute.xlu1 %1498 }
 0x332   : > { %v2395_v26 = vpop.f32.mrb[0].mxu0 }
 0x333   : > { %v2411_v28 = vpop.f32.mrb[0].mxu1  ;;  %v1545_v31 = vadd.f32 %v2395_v26, %v1513_v1  ;;  %v1160_v33 = vpop.f32.mrb[1].mxu0  ;;  %v1534_v1 = vmul.f32 %v3591_v48, %v1342_v51  ;;  %v1345_v51 = vld [vmem:[#allocation2 + $0xd0] sm:$0xff] }
 0x334   : > { %v1561_v32 = vadd.f32 %v2411_v28, %v1529_v19  ;;  %v1224_v34 = vpop.f32.mrb[1].mxu1  ;;  %v1543_v45 = vadd.f32 %v1511_v2, %v1160_v33  ;;  %v2396_v50 = vpop.f32.mrb[2].mxu0  ;;  %v1533_v2 = vmul.f32 %v3593_v49, %v1341_v52  ;;  %v1344_v33 = vld [vmem:[#allocation2 + $0xc8] sm:$0xff] }
 0x335   : > { %v1559_v39 = vadd.f32 %v1527_v25, %v1224_v34  ;;  %v2412_v43 = vpop.f32.mrb[2].mxu1  ;;  %v1584_v53 = vadd.f32 %v3623_v27, %v1545_v31  ;;  %v1546_v44 = vadd.f32 %v2396_v50, %v1514_v3  ;;  %v1163_v57 = vpop.f32.mrb[3].mxu0  ;;  %v1343_v34 = vld [vmem:[#allocation2 + $0xc0] sm:$0xff] }
 0x336   : > { %v1600_v40 = vadd.f32 %v3623_v27, %v1561_v32  ;;  %v1562_v56 = vadd.f32 %v2412_v43, %v1530_v30  ;;  %v1227_v58 = vpop.f32.mrb[3].mxu1  ;;  %v1582_v41 = vadd.f32 %v3623_v27, %v1543_v45  ;;  %v1544_v59 = vadd.f32 %v1512_v4, %v1163_v57  ;;  %v3643_v4 = vpop.permute.xlu0 %1493  ;;  %v1346_v43 = vld [vmem:[#allocation2 + $0xd8] sm:$0xff] }
 0x337   : > { %v1598_v42 = vadd.f32 %v3623_v27, %v1559_v39  ;;  %v1560_v60 = vadd.f32 %v1528_v36, %v1227_v58  ;;  %v1585_v63 = vadd.f32 %v3623_v27, %v1546_v44  ;;  %v1616_v7 = vmax.f32 %v1584_v53, 0.0 }
 0x338   : > { %v1601_v0 = vadd.f32 %v3623_v27, %v1562_v56  ;;  %v1583_v3 = vadd.f32 %v3623_v27, %v1544_v59  ;;  %v1632_v46 = vmax.f32 %v1600_v40, 0.0  ;;  %v1614_v13 = vmax.f32 %v1582_v41, 0.0 }
 0x339   : > { %v1599_v5 = vadd.f32 %v3623_v27, %v1560_v60  ;;  %v1617_v12 = vmax.f32 %v1585_v63, 0.0  ;;  %v1630_v17 = vmax.f32 %v1598_v42, 0.0  ;;  %v1536_v42 = vmul.f32 %v3595_v54, %v1344_v33 }
 0x33a   : > { %v1633_v47 = vmax.f32 %v1601_v0, 0.0  ;;  %v1615_v18 = vmax.f32 %v1583_v3, 0.0  ;;  %v2399_v25 = vpop.f32.mrb[4].mxu0  ;;  %v1535_v59 = vmul.f32 %v3597_v55, %v1343_v34  ;;  %v1537_v63 = vmul.f32 %v3615_v21, %v1345_v51  ;;  %v1504_v3 = vpop.permute.xlu0 %1503  ;;  %v1350_v34 = vld [vmem:[#allocation2 + $0xf8] sm:$0xff] }
 0x33b   : > { %v1631_v19 = vmax.f32 %v1599_v5, 0.0  ;;  %v2415_v48 = vpop.f32.mrb[4].mxu1  ;;  %v2154_v26 = vpack.c.bf16 %v1617_v12, %v1616_v7  ;;  %v1549_v28 = vadd.f32 %v2399_v25, %v3605_v11  ;;  %v1176_v31 = vpop.f32.mrb[5].mxu0 }
 0x33c   : > { %v2194_v49 = vpack.c.bf16 %v1633_v47, %v1632_v46  ;;  %v1565_v30 = vadd.f32 %v2415_v48, %v1533_v2  ;;  %v1240_v32 = vpop.f32.mrb[5].mxu1  ;;  %v2149_v36 = vpack.c.bf16 %v1615_v18, %v1614_v13  ;;  %v1547_v38 = vadd.f32 %v3601_v9, %v1176_v31  ;;  %v2400_v39 = vpop.f32.mrb[6].mxu0  ;;  %v1348_v48 = vld [vmem:[#allocation2 + $0xe8] sm:$0xff] }
 0x33d   : > { %v2189_v37 = vpack.c.bf16 %v1631_v19, %v1630_v17  ;;  %v1563_v45 = vadd.f32 %v1531_v62, %v1240_v32  ;;  %v2416_v50 = vpop.f32.mrb[6].mxu1  ;;  %2226 = vst [vmem:[%s3503_s19 + $0x8] sm:$0xff] %v2154_v26   ;;  %v1588_v11 = vadd.f32 %v3623_v27, %v1549_v28  ;;  %v1550_v53 = vadd.f32 %v2400_v39, %v3603_v10  ;;  %v1179_v44 = vpop.f32.mrb[7].mxu0  ;;  %v1347_v26 = vld [vmem:[#allocation2 + $0xe0] sm:$0xff] }
 0x33e   : > { %2234 = vst [vmem:[%s3503_s19 + $0x48] sm:$0xff] %v2194_v49   ;;  %v1604_v52 = vadd.f32 %v3623_v27, %v1565_v30  ;;  %v1566_v40 = vadd.f32 %v2416_v50, %v1534_v1  ;;  %v1243_v56 = vpop.f32.mrb[7].mxu1  ;;  %2150 = vst [vmem:[%s3503_s19] sm:$0xff] %v2149_v36   ;;  %v1586_v9 = vadd.f32 %v3623_v27, %v1547_v38  ;;  %v1509_v2 = vpop.permute.xlu1 %1508  ;;  %v1349_v36 = vld [vmem:[#allocation2 + $0xf0] sm:$0xff] }
 0x33f   : > { %2233 = vst [vmem:[%s3503_s19 + $0x40] sm:$0xff] %v2189_v37   ;;  %v1602_v57 = vadd.f32 %v3623_v27, %v1563_v45  ;;  %v1548_v58 = vadd.f32 %v3599_v8, %v1179_v44  ;;  %v1564_v41 = vadd.f32 %v1532_v61, %v1243_v56  ;;  %v1589_v60 = vadd.f32 %v3623_v27, %v1550_v53 }
 0x340   : > { %v1605_v10 = vadd.f32 %v3623_v27, %v1566_v40  ;;  %v1538_v62 = vmul.f32 %v3613_v20, %v1346_v43  ;;  %v1620_v8 = vmax.f32 %v1588_v11, 0.0  ;;  %v1636_v61 = vmax.f32 %v1604_v52, 0.0 }
 0x341   : > { %v1587_v0 = vadd.f32 %v3623_v27, %v1548_v58  ;;  %v1603_v1 = vadd.f32 %v3623_v27, %v1564_v41  ;;  %v1621_v5 = vmax.f32 %v1589_v60, 0.0  ;;  %v1618_v7 = vmax.f32 %v1586_v9, 0.0 }
 0x342   : > { %v1637_v54 = vmax.f32 %v1605_v10, 0.0  ;;  %v1634_v55 = vmax.f32 %v1602_v57, 0.0  ;;  %v2403_v47 = vpop.f32.mrb[8].mxu0  ;;  %v1540_v52 = vmul.f32 %v3641_v6, %v1348_v48  ;;  %v1539_v53 = vmul.f32 %v3643_v4, %v1347_v26 }
 0x343   : > { %v1619_v46 = vmax.f32 %v1587_v0, 0.0  ;;  %v1635_v12 = vmax.f32 %v1603_v1, 0.0  ;;  %v2419_v13 = vpop.f32.mrb[8].mxu1  ;;  %v2164_v17 = vpack.c.bf16 %v1621_v5, %v1620_v8  ;;  %v1553_v21 = vadd.f32 %v2403_v47, %v3617_v22  ;;  %v1192_v19 = vpop.f32.mrb[9].mxu0 }
 0x344   : > { %v2204_v20 = vpack.c.bf16 %v1637_v54, %v1636_v61  ;;  %v1569_v18 = vadd.f32 %v2419_v13, %v1537_v63  ;;  %v1256_v25 = vpop.f32.mrb[9].mxu1  ;;  %v1551_v30 = vadd.f32 %v3609_v15, %v1192_v19  ;;  %v2404_v32 = vpop.f32.mrb[10].mxu0  ;;  %v1542_v44 = vmul.f32 %v1509_v2, %v1350_v34 }
 0x345   : > { %v2159_v49 = vpack.c.bf16 %v1619_v46, %v1618_v7  ;;  %v2199_v28 = vpack.c.bf16 %v1635_v12, %v1634_v55  ;;  %v1567_v31 = vadd.f32 %v1535_v59, %v1256_v25  ;;  %v2420_v33 = vpop.f32.mrb[10].mxu1  ;;  %2228 = vst [vmem:[%s3503_s19 + $0x18] sm:$0xff] %v2164_v17   ;;  %v1592_v22 = vadd.f32 %v3623_v27, %v1553_v21  ;;  %v1195_v39 = vpop.f32.mrb[11].mxu0 }
 0x346   : > { %2236 = vst [vmem:[%s3503_s19 + $0x58] sm:$0xff] %v2204_v20   ;;  %v1608_v37 = vadd.f32 %v3623_v27, %v1569_v18  ;;  %v1554_v38 = vadd.f32 %v2404_v32, %v3611_v16  ;;  %v1570_v45 = vadd.f32 %v2420_v33, %v1538_v62  ;;  %v1259_v50 = vpop.f32.mrb[11].mxu1  ;;  %v1590_v15 = vadd.f32 %v3623_v27, %v1551_v30 }
 0x347   : > { %2227 = vst [vmem:[%s3503_s19 + $0x10] sm:$0xff] %v2159_v49   ;;  %2235 = vst [vmem:[%s3503_s19 + $0x50] sm:$0xff] %v2199_v28   ;;  %v1606_v43 = vadd.f32 %v3623_v27, %v1567_v31  ;;  %v1552_v51 = vadd.f32 %v3607_v14, %v1195_v39  ;;  %v1568_v11 = vadd.f32 %v1536_v42, %v1259_v50  ;;  %v1624_v58 = vmax.f32 %v1592_v22, 0.0 }
 0x348   : > { %v1593_v40 = vadd.f32 %v3623_v27, %v1554_v38  ;;  %v1609_v16 = vadd.f32 %v3623_v27, %v1570_v45  ;;  %v1541_v56 = vmul.f32 %v1504_v3, %v1349_v36  ;;  %v1640_v41 = vmax.f32 %v1608_v37, 0.0 }
 0x349   : > { %v1591_v9 = vadd.f32 %v3623_v27, %v1552_v51  ;;  %v1607_v57 = vadd.f32 %v3623_v27, %v1568_v11  ;;  %v1622_v14 = vmax.f32 %v1590_v15, 0.0  ;;  %v1638_v42 = vmax.f32 %v1606_v43, 0.0 }
 0x34a   : > { %v1625_v59 = vmax.f32 %v1593_v40, 0.0  ;;  %v1641_v60 = vmax.f32 %v1609_v16, 0.0  ;;  %v2407_v4 = vpop.f32.mrb[12].mxu0 }
 0x34b   : > { %v1623_v10 = vmax.f32 %v1591_v9, 0.0  ;;  %v1639_v6 = vmax.f32 %v1607_v57, 0.0  ;;  %v2423_v62 = vpop.f32.mrb[12].mxu1  ;;  %v1557_v1 = vadd.f32 %v2407_v4, %v3627_v35  ;;  %v1208_v3 = vpop.f32.mrb[13].mxu0 }
 0x34c   : > { %v2174_v63 = vpack.c.bf16 %v1625_v59, %v1624_v58  ;;  %v2214_v0 = vpack.c.bf16 %v1641_v60, %v1640_v41  ;;  %v1573_v2 = vadd.f32 %v2423_v62, %v1541_v56  ;;  %v1272_v8 = vpop.f32.mrb[13].mxu1  ;;  %v1555_v54 = vadd.f32 %v3621_v24, %v1208_v3  ;;  %v2408_v55 = vpop.f32.mrb[14].mxu0 }
 0x34d   : > { %v2169_v61 = vpack.c.bf16 %v1623_v10, %v1622_v14  ;;  %v2209_v5 = vpack.c.bf16 %v1639_v6, %v1638_v42  ;;  %v1571_v7 = vadd.f32 %v1539_v53, %v1272_v8  ;;  %v2424_v46 = vpop.f32.mrb[14].mxu1  ;;  %v1596_v12 = vadd.f32 %v3623_v27, %v1557_v1  ;;  %v1211_v17 = vpop.f32.mrb[15].mxu0 }
 0x34e   : > { %2230 = vst [vmem:[%s3503_s19 + $0x28] sm:$0xff] %v2174_v63   ;;  %2238 = vst [vmem:[%s3503_s19 + $0x68] sm:$0xff] %v2214_v0   ;;  %v1612_v47 = vadd.f32 %v3623_v27, %v1573_v2  ;;  %v1558_v35 = vadd.f32 %v2408_v55, %v3625_v29  ;;  %v1574_v13 = vadd.f32 %v2424_v46, %v1542_v44  ;;  %v1275_v20 = vpop.f32.mrb[15].mxu1 }
 0x34f   : > { %2229 = vst [vmem:[%s3503_s19 + $0x20] sm:$0xff] %v2169_v61   ;;  %2237 = vst [vmem:[%s3503_s19 + $0x60] sm:$0xff] %v2209_v5   ;;  %v1594_v21 = vadd.f32 %v3623_v27, %v1555_v54  ;;  %v1610_v24 = vadd.f32 %v3623_v27, %v1571_v7  ;;  %v1556_v18 = vadd.f32 %v3619_v23, %v1211_v17  ;;  %v1628_v49 = vmax.f32 %v1596_v12, 0.0 }
 0x350   : > { %v1572_v19 = vadd.f32 %v1540_v52, %v1275_v20  ;;  %v1597_v25 = vadd.f32 %v3623_v27, %v1558_v35  ;;  %v1613_v48 = vadd.f32 %v3623_v27, %v1574_v13  ;;  %v1644_v28 = vmax.f32 %v1612_v47, 0.0 }
 0x351   : > { %v1595_v29 = vadd.f32 %v3623_v27, %v1556_v18  ;;  %v1626_v32 = vmax.f32 %v1594_v21, 0.0  ;;  %v1642_v33 = vmax.f32 %v1610_v24, 0.0 }
 0x352   : > { %v1611_v26 = vadd.f32 %v3623_v27, %v1572_v19  ;;  %v1629_v30 = vmax.f32 %v1597_v25, 0.0  ;;  %v1645_v31 = vmax.f32 %v1613_v48, 0.0 }
 0x353   : > { %v1627_v23 = vmax.f32 %v1595_v29, 0.0 }
 0x354   : > { %v1643_v34 = vmax.f32 %v1611_v26, 0.0  ;;  %v2184_v36 = vpack.c.bf16 %v1629_v30, %v1628_v49  ;;  %v2224_v22 = vpack.c.bf16 %v1645_v31, %v1644_v28 }
 0x355   : > { %v2179_v37 = vpack.c.bf16 %v1627_v23, %v1626_v32 }
 0x356   : > { %v2219_v38 = vpack.c.bf16 %v1643_v34, %v1642_v33  ;;  %2232 = vst [vmem:[%s3503_s19 + $0x38] sm:$0xff] %v2184_v36   ;;  %2240 = vst [vmem:[%s3503_s19 + $0x78] sm:$0xff] %v2224_v22  }
 0x357   : > { %2231 = vst [vmem:[%s3503_s19 + $0x30] sm:$0xff] %v2179_v37  }
 0x358   : > { %2239 = vst [vmem:[%s3503_s19 + $0x70] sm:$0xff] %v2219_v38  }
 0x359 PF: > { %s3874_s1 = sld [smem:[#allocation24_spill]]  ;;  %s3875_s13 = sld [smem:[#allocation36_spill]] }
 0x35a   : > { %s1821_s16 = sshll.u32 %s3503_s19, 4  ;;  %s1807_s20 = scalar_lea.sflag [#allocation5], %s3479_s21  ;;  %s3710_s16 = int_to_ptr.vmem [resolvable:$true] %s1821_s16 }
 0x35b   : > { %s2848_s28 = scalar_lea.vmem %s3710_s16, 2048  ;;  %s3031_s4 = smov [#allocation13]  }
 0x35c   : > { %p2849_p13 = scmp.ne.s32.totalorder %s3710_s16, %s2848_s28  ;;  %s2852_s14 = sshll.u32 %s3031_s4, 4  ;;  %s2853_s14 = int_to_ptr.vmem [resolvable:$false] %s2852_s14 }
 0x35d   : > { %s2854_s27 = scalar_lea.vmem %s2853_s14, 4096  ;;  %p2855_p10 = scmp.lt.s32.totalorder %s3710_s16, %s2853_s14 }
 0x35e   : > { %p2850_p7 = pnand %p2849_p13, %p3380_p12  ;;  %p2856_p5 = scmp.lt.s32.totalorder %s2854_s27, %s2848_s28 }
 0x35f   : > { %s2145_s7 = sshll.u32 %s3874_s1, 11 }
 0x360   : > { %s3707_s30 = scalar_lea.hbm %s3875_s13, %s2145_s7  ;;  %p2851_p0 = pneg %p2850_p7 }
 0x361   : > { %p2857_p9 = por %p2856_p5, %p2855_p10 }
 0x363   : > { %p2858_p4 = pnand %p2857_p9, %p2851_p0 }
 0x365   : > { %2861 = shalt.err (!%p2858_p4)
}
 0x366   : > { %s2862_s19 = scalar_lea.hbm %s3707_s30, 2048  ;;  %s2866_s1 = scalar_lea.hbm %s3875_s13, 4096 }
 0x367   : > { %p2863_p6 = scmp.ne.s32.totalorder %s3707_s30, %s2862_s19  ;;  %p2867_p8 = scmp.lt.u32.totalorder %s3707_s30, %s3875_s13 }
 0x368   : > { %p2868_p11 = scmp.lt.u32.totalorder %s2866_s1, %s2862_s19  ;;  %p2870_p13 = scmp.lt.u32.totalorder %s2862_s19, %s3707_s30 }
 0x369   : > { %p2864_p2 = pnand %p2863_p6, %p3380_p12 }
 0x36a   : > { %p2869_p3 = por %p2868_p11, %p2867_p8 }
 0x36b   : > { %p2865_p1 = pneg %p2864_p2 }
 0x36c   : > { %p2871_p7 = por %p2870_p13, %p2869_p3 }
 0x36e   : > { %p2872_p0 = pnand %p2871_p7, %p2865_p1 }
 0x370   : > { %2875 = shalt.err (!%p2872_p0)
}
 0x371   : > { %s3032_s5 = smov 64   ;;  %s3033_s28 = smov 4  }
 0x372   : > { %2473 = dma.vmem_to_hbm [thread:$0]  (%p3380_p12), %s3710_s16, 2048, %s3707_s30, %s1807_s20, %s3032_s5, %s3032_s5, %s3033_s28  }
 0x373 PF: > { %s3876_s4 = sld [smem:[#allocation21_spill]]  ;;  %s3877_s14 = sld [smem:[#allocation28_spill]] }
 0x374   : > { %p2504_p10 = scmp.ge.s32.totalorder %s3014_s10, 2 }
 0x379   : > { %s1836_s27 = sand.u32 1, %s3876_s4   ;;  %p3878_p5 = scmp.ne.s32.totalorder %s3877_s14, 0 }
 0x37a   : > { %s1837_s19 = scalar_lea.sflag [#allocation5], %s1836_s27 }
 0x37b   : > { %p2496_p9 = pnand %p2504_p10, %p3878_p5 }
 0x37d   : > { %2957 = dma.done.wait (!%p2496_p9), %s1837_s19, 2048  }
 0x37e   : > { %2959 = vsyncadd (!%p2496_p9), %s1837_s19, 4294965248  ;;  %s26_s10 = sadd.s32 1, %s3014_s10   ;;  %s3880_s27 = sld [smem:[#allocation22_spill]] }
 0x37f   : > { %p3741_p4 = scmp.ge.s32.totalorder %s26_s10, 6   ;;  %s3881_s18 = smov %s3237_s24 }
 0x380   : > { %s3882_s16 = sld [smem:[#allocation30_spill]]  ;;  %s3883_s20 = sld [smem:[#allocation31_spill]] }
 0x381   : > { %s3884_s21 = smov %s2966_s22  ;;  %s3885_s22 = smov %s2970_s23 }
 0x382   : > { %s3886_s23 = smov %s3370_s15  ;;  %s3887_s24 = smov %s2978_s25 }
 0x383   : > { %s3888_s25 = smov %s2982_s26  ;;  %s3889_s26 = smov %s3291_s17 }
 0x384   : > { %s3890_s28 = smov %s2994_s29  ;;  %s3891_s29 = smov %s3881_s18 }
 0x385   : > { %s3892_s30 = smov %s3006_s8  ;;  %s3893_s7 = smov %s3010_s9 }
 0x386   : > { %s3894_s8 = smov %s3882_s16  ;;  %s3895_s9 = smov %s3883_s20 }
 0x387   :  { %25 = sbr.rel (!%p3741_p4) target bundleno = 19 (0x13), region = 142 }
 0x38e   :  { %1842 = vsyncpa [#allocation4], 1 }
 0x38f   :  { %1844 = vsyncpa [#allocation4 + $0x1], 1 }
 0x390   :  { %1845 = vsyncpa [#allocation7], 1 }
 0x391   :  { %1847 = vsyncpa [#allocation7 + $0x1], 1 }
 0x392   :  { %1848 = vsyncpa [#allocation10], 1 }
 0x393   :  { %1849 = vsyncpa [#allocation5], 1 }
 0x394   :  { %1851 = vsyncpa [#allocation5 + $0x1], 1 }

// kernel: graphsage_forward.9
= control target key start
LH: loop header
LB: loop body
LE: loop exit
PB: predicated region body
PF: predicated region fallthrough
CT: control target
= control target key end

     0   :  { %8 = vsyncpa [#allocation4], 0  ;;  %s2179_s0 = inlined_call_operand.hbm [shape: bf16[512,128], index: 0, kind: input, shape index: {}]   ;;  %s2180_s1 = inlined_call_operand.hbm [shape: bf16[128,256], index: 1, kind: input, shape index: {}]   ;;  %s2181_s2 = inlined_call_operand.hbm [shape: f32[1,256], index: 2, kind: input, shape index: {}]   ;;  %s2182_s3 = inlined_call_operand.hbm [shape: f32[512,256], index: 3, kind: output, shape index: {}]  }
   0x1   :  { %10 = vsyncpa [#allocation4 + $0x1], 0 }
   0x2   :  { %11 = vsyncpa [#allocation7], 0 }
   0x3   :  { %12 = vsyncpa [#allocation5], 0 }
   0x4   :  { %14 = vsyncpa [#allocation5 + $0x1], 0  ;;  %s1754_s12 = smov 0   ;;  %s1756_s13 = smov 0  }
   0x5   :  { %s1758_s14 = smov 0   ;;  %s1760_s15 = smov 0  }
   0x6   :  { %s1762_s16 = smov 0   ;;  %s1764_s17 = smov 0  }
   0x7 LB: > { %s1348_s18 = sadd.s32 4294967295, %s1721_s17   ;;  %s1349_s19 = sadd.s32 4294967294, %s1721_s17   ;;  %s1721_s17 = sphi %s1764_s17, %s20_s17   ;;  %s1717_s16 = sphi %s1762_s16, %s2204_s16   ;;  %s1713_s15 = sphi %s1760_s15, %s2203_s15   ;;  %s1709_s14 = sphi %s1758_s14, %s2202_s14   ;;  %s1705_s13 = sphi %s1756_s13, %s2201_s13   ;;  %s1701_s12 = sphi %s1754_s12, %s2200_s12  }
   0x8   : > { %p61_p0 = scmp.ne.s32.totalorder %s1705_s13, %s1701_s12  ;;  %p1788_p1 = scmp.eq.s32.totalorder %s1348_s18, 0 }
   0x9   : > { %p1792_p2 = scmp.eq.s32.totalorder %s1348_s18, 1  ;;  %p147_p3 = scmp.eq.s32.totalorder %s1349_s19, 1 }
   0xa   : > { %s2187_s20 = scalar_select %p1788_p1, 1, 0 }
   0xb   : > { %p1798_p4 = por %p1788_p1, %p61_p0  ;;  %p1350_p5 = scmp.ge.s32.totalorder %s1721_s17, 1 }
   0xc   : > { %p1803_p6 = por %p147_p3, %p61_p0  ;;  %p154_p7 = scmp.lt.s32.totalorder %s1721_s17, 3 }
   0xd   : > { %s2189_s22 = scalar_select %p1798_p4, 1, 0 }
   0xe   : > { %s2190_s23 = scalar_select %p1803_p6, 1, 0 }
   0xf   : > { %p1808_p8 = pnand %p1350_p5, %p154_p7  ;;  %s1723_s25 = smov [#allocation6]  }
  0x10   : > { %s172_s26 = sshll.u32 %s1723_s25, 4  ;;  %s1724_s28 = smov [#allocation8]   ;;  %s1812_s26 = int_to_ptr.vmem [resolvable:$true] %s172_s26 }
  0x11   : > { %p1431_p9 = pneg %p1808_p8  ;;  %s189_s29 = sshll.u32 %s1724_s28, 4  ;;  %s1823_s29 = int_to_ptr.vmem [resolvable:$true] %s189_s29 }
  0x12   : > { %s1549_s5 = scalar_lea.hbm %s2180_s1, 2048 }
  0x13   : > { %p1819_p11 = pnand %p1431_p9, %p1788_p1  ;;  %p1550_p12 = scmp.ne.s32.totalorder %s2180_s1, %s1549_s5 }
  0x14   : > { %p1556_p5 = scmp.lt.u32.totalorder %s1549_s5, %s2180_s1 }
  0x15   : > { %p1551_p13 = pneg %p1819_p11 }
  0x17   : > { %p1552_p0 = pnand %p1551_p13, %p1550_p12 }
  0x19   : > { %p1553_p3 = pneg %p1552_p0 }
  0x1b   : > { %p1558_p7 = pnand %p1556_p5, %p1553_p3 }
  0x1d   : > { %1561 = shalt.err (!%p1558_p7)
}
  0x1e   : > { %s1562_s10 = scalar_lea.vmem %s1812_s26, 2048  ;;  %p1570_p1 = scmp.lt.s32.totalorder %s1812_s26, %s1812_s26 }
  0x1f   : > { %p1563_p9 = scmp.ne.s32.totalorder %s1812_s26, %s1562_s10  ;;  %p1571_p12 = scmp.lt.s32.totalorder %s1562_s10, %s1562_s10 }
  0x21   : > { %p1565_p10 = pnand %p1563_p9, %p1551_p13  ;;  %p1572_p0 = por %p1571_p12, %p1570_p1 }
  0x23   : > { %p1566_p6 = pneg %p1565_p10 }
  0x25   : > { %p1573_p4 = pnand %p1572_p0, %p1566_p6 }
  0x27   : > { %1576 = shalt.err (!%p1573_p4)
}
  0x28   : > { %s1725_s11 = smov 128   ;;  %s1726_s18 = smov 8  }
  0x29   : > { %1434 = dma.hbm_to_vmem [thread:$0]  (!%p1819_p11), %s2180_s1, 2048, %s1812_s26, [#allocation7], %s1725_s11, %s1725_s11, %s1726_s18  }
  0x2a   : > { %s1577_s4 = scalar_lea.hbm %s2181_s2, 32 }
  0x2b   : > { %p1578_p1 = scmp.ne.s32.totalorder %s2181_s2, %s1577_s4  ;;  %p1584_p10 = scmp.lt.u32.totalorder %s1577_s4, %s2181_s2 }
  0x2d   : > { %p1580_p4 = pnand %p1578_p1, %p1551_p13 }
  0x2f   : > { %p1581_p6 = pneg %p1580_p4 }
  0x31   : > { %p1586_p3 = pnand %p1584_p10, %p1581_p6 }
  0x33   : > { %1589 = shalt.err (!%p1586_p3)
}
  0x34   : > { %s1590_s26 = scalar_lea.vmem %s1823_s29, 32  ;;  %p1598_p12 = scmp.lt.s32.totalorder %s1823_s29, %s1823_s29 }
  0x35   : > { %p1591_p5 = scmp.ne.s32.totalorder %s1823_s29, %s1590_s26  ;;  %p1599_p0 = scmp.lt.s32.totalorder %s1590_s26, %s1590_s26 }
  0x37   : > { %p1593_p7 = pnand %p1591_p5, %p1551_p13  ;;  %p1600_p1 = por %p1599_p0, %p1598_p12 }
  0x39   : > { %p1594_p9 = pneg %p1593_p7 }
  0x3b   : > { %p1601_p4 = pnand %p1600_p1, %p1594_p9 }
  0x3d   : > { %1604 = shalt.err (!%p1601_p4)
}
  0x3e   : > { %1437 = dma.hbm_to_vmem [thread:$0]  (!%p1819_p11), %s2181_s2, 32, %s1823_s29, [#allocation7]  }
  0x3f   : > { %s39_s11 = sadd.s32 1, %s1717_s16  ;;  %s48_s18 = sadd.s32 1, %s1709_s14 }
  0x40   : > { %p41_p13 = scmp.ge.s32.totalorder %s39_s11, 2  ;;  %p55_p6 = scmp.ne.s32.totalorder %s1709_s14, %s1705_s13 }
  0x41   : > { %p56_p10 = scmp.eq.s32.totalorder %s1721_s17, 0  ;;  %p1448_p3 = scmp.lt.s32.totalorder %s1721_s17, 2 }
  0x42   : > { %s2206_s11 = smov (%p41_p13, %s39_s11), 0  ;;  %p1887_p7 = por %p1792_p2, %p55_p6 }
  0x43   : > { %p57_p5 = por %p56_p10, %p55_p6  ;;  %s43_s19 = ssub.s32 %s1717_s16, %s2206_s11 }
  0x44   : > { %s2193_s27 = scalar_select %p1887_p7, 1, 0 }
  0x45   : > { %s200_s25 = sand.u32 1, %s1709_s14   ;;  %p46_p9 = scmp.eq.s32.totalorder %s43_s19, 0 }
  0x46   : > { %s1354_s29 = sshll.u32 %s200_s25, 7  ;;  %s1400_s28 = sshll.u32 %s1717_s16, 11 }
  0x47   : > { %s1896_s30 = scalar_select %p46_p9, %s1709_s14, %s48_s18  }
  0x48   : > { %s1901_s6 = scalar_lea.hbm %s2179_s0, %s1400_s28  ;;  %s204_s21 = scalar_lea.vmem [#allocation3], %s1354_s29 }
  0x49   : > { %s212_s7 = sshll.u32 %s204_s21, 4  ;;  %p1905_p2 = pnand %p1448_p3, %p57_p5  ;;  %s1909_s7 = int_to_ptr.vmem [resolvable:$true] %s212_s7 }
  0x4a   : > { %s1911_s26 = scalar_lea.sflag [#allocation4], %s200_s25  ;;  %s1605_s9 = scalar_lea.hbm %s1901_s6, 2048 }
  0x4b   : > { %p1606_p11 = scmp.ne.s32.totalorder %s1901_s6, %s1605_s9  ;;  %p1607_p12 = pneg %p1905_p2 }
  0x4c   : > { %s1610_s19 = scalar_lea.hbm %s2179_s0, 4096  ;;  %p1611_p4 = scmp.lt.u32.totalorder %s1901_s6, %s2179_s0 }
  0x4d   : > { %p1608_p0 = pnand %p1607_p12, %p1606_p11  ;;  %p1612_p13 = scmp.lt.u32.totalorder %s1610_s19, %s1605_s9 }
  0x4e   : > { %p1614_p10 = scmp.lt.u32.totalorder %s1605_s9, %s1901_s6 }
  0x4f   : > { %p1609_p1 = pneg %p1608_p0  ;;  %p1613_p6 = por %p1612_p13, %p1611_p4 }
  0x51   : > { %p1615_p3 = por %p1614_p10, %p1613_p6 }
  0x53   : > { %p1616_p5 = pnand %p1615_p3, %p1609_p1 }
  0x55   : > { %1619 = shalt.err (!%p1616_p5)
}
  0x56   : > { %s1620_s25 = scalar_lea.vmem %s1909_s7, 2048  ;;  %s1727_s4 = smov [#allocation3]  }
  0x57   : > { %p1621_p9 = scmp.ne.s32.totalorder %s1909_s7, %s1620_s25  ;;  %s1625_s5 = sshll.u32 %s1727_s4, 4  ;;  %s1626_s5 = int_to_ptr.vmem [resolvable:$false] %s1625_s5 }
  0x58   : > { %s1627_s21 = scalar_lea.vmem %s1626_s5, 4096  ;;  %p1628_p7 = scmp.lt.s32.totalorder %s1909_s7, %s1626_s5 }
  0x59   : > { %p1623_p11 = pnand %p1621_p9, %p1607_p12  ;;  %p1629_p4 = scmp.lt.s32.totalorder %s1627_s21, %s1620_s25 }
  0x5b   : > { %p1624_p0 = pneg %p1623_p11  ;;  %p1630_p13 = por %p1629_p4, %p1628_p7 }
  0x5d   : > { %p1631_p6 = pnand %p1630_p13, %p1624_p0 }
  0x5f   : > { %1634 = shalt.err (!%p1631_p6)
}
  0x60   : > { %s1728_s9 = smov 64   ;;  %s1729_s10 = smov 4  }
  0x61   : > { %1441 = dma.hbm_to_vmem [thread:$0]  (!%p1905_p2), %s1901_s6, 2048, %s1909_s7, %s1911_s26, %s1728_s9, %s1728_s9, %s1729_s10  }
  0x62   : > { %224 = sbr.rel (%p1808_p8) target bundleno = 433 (0x1b1), region = 32  ;;  %s1942_s18 = sand.u32 (!%p1808_p8), 1, %s1705_s13  }
  0x63   : > { %s1358_s19 = sshll.u32 (!%p1808_p8), %s1942_s18, 7  ;;  %s227_s29 = scalar_lea.sflag (!%p1808_p8), [#allocation4], %s1942_s18 }
  0x64   : > { %s1946_s28 = scalar_lea.vmem (!%p1808_p8), [#allocation3], %s1358_s19  ;;  %p2195_p7 = scmp.ne.s32.totalorder (!%p1808_p8), %s2189_s22, 0 }
  0x69   : > { %1688 = dma.done.wait (%p2195_p7), %s227_s29, 2048  }
  0x6a   : > { %1690 = vsyncadd (%p2195_p7), %s227_s29, 4294965248  ;;  %p2196_p2 = scmp.ne.s32.totalorder %s2187_s20, 0 }
  0x6c   : > { %1692 = dma.done.wait (%p2196_p2), [#allocation7], 2080  }
  0x6d   : > { %1694 = vsyncadd (%p2196_p2), [#allocation7], 4294965216  ;;  %v1730_v0 = vmov 0   ;;  %v1509_v1 = vld [vmem:[#allocation6 + $0x4] ss:$8 sps:$4 sm:$0xff]   ;;  %v1537_v21 = vld [vmem:[%s1946_s28 + $0x10] sm:$0xff]   ;;  %v1014_v33 = vlaneseq }
  0x6e   : > { %656 = vmatprep.mubr.bf16.mxu0 %v1730_v0  ;;  %736 = vmatprep.mubr.bf16.mxu1 %v1730_v0  ;;  %v1511_v2 = vld [vmem:[#allocation6] ss:$8 sps:$4 sm:$0xff]   ;;  %v1512_v3 = vld [vmem:[#allocation6 + $0x14] ss:$8 sps:$4 sm:$0xff]   ;;  %v1514_v4 = vld [vmem:[#allocation6 + $0x10] ss:$8 sps:$4 sm:$0xff]  }
  0x6f   : > { %624 = vmatprep.subr.bf16.mxu0 %v1509_v1  ;;  %1403 = vmatprep.subr.bf16.mxu1 %v1509_v1  ;;  %v1515_v5 = vld [vmem:[#allocation6 + $0x24] ss:$8 sps:$4 sm:$0xff]   ;;  %v1517_v6 = vld [vmem:[#allocation6 + $0x20] ss:$8 sps:$4 sm:$0xff]   ;;  %v1518_v7 = vld [vmem:[#allocation6 + $0x34] ss:$8 sps:$4 sm:$0xff]  }
  0x70   : > { %625 = vmatpush1.bf16.msra.mxu0 %v1511_v2  ;;  %1411 = vmatpush1.bf16.msra.mxu1 %v1511_v2  ;;  %v1520_v8 = vld [vmem:[#allocation6 + $0x30] ss:$8 sps:$4 sm:$0xff]   ;;  %v1521_v9 = vld [vmem:[#allocation6 + $0x44] ss:$8 sps:$4 sm:$0xff]   ;;  %v1523_v10 = vld [vmem:[#allocation6 + $0x40] ss:$8 sps:$4 sm:$0xff]  }
  0x71   : > { %626 = vmatprep.subr.bf16.mxu0 %v1512_v3  ;;  %1404 = vmatprep.subr.bf16.mxu1 %v1512_v3  ;;  %v1524_v11 = vld [vmem:[#allocation6 + $0x54] ss:$8 sps:$4 sm:$0xff]   ;;  %v1526_v12 = vld [vmem:[#allocation6 + $0x50] ss:$8 sps:$4 sm:$0xff]   ;;  %v1527_v13 = vld [vmem:[#allocation6 + $0x64] ss:$8 sps:$4 sm:$0xff]  }
  0x72   : > { %v1529_v14 = vld [vmem:[#allocation6 + $0x60] ss:$8 sps:$4 sm:$0xff]   ;;  %v1530_v15 = vld [vmem:[#allocation6 + $0x74] ss:$8 sps:$4 sm:$0xff]   ;;  %v1532_v16 = vld [vmem:[#allocation6 + $0x70] ss:$8 sps:$4 sm:$0xff]  }
  0x73   : > { %v1533_v17 = vld [vmem:[%s1946_s28] sm:$0xff]   ;;  %v1535_v19 = vld [vmem:[%s1946_s28 + $0x8] sm:$0xff]   ;;  %v1538_v22 = vld [vmem:[%s1946_s28 + $0x50] sm:$0xff]   ;;  %v1015_v34 = vshrl.u32 %v1014_v33, 7  ;;  %s1361_s20 = sshll.u32 %s1942_s18, 9  ;;  %s1402_s24 = sshll.u32 %s1713_s15, 13 }
  0x74   : > { %627 = vmatpush1.bf16.msra.mxu0 %v1514_v4  ;;  %1412 = vmatpush1.bf16.msra.mxu1 %v1514_v4  ;;  %v1534_v18 = vld [vmem:[%s1946_s28 + $0x40] sm:$0xff]   ;;  %v1536_v20 = vld [vmem:[%s1946_s28 + $0x48] sm:$0xff]   ;;  %v1539_v23 = vld [vmem:[%s1946_s28 + $0x18] sm:$0xff]   ;;  %s2001_s22 = scalar_lea.vmem [#allocation9], %s1361_s20  ;;  %s2122_s8 = scalar_lea.hbm %s2182_s3, %s1402_s24 }
  0x75   : > { %628 = vmatprep.subr.bf16.mxu0 %v1515_v5  ;;  %1405 = vmatprep.subr.bf16.mxu1 %v1515_v5  ;;  %v1540_v24 = vld [vmem:[%s1946_s28 + $0x58] sm:$0xff]   ;;  %v1541_v25 = vld [vmem:[%s1946_s28 + $0x20] sm:$0xff]   ;;  %v1543_v27 = vld [vmem:[%s1946_s28 + $0x28] sm:$0xff]   ;;  %v1016_v35 = vsub.s32 0, %v1015_v34  ;;  %v1020_v37 = vsub.s32 1, %v1015_v34  ;;  %s1233_s6 = sshll.u32 %s2001_s22, 4  ;;  %s2124_s6 = int_to_ptr.vmem [resolvable:$true] %s1233_s6 }
  0x76   : > { %v1542_v26 = vld [vmem:[%s1946_s28 + $0x60] sm:$0xff]   ;;  %v1544_v28 = vld [vmem:[%s1946_s28 + $0x68] sm:$0xff]   ;;  %v1545_v29 = vld [vmem:[%s1946_s28 + $0x30] sm:$0xff]   ;;  %s1217_s26 = scalar_lea.sflag [#allocation5], %s1942_s18  ;;  %s1635_s25 = scalar_lea.vmem %s2124_s6, 8192 }
  0x77   : > { %v1546_v30 = vld [vmem:[%s1946_s28 + $0x70] sm:$0xff]   ;;  %v1547_v31 = vld [vmem:[%s1946_s28 + $0x38] sm:$0xff]   ;;  %v1012_v36 = vld [vmem:[#allocation8] sm:$0x3]  ;;  %p1636_p8 = scmp.ne.s32.totalorder %s2124_s6, %s1635_s25  ;;  %p2197_p12 = scmp.ne.s32.totalorder %s2193_s27, 0 }
  0x78   : > { %629 = vmatpush1.bf16.msra.mxu0 %v1517_v6  ;;  %1413 = vmatpush1.bf16.msra.mxu1 %v1517_v6  ;;  %v1548_v32 = vld [vmem:[%s1946_s28 + $0x78] sm:$0xff]   ;;  %v1988_v38 = vrot.slane %v1012_v36, %v1016_v35  ;;  %v1990_v39 = vrot.slane %v1012_v36, %v1020_v37  ;;  %s1731_s4 = smov [#allocation9]  }
  0x79   : > { %630 = vmatprep.subr.bf16.mxu0 %v1518_v7  ;;  %1406 = vmatprep.subr.bf16.mxu1 %v1518_v7  ;;  %p1637_p1 = pnand %p1636_p8, %p2197_p12  ;;  %s1639_s5 = sshll.u32 %s1731_s4, 4  ;;  %s1640_s5 = int_to_ptr.vmem [resolvable:$false] %s1639_s5 }
  0x7a   : > { %s1641_s21 = scalar_lea.vmem %s1640_s5, 16384  ;;  %p1642_p3 = scmp.lt.s32.totalorder %s2124_s6, %s1640_s5 }
  0x7b   : > { %p1638_p10 = pneg %p1637_p1  ;;  %p1643_p5 = scmp.lt.s32.totalorder %s1641_s21, %s1635_s25 }
  0x7c   : > { %631 = vmatpush1.bf16.msra.mxu0 %v1520_v8  ;;  %1414 = vmatpush1.bf16.msra.mxu1 %v1520_v8 }
  0x7d   : > { %632 = vmatprep.subr.bf16.mxu0 %v1521_v9  ;;  %1407 = vmatprep.subr.bf16.mxu1 %v1521_v9  ;;  %p1644_p9 = por %p1643_p5, %p1642_p3 }
  0x7f   : > { %p1645_p11 = pnand %p1644_p9, %p1638_p10 }
  0x80   : > { %633 = vmatpush1.bf16.msra.mxu0 %v1523_v10  ;;  %1415 = vmatpush1.bf16.msra.mxu1 %v1523_v10 }
  0x81   : > { %634 = vmatprep.subr.bf16.mxu0 %v1524_v11  ;;  %1408 = vmatprep.subr.bf16.mxu1 %v1524_v11 }
  0x84   : > { %635 = vmatpush1.bf16.msra.mxu0 %v1526_v12  ;;  %1416 = vmatpush1.bf16.msra.mxu1 %v1526_v12 }
  0x85   : > { %636 = vmatprep.subr.bf16.mxu0 %v1527_v13  ;;  %1409 = vmatprep.subr.bf16.mxu1 %v1527_v13 }
  0x88   : > { %637 = vmatpush1.bf16.msra.mxu0 %v1529_v14  ;;  %1417 = vmatpush1.bf16.msra.mxu1 %v1529_v14 }
  0x89   : > { %638 = vmatprep.subr.bf16.mxu0 %v1530_v15  ;;  %1410 = vmatprep.subr.bf16.mxu1 %v1530_v15 }
  0x8c   : > { %639 = vmatpush1.bf16.msra.mxu0 %v1532_v16  ;;  %1418 = vmatpush1.bf16.msra.mxu1 %v1532_v16 }
  0x8f   : > { %657 = vmatmul.mubr.bf16.vlgmr.msra.gmra.mrb[0].mxu0 %v1533_v17  ;;  %737 = vmatmul.mubr.bf16.vlgmr.msra.gmra.mrb[0].mxu1 %v1534_v18 }
  0x90   : > { %666 = vmatprep.mubr.bf16.mxu0 %v1730_v0  ;;  %746 = vmatprep.mubr.bf16.mxu1 %v1730_v0 }
  0x97   : > { %667 = vmatmul.mubr.bf16.gmra.mrb[4].mxu0 %v1535_v19  ;;  %747 = vmatmul.mubr.bf16.gmra.mrb[4].mxu1 %v1536_v20 }
  0x98   : > { %676 = vmatprep.mubr.bf16.mxu0 %v1730_v0  ;;  %756 = vmatprep.mubr.bf16.mxu1 %v1730_v0 }
  0x9f   : > { %677 = vmatmul.mubr.bf16.gmra.mrb[8].mxu0 %v1537_v21  ;;  %757 = vmatmul.mubr.bf16.gmra.mrb[8].mxu1 %v1538_v22 }
  0xa0   : > { %686 = vmatprep.mubr.bf16.mxu0 %v1730_v0  ;;  %766 = vmatprep.mubr.bf16.mxu1 %v1730_v0 }
  0xa7   : > { %687 = vmatmul.mubr.bf16.gmra.mrb[12].mxu0 %v1539_v23  ;;  %767 = vmatmul.mubr.bf16.gmra.mrb[12].mxu1 %v1540_v24 }
  0xa8   : > { %696 = vmatprep.mubr.bf16.mxu0 %v1730_v0  ;;  %776 = vmatprep.mubr.bf16.mxu1 %v1730_v0 }
  0xaf   : > { %697 = vmatmul.mubr.bf16.gmra.mrb[16].mxu0 %v1541_v25  ;;  %777 = vmatmul.mubr.bf16.gmra.mrb[16].mxu1 %v1542_v26 }
  0xb0   : > { %706 = vmatprep.mubr.bf16.mxu0 %v1730_v0  ;;  %786 = vmatprep.mubr.bf16.mxu1 %v1730_v0 }
  0xb7   : > { %707 = vmatmul.mubr.bf16.gmra.mrb[20].mxu0 %v1543_v27  ;;  %787 = vmatmul.mubr.bf16.gmra.mrb[20].mxu1 %v1544_v28 }
  0xb8   : > { %716 = vmatprep.mubr.bf16.mxu0 %v1730_v0  ;;  %796 = vmatprep.mubr.bf16.mxu1 %v1730_v0 }
  0xbf   : > { %717 = vmatmul.mubr.bf16.gmra.mrb[24].mxu0 %v1545_v29  ;;  %797 = vmatmul.mubr.bf16.gmra.mrb[24].mxu1 %v1546_v30 }
  0xc0   : > { %726 = vmatprep.mubr.bf16.mxu0 %v1730_v0  ;;  %806 = vmatprep.mubr.bf16.mxu1 %v1730_v0 }
  0xc7   : > { %727 = vmatmul.mubr.bf16.gmra.mrb[28].mxu0 %v1547_v31  ;;  %807 = vmatmul.mubr.bf16.gmra.mrb[28].mxu1 %v1548_v32 }
 0x162   : > { %v658_v40 = vpop.f32.mrb[0].mxu0  ;;  %v738_v41 = vpop.f32.mrb[0].mxu1 }
 0x163   : > { %v1024_v42 = vadd.f32 %v1988_v38, %v658_v40  ;;  %v1056_v43 = vadd.f32 %v1988_v38, %v738_v41  ;;  %v660_v44 = vpop.f32.mrb[1].mxu0  ;;  %v740_v45 = vpop.f32.mrb[1].mxu1 }
 0x164   : > { %v1025_v46 = vadd.f32 %v1990_v39, %v660_v44  ;;  %v1057_v47 = vadd.f32 %v1990_v39, %v740_v45  ;;  %v662_v48 = vpop.f32.mrb[2].mxu0  ;;  %v742_v49 = vpop.f32.mrb[2].mxu1 }
 0x165   : > { %v1088_v50 = vmax.f32 %v1024_v42, 0.0  ;;  %v1120_v51 = vmax.f32 %v1056_v43, 0.0  ;;  %v1026_v52 = vadd.f32 %v1988_v38, %v662_v48  ;;  %v1058_v53 = vadd.f32 %v1988_v38, %v742_v49  ;;  %v664_v54 = vpop.f32.mrb[3].mxu0  ;;  %v744_v55 = vpop.f32.mrb[3].mxu1 }
 0x166   : > { %v1089_v56 = vmax.f32 %v1025_v46, 0.0  ;;  %v1121_v57 = vmax.f32 %v1057_v47, 0.0  ;;  %v1027_v58 = vadd.f32 %v1990_v39, %v664_v54  ;;  %v1059_v59 = vadd.f32 %v1990_v39, %v744_v55 }
 0x167   : > { %1152 = vst [vmem:[%s2001_s22] sm:$0xff] %v1088_v50  ;;  %1184 = vst [vmem:[%s2001_s22 + $0x100] sm:$0xff] %v1120_v51  ;;  %v1090_v60 = vmax.f32 %v1026_v52, 0.0  ;;  %v1122_v61 = vmax.f32 %v1058_v53, 0.0 }
 0x168   : > { %1153 = vst [vmem:[%s2001_s22 + $0x8] sm:$0xff] %v1089_v56  ;;  %1185 = vst [vmem:[%s2001_s22 + $0x108] sm:$0xff] %v1121_v57  ;;  %v1091_v62 = vmax.f32 %v1027_v58, 0.0  ;;  %v1123_v63 = vmax.f32 %v1059_v59, 0.0 }
 0x169   : > { %1154 = vst [vmem:[%s2001_s22 + $0x10] sm:$0xff] %v1090_v60  ;;  %1186 = vst [vmem:[%s2001_s22 + $0x110] sm:$0xff] %v1122_v61 }
 0x16a   : > { %1155 = vst [vmem:[%s2001_s22 + $0x18] sm:$0xff] %v1091_v62  ;;  %1187 = vst [vmem:[%s2001_s22 + $0x118] sm:$0xff] %v1123_v63  ;;  %v668_v0 = vpop.f32.mrb[4].mxu0  ;;  %v748_v1 = vpop.f32.mrb[4].mxu1 }
 0x16b   : > { %v1028_v2 = vadd.f32 %v1988_v38, %v668_v0  ;;  %v1060_v3 = vadd.f32 %v1988_v38, %v748_v1  ;;  %v670_v4 = vpop.f32.mrb[5].mxu0  ;;  %v750_v5 = vpop.f32.mrb[5].mxu1 }
 0x16c   : > { %v1029_v6 = vadd.f32 %v1990_v39, %v670_v4  ;;  %v1061_v7 = vadd.f32 %v1990_v39, %v750_v5  ;;  %v672_v8 = vpop.f32.mrb[6].mxu0  ;;  %v752_v9 = vpop.f32.mrb[6].mxu1 }
 0x16d   : > { %v1092_v10 = vmax.f32 %v1028_v2, 0.0  ;;  %v1124_v11 = vmax.f32 %v1060_v3, 0.0  ;;  %v1030_v12 = vadd.f32 %v1988_v38, %v672_v8  ;;  %v1062_v13 = vadd.f32 %v1988_v38, %v752_v9  ;;  %v674_v14 = vpop.f32.mrb[7].mxu0  ;;  %v754_v15 = vpop.f32.mrb[7].mxu1 }
 0x16e   : > { %v1093_v16 = vmax.f32 %v1029_v6, 0.0  ;;  %v1125_v17 = vmax.f32 %v1061_v7, 0.0  ;;  %v1031_v18 = vadd.f32 %v1990_v39, %v674_v14  ;;  %v1063_v19 = vadd.f32 %v1990_v39, %v754_v15 }
 0x16f   : > { %1156 = vst [vmem:[%s2001_s22 + $0x20] sm:$0xff] %v1092_v10  ;;  %1188 = vst [vmem:[%s2001_s22 + $0x120] sm:$0xff] %v1124_v11  ;;  %v1094_v20 = vmax.f32 %v1030_v12, 0.0  ;;  %v1126_v21 = vmax.f32 %v1062_v13, 0.0 }
 0x170   : > { %1157 = vst [vmem:[%s2001_s22 + $0x28] sm:$0xff] %v1093_v16  ;;  %1189 = vst [vmem:[%s2001_s22 + $0x128] sm:$0xff] %v1125_v17  ;;  %v1095_v22 = vmax.f32 %v1031_v18, 0.0  ;;  %v1127_v23 = vmax.f32 %v1063_v19, 0.0 }
 0x171   : > { %1158 = vst [vmem:[%s2001_s22 + $0x30] sm:$0xff] %v1094_v20  ;;  %1190 = vst [vmem:[%s2001_s22 + $0x130] sm:$0xff] %v1126_v21 }
 0x172   : > { %1159 = vst [vmem:[%s2001_s22 + $0x38] sm:$0xff] %v1095_v22  ;;  %1191 = vst [vmem:[%s2001_s22 + $0x138] sm:$0xff] %v1127_v23  ;;  %v678_v24 = vpop.f32.mrb[8].mxu0  ;;  %v758_v25 = vpop.f32.mrb[8].mxu1 }
 0x173   : > { %v1032_v26 = vadd.f32 %v1988_v38, %v678_v24  ;;  %v1064_v27 = vadd.f32 %v1988_v38, %v758_v25  ;;  %v680_v28 = vpop.f32.mrb[9].mxu0  ;;  %v760_v29 = vpop.f32.mrb[9].mxu1 }
 0x174   : > { %v1033_v30 = vadd.f32 %v1990_v39, %v680_v28  ;;  %v1065_v31 = vadd.f32 %v1990_v39, %v760_v29  ;;  %v682_v32 = vpop.f32.mrb[10].mxu0  ;;  %v762_v33 = vpop.f32.mrb[10].mxu1 }
 0x175   : > { %v1096_v34 = vmax.f32 %v1032_v26, 0.0  ;;  %v1128_v35 = vmax.f32 %v1064_v27, 0.0  ;;  %v1034_v36 = vadd.f32 %v1988_v38, %v682_v32  ;;  %v1066_v37 = vadd.f32 %v1988_v38, %v762_v33  ;;  %v684_v40 = vpop.f32.mrb[11].mxu0  ;;  %v764_v41 = vpop.f32.mrb[11].mxu1 }
 0x176   : > { %v1097_v42 = vmax.f32 %v1033_v30, 0.0  ;;  %v1129_v43 = vmax.f32 %v1065_v31, 0.0  ;;  %v1035_v44 = vadd.f32 %v1990_v39, %v684_v40  ;;  %v1067_v45 = vadd.f32 %v1990_v39, %v764_v41 }
 0x177   : > { %1160 = vst [vmem:[%s2001_s22 + $0x40] sm:$0xff] %v1096_v34  ;;  %1192 = vst [vmem:[%s2001_s22 + $0x140] sm:$0xff] %v1128_v35  ;;  %v1098_v46 = vmax.f32 %v1034_v36, 0.0  ;;  %v1130_v47 = vmax.f32 %v1066_v37, 0.0 }
 0x178   : > { %1161 = vst [vmem:[%s2001_s22 + $0x48] sm:$0xff] %v1097_v42  ;;  %1193 = vst [vmem:[%s2001_s22 + $0x148] sm:$0xff] %v1129_v43  ;;  %v1099_v48 = vmax.f32 %v1035_v44, 0.0  ;;  %v1131_v49 = vmax.f32 %v1067_v45, 0.0 }
 0x179   : > { %1162 = vst [vmem:[%s2001_s22 + $0x50] sm:$0xff] %v1098_v46  ;;  %1194 = vst [vmem:[%s2001_s22 + $0x150] sm:$0xff] %v1130_v47 }
 0x17a   : > { %1163 = vst [vmem:[%s2001_s22 + $0x58] sm:$0xff] %v1099_v48  ;;  %1195 = vst [vmem:[%s2001_s22 + $0x158] sm:$0xff] %v1131_v49  ;;  %v688_v50 = vpop.f32.mrb[12].mxu0  ;;  %v768_v51 = vpop.f32.mrb[12].mxu1 }
 0x17b   : > { %v1036_v52 = vadd.f32 %v1988_v38, %v688_v50  ;;  %v1068_v53 = vadd.f32 %v1988_v38, %v768_v51  ;;  %v690_v54 = vpop.f32.mrb[13].mxu0  ;;  %v770_v55 = vpop.f32.mrb[13].mxu1 }
 0x17c   : > { %v1037_v56 = vadd.f32 %v1990_v39, %v690_v54  ;;  %v1069_v57 = vadd.f32 %v1990_v39, %v770_v55  ;;  %v692_v58 = vpop.f32.mrb[14].mxu0  ;;  %v772_v59 = vpop.f32.mrb[14].mxu1 }
 0x17d   : > { %v1100_v60 = vmax.f32 %v1036_v52, 0.0  ;;  %v1132_v61 = vmax.f32 %v1068_v53, 0.0  ;;  %v1038_v62 = vadd.f32 %v1988_v38, %v692_v58  ;;  %v1070_v63 = vadd.f32 %v1988_v38, %v772_v59  ;;  %v694_v0 = vpop.f32.mrb[15].mxu0  ;;  %v774_v1 = vpop.f32.mrb[15].mxu1 }
 0x17e   : > { %v1101_v2 = vmax.f32 %v1037_v56, 0.0  ;;  %v1133_v3 = vmax.f32 %v1069_v57, 0.0  ;;  %v1039_v4 = vadd.f32 %v1990_v39, %v694_v0  ;;  %v1071_v5 = vadd.f32 %v1990_v39, %v774_v1 }
 0x17f   : > { %1164 = vst [vmem:[%s2001_s22 + $0x60] sm:$0xff] %v1100_v60  ;;  %1196 = vst [vmem:[%s2001_s22 + $0x160] sm:$0xff] %v1132_v61  ;;  %v1102_v6 = vmax.f32 %v1038_v62, 0.0  ;;  %v1134_v7 = vmax.f32 %v1070_v63, 0.0 }
 0x180   : > { %1165 = vst [vmem:[%s2001_s22 + $0x68] sm:$0xff] %v1101_v2  ;;  %1197 = vst [vmem:[%s2001_s22 + $0x168] sm:$0xff] %v1133_v3  ;;  %v1103_v8 = vmax.f32 %v1039_v4, 0.0  ;;  %v1135_v9 = vmax.f32 %v1071_v5, 0.0 }
 0x181   : > { %1166 = vst [vmem:[%s2001_s22 + $0x70] sm:$0xff] %v1102_v6  ;;  %1198 = vst [vmem:[%s2001_s22 + $0x170] sm:$0xff] %v1134_v7 }
 0x182   : > { %1167 = vst [vmem:[%s2001_s22 + $0x78] sm:$0xff] %v1103_v8  ;;  %1199 = vst [vmem:[%s2001_s22 + $0x178] sm:$0xff] %v1135_v9  ;;  %v698_v10 = vpop.f32.mrb[16].mxu0  ;;  %v778_v11 = vpop.f32.mrb[16].mxu1 }
 0x183   : > { %v1040_v12 = vadd.f32 %v1988_v38, %v698_v10  ;;  %v1072_v13 = vadd.f32 %v1988_v38, %v778_v11  ;;  %v700_v14 = vpop.f32.mrb[17].mxu0  ;;  %v780_v15 = vpop.f32.mrb[17].mxu1 }
 0x184   : > { %v1041_v16 = vadd.f32 %v1990_v39, %v700_v14  ;;  %v1073_v17 = vadd.f32 %v1990_v39, %v780_v15  ;;  %v702_v18 = vpop.f32.mrb[18].mxu0  ;;  %v782_v19 = vpop.f32.mrb[18].mxu1 }
 0x185   : > { %v1104_v20 = vmax.f32 %v1040_v12, 0.0  ;;  %v1136_v21 = vmax.f32 %v1072_v13, 0.0  ;;  %v1042_v22 = vadd.f32 %v1988_v38, %v702_v18  ;;  %v1074_v23 = vadd.f32 %v1988_v38, %v782_v19  ;;  %v704_v24 = vpop.f32.mrb[19].mxu0  ;;  %v784_v25 = vpop.f32.mrb[19].mxu1 }
 0x186   : > { %v1105_v26 = vmax.f32 %v1041_v16, 0.0  ;;  %v1137_v27 = vmax.f32 %v1073_v17, 0.0  ;;  %v1043_v28 = vadd.f32 %v1990_v39, %v704_v24  ;;  %v1075_v29 = vadd.f32 %v1990_v39, %v784_v25 }
 0x187   : > { %1168 = vst [vmem:[%s2001_s22 + $0x80] sm:$0xff] %v1104_v20  ;;  %1200 = vst [vmem:[%s2001_s22 + $0x180] sm:$0xff] %v1136_v21  ;;  %v1106_v30 = vmax.f32 %v1042_v22, 0.0  ;;  %v1138_v31 = vmax.f32 %v1074_v23, 0.0 }
 0x188   : > { %1169 = vst [vmem:[%s2001_s22 + $0x88] sm:$0xff] %v1105_v26  ;;  %1201 = vst [vmem:[%s2001_s22 + $0x188] sm:$0xff] %v1137_v27  ;;  %v1107_v32 = vmax.f32 %v1043_v28, 0.0  ;;  %v1139_v33 = vmax.f32 %v1075_v29, 0.0 }
 0x189   : > { %1170 = vst [vmem:[%s2001_s22 + $0x90] sm:$0xff] %v1106_v30  ;;  %1202 = vst [vmem:[%s2001_s22 + $0x190] sm:$0xff] %v1138_v31 }
 0x18a   : > { %1171 = vst [vmem:[%s2001_s22 + $0x98] sm:$0xff] %v1107_v32  ;;  %1203 = vst [vmem:[%s2001_s22 + $0x198] sm:$0xff] %v1139_v33  ;;  %v708_v34 = vpop.f32.mrb[20].mxu0  ;;  %v788_v35 = vpop.f32.mrb[20].mxu1 }
 0x18b   : > { %v1044_v36 = vadd.f32 %v1988_v38, %v708_v34  ;;  %v1076_v37 = vadd.f32 %v1988_v38, %v788_v35  ;;  %v710_v40 = vpop.f32.mrb[21].mxu0  ;;  %v790_v41 = vpop.f32.mrb[21].mxu1 }
 0x18c   : > { %v1045_v42 = vadd.f32 %v1990_v39, %v710_v40  ;;  %v1077_v43 = vadd.f32 %v1990_v39, %v790_v41  ;;  %v712_v44 = vpop.f32.mrb[22].mxu0  ;;  %v792_v45 = vpop.f32.mrb[22].mxu1 }
 0x18d   : > { %v1108_v46 = vmax.f32 %v1044_v36, 0.0  ;;  %v1140_v47 = vmax.f32 %v1076_v37, 0.0  ;;  %v1046_v48 = vadd.f32 %v1988_v38, %v712_v44  ;;  %v1078_v49 = vadd.f32 %v1988_v38, %v792_v45  ;;  %v714_v50 = vpop.f32.mrb[23].mxu0  ;;  %v794_v51 = vpop.f32.mrb[23].mxu1 }
 0x18e   : > { %v1109_v52 = vmax.f32 %v1045_v42, 0.0  ;;  %v1141_v53 = vmax.f32 %v1077_v43, 0.0  ;;  %v1047_v54 = vadd.f32 %v1990_v39, %v714_v50  ;;  %v1079_v55 = vadd.f32 %v1990_v39, %v794_v51 }
 0x18f   : > { %1172 = vst [vmem:[%s2001_s22 + $0xa0] sm:$0xff] %v1108_v46  ;;  %1204 = vst [vmem:[%s2001_s22 + $0x1a0] sm:$0xff] %v1140_v47  ;;  %v1110_v56 = vmax.f32 %v1046_v48, 0.0  ;;  %v1142_v57 = vmax.f32 %v1078_v49, 0.0 }
 0x190   : > { %1173 = vst [vmem:[%s2001_s22 + $0xa8] sm:$0xff] %v1109_v52  ;;  %1205 = vst [vmem:[%s2001_s22 + $0x1a8] sm:$0xff] %v1141_v53  ;;  %v1111_v58 = vmax.f32 %v1047_v54, 0.0  ;;  %v1143_v59 = vmax.f32 %v1079_v55, 0.0 }
 0x191   : > { %1174 = vst [vmem:[%s2001_s22 + $0xb0] sm:$0xff] %v1110_v56  ;;  %1206 = vst [vmem:[%s2001_s22 + $0x1b0] sm:$0xff] %v1142_v57 }
 0x192   : > { %1175 = vst [vmem:[%s2001_s22 + $0xb8] sm:$0xff] %v1111_v58  ;;  %1207 = vst [vmem:[%s2001_s22 + $0x1b8] sm:$0xff] %v1143_v59  ;;  %v718_v60 = vpop.f32.mrb[24].mxu0  ;;  %v798_v61 = vpop.f32.mrb[24].mxu1 }
 0x193   : > { %v1048_v62 = vadd.f32 %v1988_v38, %v718_v60  ;;  %v1080_v63 = vadd.f32 %v1988_v38, %v798_v61  ;;  %v720_v0 = vpop.f32.mrb[25].mxu0  ;;  %v800_v1 = vpop.f32.mrb[25].mxu1 }
 0x194   : > { %v1049_v2 = vadd.f32 %v1990_v39, %v720_v0  ;;  %v1081_v3 = vadd.f32 %v1990_v39, %v800_v1  ;;  %v722_v4 = vpop.f32.mrb[26].mxu0  ;;  %v802_v5 = vpop.f32.mrb[26].mxu1 }
 0x195   : > { %v1112_v6 = vmax.f32 %v1048_v62, 0.0  ;;  %v1144_v7 = vmax.f32 %v1080_v63, 0.0  ;;  %v1050_v8 = vadd.f32 %v1988_v38, %v722_v4  ;;  %v1082_v9 = vadd.f32 %v1988_v38, %v802_v5  ;;  %v724_v10 = vpop.f32.mrb[27].mxu0  ;;  %v804_v11 = vpop.f32.mrb[27].mxu1 }
 0x196   : > { %v1113_v12 = vmax.f32 %v1049_v2, 0.0  ;;  %v1145_v13 = vmax.f32 %v1081_v3, 0.0  ;;  %v1051_v14 = vadd.f32 %v1990_v39, %v724_v10  ;;  %v1083_v15 = vadd.f32 %v1990_v39, %v804_v11 }
 0x197   : > { %1176 = vst [vmem:[%s2001_s22 + $0xc0] sm:$0xff] %v1112_v6  ;;  %1208 = vst [vmem:[%s2001_s22 + $0x1c0] sm:$0xff] %v1144_v7  ;;  %v1114_v16 = vmax.f32 %v1050_v8, 0.0  ;;  %v1146_v17 = vmax.f32 %v1082_v9, 0.0 }
 0x198   : > { %1177 = vst [vmem:[%s2001_s22 + $0xc8] sm:$0xff] %v1113_v12  ;;  %1209 = vst [vmem:[%s2001_s22 + $0x1c8] sm:$0xff] %v1145_v13  ;;  %v1115_v18 = vmax.f32 %v1051_v14, 0.0  ;;  %v1147_v19 = vmax.f32 %v1083_v15, 0.0 }
 0x199   : > { %1178 = vst [vmem:[%s2001_s22 + $0xd0] sm:$0xff] %v1114_v16  ;;  %1210 = vst [vmem:[%s2001_s22 + $0x1d0] sm:$0xff] %v1146_v17 }
 0x19a   : > { %1179 = vst [vmem:[%s2001_s22 + $0xd8] sm:$0xff] %v1115_v18  ;;  %1211 = vst [vmem:[%s2001_s22 + $0x1d8] sm:$0xff] %v1147_v19  ;;  %v728_v20 = vpop.f32.mrb[28].mxu0  ;;  %v808_v21 = vpop.f32.mrb[28].mxu1 }
 0x19b   : > { %v1052_v22 = vadd.f32 %v1988_v38, %v728_v20  ;;  %v1084_v23 = vadd.f32 %v1988_v38, %v808_v21  ;;  %v730_v24 = vpop.f32.mrb[29].mxu0  ;;  %v810_v25 = vpop.f32.mrb[29].mxu1 }
 0x19c   : > { %v1053_v26 = vadd.f32 %v1990_v39, %v730_v24  ;;  %v1085_v27 = vadd.f32 %v1990_v39, %v810_v25  ;;  %v732_v28 = vpop.f32.mrb[30].mxu0  ;;  %v812_v29 = vpop.f32.mrb[30].mxu1 }
 0x19d   : > { %v1116_v30 = vmax.f32 %v1052_v22, 0.0  ;;  %v1148_v31 = vmax.f32 %v1084_v23, 0.0  ;;  %v1054_v32 = vadd.f32 %v1988_v38, %v732_v28  ;;  %v1086_v33 = vadd.f32 %v1988_v38, %v812_v29  ;;  %v734_v34 = vpop.f32.mrb[31].mxu0  ;;  %v814_v35 = vpop.f32.mrb[31].mxu1 }
 0x19e   : > { %v1117_v36 = vmax.f32 %v1053_v26, 0.0  ;;  %v1149_v37 = vmax.f32 %v1085_v27, 0.0  ;;  %v1055_v40 = vadd.f32 %v1990_v39, %v734_v34  ;;  %v1087_v41 = vadd.f32 %v1990_v39, %v814_v35 }
 0x19f   : > { %1180 = vst [vmem:[%s2001_s22 + $0xe0] sm:$0xff] %v1116_v30  ;;  %1212 = vst [vmem:[%s2001_s22 + $0x1e0] sm:$0xff] %v1148_v31  ;;  %v1118_v42 = vmax.f32 %v1054_v32, 0.0  ;;  %v1150_v43 = vmax.f32 %v1086_v33, 0.0 }
 0x1a0   : > { %1181 = vst [vmem:[%s2001_s22 + $0xe8] sm:$0xff] %v1117_v36  ;;  %1213 = vst [vmem:[%s2001_s22 + $0x1e8] sm:$0xff] %v1149_v37  ;;  %v1119_v38 = vmax.f32 %v1055_v40, 0.0  ;;  %v1151_v44 = vmax.f32 %v1087_v41, 0.0 }
 0x1a1   : > { %1182 = vst [vmem:[%s2001_s22 + $0xf0] sm:$0xff] %v1118_v42  ;;  %1214 = vst [vmem:[%s2001_s22 + $0x1f0] sm:$0xff] %v1150_v43 }
 0x1a2   : > { %1183 = vst [vmem:[%s2001_s22 + $0xf8] sm:$0xff] %v1119_v38  ;;  %1215 = vst [vmem:[%s2001_s22 + $0x1f8] sm:$0xff] %v1151_v44 }
 0x1a3   : > { %1648 = shalt.err (!%p1645_p11)
}
 0x1a4   : > { %s1649_s9 = scalar_lea.hbm %s2122_s8, 8192  ;;  %s1653_s29 = scalar_lea.hbm %s2182_s3, 16384 }
 0x1a5   : > { %p1650_p0 = scmp.ne.s32.totalorder %s2122_s8, %s1649_s9  ;;  %p1654_p6 = scmp.lt.u32.totalorder %s2122_s8, %s2182_s3 }
 0x1a6   : > { %p1655_p7 = scmp.lt.u32.totalorder %s1653_s29, %s1649_s9  ;;  %p1657_p8 = scmp.lt.u32.totalorder %s1649_s9, %s2122_s8 }
 0x1a7   : > { %p1651_p4 = pnand %p1650_p0, %p2197_p12 }
 0x1a8   : > { %p1656_p2 = por %p1655_p7, %p1654_p6 }
 0x1a9   : > { %p1652_p13 = pneg %p1651_p4 }
 0x1aa   : > { %p1658_p1 = por %p1657_p8, %p1656_p2 }
 0x1ac   : > { %p1659_p10 = pnand %p1658_p1, %p1652_p13 }
 0x1ae   : > { %1662 = shalt.err (!%p1659_p10)
}
 0x1af   : > { %s1732_s22 = smov 256   ;;  %s1733_s24 = smov 16  }
 0x1b0   : > { %1429 = dma.vmem_to_hbm [thread:$0]  (%p2197_p12), %s2124_s6, 8192, %s2122_s8, %s1217_s26, %s1732_s22, %s1732_s22, %s1733_s24  }
 0x1b1 PF: > { %s1248_s15 = sand.u32 1, %s1701_s12   ;;  %p2198_p3 = scmp.ne.s32.totalorder %s2190_s23, 0 }
 0x1b2   : > { %p2199_p5 = scmp.ge.s32.totalorder %s1721_s17, 2  ;;  %s1249_s7 = scalar_lea.sflag [#allocation5], %s1248_s15 }
 0x1b4   : > { %p1443_p9 = pnand %p2199_p5, %p2198_p3 }
 0x1b6   : > { %1696 = dma.done.wait (!%p1443_p9), %s1249_s7, 8192  }
 0x1b7   : > { %1698 = vsyncadd (!%p1443_p9), %s1249_s7, 4294959104  ;;  %s20_s17 = sadd.s32 1, %s1721_s17   ;;  %s2200_s12 = smov %s1705_s13 }
 0x1b8   : > { %p17_p11 = scmp.ge.s32.totalorder %s20_s17, 4   ;;  %s2201_s13 = smov %s1709_s14 }
 0x1b9   : > { %s2202_s14 = smov %s1896_s30  ;;  %s2203_s15 = smov %s1717_s16 }
 0x1ba   : > { %s2204_s16 = smov %s2206_s11  ;;  %19 = sbr.rel (!%p17_p11) target bundleno = 7 (0x7), region = 95 }
 0x1c1   :  { %1254 = vsyncpa [#allocation4], 1 }
 0x1c2   :  { %1256 = vsyncpa [#allocation4 + $0x1], 1 }
 0x1c3   :  { %1257 = vsyncpa [#allocation7], 1 }
 0x1c4   :  { %1258 = vsyncpa [#allocation5], 1 }
 0x1c5   :  { %1260 = vsyncpa [#allocation5 + $0x1], 1 }

</bundles_post_ra>
